<compile_context>
chip_gen: v7x
topology: tpu7x:2x2x1
jax: 0.10.0
libtpu: 0.0.40
codegen_flags: <defaults>
</compile_context>

<pallas_src>
import functools

import jax
import jax.numpy as jnp
from jax.experimental import pallas as pl
from jax.experimental.pallas import tpu as pltpu


def _summarunner_kernel(
    x_ref,        # (Bt, T, E)   bf16
    lens_ref,     # (Bt, 2)      int32   [:, 0]=pack len, [:, 1]=doc len
    w_in_ref,     # (E, 8H)      bf16    [w_ih_f^T | w_ih_b^T]
    w_rec_ref,    # (2H, 8H)     bf16    block-diag(w_hh_f^T, w_hh_b^T)
    b_gates_ref,  # (1, 8H)      f32     b_ih + b_hh, both directions
    w_big_ref,    # (2H, 6H)     f32     [doc_rep W^T | salience A^T | novelty A]
    vec2_ref,     # (2, 2H)      f32     row0 = doc_rep bias, row1 = content W
    pos_ref,      # (1, T)       f32     position scores
    misc_ref,     # (8,)         f32 SMEM [content_b, sal_b, nov_b, cls_w, cls_b,0,0,0]
    out_ref,      # (Bt, T)      f32
    g_ref,        # scratch VMEM (Bt, T, 8H) f32  hoisted input projection
    sent_ref,     # scratch VMEM (Bt, T, 2H) f32  BiLSTM outputs
    vnov_ref,     # scratch VMEM (Bt, T, 2H) f32  sent @ novelty_A
    *, hidden_dim, split_recurrence):
  H = hidden_dim
  D2 = 2 * H
  G4 = 4 * H

  x = x_ref[...]                                  # (Bt, T, E) bf16
  Bt, T, E = x.shape
  lens = lens_ref[...]
  slen = lens[:, 0:1]                             # (Bt, 1) packing lengths
  dlen = lens[:, 1:2]                             # (Bt, 1) doc lengths

  # Scalar params read once from SMEM (no per-iteration re-broadcast emission).
  content_b = misc_ref[0]
  salience_b = misc_ref[1]
  novelty_b = misc_ref[2]
  cls_w = misc_ref[3]
  cls_b = misc_ref[4]

  # ---- Hoisted input projection (both directions, one wide MXU matmul),
  #      staged straight into VMEM scratch to keep vreg pressure bounded. ----
  g_ref[...] = (jnp.dot(x.reshape(Bt * T, E), w_in_ref[...],
                        preferred_element_type=jnp.float32)
                + b_gates_ref[...]).reshape(Bt, T, 2 * G4)

  # ---- Validity masks computed ONCE (hoisted off the serial chain). ----
  iota_t = jax.lax.broadcasted_iota(jnp.int32, (Bt, T), 1)
  pack_mask = (iota_t < slen).astype(jnp.float32)          # (Bt, T)
  inv_pack_mask = 1.0 - pack_mask
  doc_mask = (iota_t < dlen).astype(jnp.float32)           # (Bt, T)

  w_rec = w_rec_ref[...]                                   # (2H, 8H) bf16
  if split_recurrence:
    w_rec_f = w_rec[0:H, 0:G4]                             # (H, 4H)
    w_rec_b = w_rec[H:D2, G4:2 * G4]                       # (H, 4H)

  def gate_math(pre, c):                                   # pre: (Bt, 4H) f32
    i_g = jax.nn.sigmoid(pre[:, 0 * H:1 * H])
    f_g = jax.nn.sigmoid(pre[:, 1 * H:2 * H])
    g_g = jnp.tanh(pre[:, 2 * H:3 * H])
    o_g = jax.nn.sigmoid(pre[:, 3 * H:4 * H])
    c_new = f_g * c + i_g * g_g
    return o_g * jnp.tanh(c_new), c_new

  # ---- Lock-step bidirectional recurrence (fwd at t=s, bwd at t=T-1-s). ----
  h_f = jnp.zeros((Bt, H), jnp.float32)
  c_f = jnp.zeros((Bt, H), jnp.float32)
  h_b = jnp.zeros((Bt, H), jnp.float32)
  c_b = jnp.zeros((Bt, H), jnp.float32)
  hs_f = [None] * T
  hs_b = [None] * T
  # TODO(synk): convert to lax.fori_loop + pl.ds scratch stores for large T.
  for s in range(T):
    tb = T - 1 - s
    if split_recurrence:
      rec_f = jnp.dot(h_f.astype(jnp.bfloat16), w_rec_f,
                      preferred_element_type=jnp.float32)
      rec_b = jnp.dot(h_b.astype(jnp.bfloat16), w_rec_b,
                      preferred_element_type=jnp.float32)
    else:
      hcat = jnp.concatenate([h_f, h_b], axis=-1).astype(jnp.bfloat16)
      rec = jnp.dot(hcat, w_rec, preferred_element_type=jnp.float32)
      rec_f = rec[:, :G4]
      rec_b = rec[:, G4:]
    # Forward: padding is at the tail, so the state never needs masking; the
    # pad_packed_sequence zeroing of outputs at t >= len is applied after the
    # loop with one dense multiply.
    h_f, c_f = gate_math(rec_f + g_ref[:, s, 0:G4], c_f)
    hs_f[s] = h_f
    # Backward: packed-sequence semantics -> padded steps leave state untouched
    # (state stays exactly 0 until the first valid step from the end).
    h_n, c_n = gate_math(rec_b + g_ref[:, tb, G4:2 * G4], c_b)
    vb = pack_mask[:, tb:tb + 1]
    ib = inv_pack_mask[:, tb:tb + 1]
    h_b = vb * h_n + ib * h_b
    c_b = vb * c_n + ib * c_b
    hs_b[tb] = h_b                                 # exact zero while tb >= len

  sent_fwd = jnp.stack(hs_f, axis=1) * pack_mask[:, :, None]   # (Bt, T, H)
  sent_bwd = jnp.stack(hs_b, axis=1)                           # (Bt, T, H)
  sent = jnp.concatenate([sent_fwd, sent_bwd], axis=-1)        # (Bt, T, 2H)
  sent_ref[...] = sent                                         # ONE dense store

  w_big = w_big_ref[...]
  drw = w_big[:, 0:D2]                            # doc_rep W^T
  saw = w_big[:, D2:2 * D2]                       # salience A[0]^T
  nvw = w_big[:, 2 * D2:3 * D2]                   # novelty  A[0]
  vec2 = vec2_ref[...]
  drb = vec2[0:1, :]                              # (1, 2H) doc_rep bias
  cw = vec2[1:2, :]                               # (1, 2H) content weight

  # ---- Document representation: doc_rep(sum(masked) / doc_len). ----
  doc_sum = jnp.sum(sent * doc_mask[:, :, None], axis=1)               # (Bt, 2H)
  dlen_f = jnp.maximum(dlen.astype(jnp.float32), 1.0)                  # guard /0
  doc_emb = jnp.dot(doc_sum / dlen_f, drw,
                    preferred_element_type=jnp.float32) + drb          # (Bt, 2H)

  # ---- Content + salience + position scores for all T positions at once,
  #      with the classifier affine folded in (hoisted off the serial loop). --
  content = jnp.sum(sent * cw[:, None, :], axis=-1) + content_b        # (Bt, T)
  v_sal = jnp.dot(doc_emb, saw, preferred_element_type=jnp.float32)    # (Bt, 2H)
  salience = jnp.sum(sent * v_sal[:, None, :], axis=-1) + salience_b   # (Bt, T)
  base_cls = (content + salience + pos_ref[...]) * cls_w + cls_b       # (Bt, T)

  # ---- Novelty matmul hoisted out of the sequential loop:
  #      s_i^T A sum_emb == sum_emb . (s_i @ A); staged to VMEM scratch. ----
  vnov_ref[...] = jnp.dot(sent.reshape(Bt * T, D2), nvw,
                          preferred_element_type=jnp.float32).reshape(Bt, T, D2)

  # ---- Sequential probability recurrence (no MXU inside; dense scratch loads,
  #      single dense output store after the loop). ----
  sum_emb = jnp.zeros((Bt, D2), jnp.float32)
  p_prev = None
  cols = []
  for i in range(T):
    if i == 0:
      logit = base_cls[:, 0:1]
    else:
      sum_emb = sum_emb + sent_ref[:, i - 1, :] * p_prev               # (Bt, 2H)
      nov_i = jnp.sum(sum_emb * vnov_ref[:, i, :], axis=-1,
                      keepdims=True) + novelty_b                       # (Bt, 1)
      logit = base_cls[:, i:i + 1] + nov_i * cls_w
    p_prev = jax.nn.sigmoid(logit)
    cols.append(p_prev)
  out_ref[...] = jnp.concatenate(cols, axis=1)                         # dense store


def _vmem_footprint(bt, T, E, H):
  """Rough per-grid-step VMEM bytes for batch tile `bt` (with 2x live-value headroom)."""
  per_row = (
      2 * T * E * 2          # x block, double-buffered, bf16
      + 2 * T * 4            # out block, double-buffered, f32
      + T * 8 * H * 4        # g scratch (input projection), f32
      + 2 * T * 2 * H * 4    # sent + v_nov scratches, f32
  )
  per_row = int(per_row * 2.0)
  fixed = ((E + 2 * H) * 8 * H * 2 * 2      # w_in + w_rec, bf16, double-buffered
           + (2 * H) * (6 * H) * 4 * 2      # w_big
           + (1 << 16))                     # biases / pos / small tiles
  return fixed, per_row


def _pick_batch_tile(B, T, E, H, *, vmem_budget_bytes=20 * 1024 * 1024,
                     max_tile=256):
  """Largest sublane-aligned batch tile whose footprint fits the budget."""
  fixed, per_row = _vmem_footprint(1, T, E, H)
  tile = (vmem_budget_bytes - fixed) // max(per_row, 1)
  tile = max(8, min(max_tile, (tile // 8) * 8))
  b8 = ((B + 7) // 8) * 8
  tile = min(tile, b8)
  # Prefer >= 2 grid steps when the batch allows it, so dimension_semantics
  # ("parallel",) can shard the grid across v7x's two TensorCores.
  if b8 >= 16 and tile >= b8:
    tile = max(8, (((b8 // 2) + 7) // 8) * 8)
  return tile


def make_params(key, embedding_dim, hidden_dim, max_pos=500):
  """Deterministic parameter init with the same shapes as the PyTorch module."""
  E, H = embedding_dim, hidden_dim
  D2 = 2 * H
  ks = jax.random.split(key, 19)
  u = lambda k, shape: jax.random.uniform(k, shape, jnp.float32, -0.1, 0.1)
  return {
      'w_ih_f': u(ks[0], (4 * H, E)),
      'w_hh_f': u(ks[1], (4 * H, H)),
      'b_ih_f': u(ks[2], (4 * H,)),
      'b_hh_f': u(ks[3], (4 * H,)),
      'w_ih_b': u(ks[4], (4 * H, E)),
      'w_hh_b': u(ks[5], (4 * H, H)),
      'b_ih_b': u(ks[6], (4 * H,)),
      'b_hh_b': u(ks[7], (4 * H,)),
      'doc_rep_w': u(ks[8], (D2, D2)),
      'doc_rep_b': u(ks[9], (D2,)),
      'content_w': u(ks[10], (1, D2)),
      'content_b': u(ks[11], (1,)),
      'salience_w': u(ks[12], (1, D2, D2)),
      'salience_b': u(ks[13], (1,)),
      'novelty_w': u(ks[14], (1, D2, D2)),
      'novelty_b': u(ks[15], (1,)),
      'pos_emb': u(ks[16], (max_pos, 1)),
      'classifier_w': u(ks[17], (1, 1)),
      'classifier_b': u(ks[18], (1,)),
  }


def summarunner_forward(sent_embeddings, sentence_lengths, doc_length, params,
                        hidden_dim, *, batch_tile=None):
  B, T, E = sent_embeddings.shape
  H = hidden_dim
  D2 = 2 * H
  G8 = 8 * H
  p = params

  # Auto-derive a VMEM-budgeted, sublane-aligned batch tile (>= 2 grid steps
  # whenever the batch allows), unless the caller pins one explicitly.
  Bt = batch_tile if batch_tile is not None else _pick_batch_tile(B, T, E, H)
  Bt = max(8, (Bt // 8) * 8)
  Bp = ((B + Bt - 1) // Bt) * Bt

  # VMEM limit derived from the actual footprint with headroom (never assume
  # the 128 MiB v5e/v6e budget; v7x only has 64 MiB physical).
  fixed, per_row = _vmem_footprint(Bt, T, E, H)
  need = fixed + per_row * Bt
  vmem_limit = int(min(64 * 1024 * 1024, max(28 * 1024 * 1024, need + (4 << 20))))

  x = sent_embeddings.astype(jnp.bfloat16)
  lens = jnp.stack([sentence_lengths.astype(jnp.int32),
                    doc_length.astype(jnp.int32)], axis=1)            # (B, 2)
  if Bp != B:
    x = jnp.pad(x, ((0, Bp - B), (0, 0), (0, 0)))
    lens = jnp.pad(lens, ((0, Bp - B), (0, 0)))   # padded rows: lengths 0

  # ---- Consolidated parameters. ----
  w_in = jnp.concatenate([p['w_ih_f'].T, p['w_ih_b'].T],
                         axis=1).astype(jnp.bfloat16)                 # (E, 8H)
  zero_h = jnp.zeros((H, 4 * H), jnp.float32)
  w_rec = jnp.concatenate([
      jnp.concatenate([p['w_hh_f'].T, zero_h], axis=1),
      jnp.concatenate([zero_h, p['w_hh_b'].T], axis=1)],
      axis=0).astype(jnp.bfloat16)                                    # (2H, 8H)
  b_gates = jnp.concatenate([p['b_ih_f'] + p['b_hh_f'],
                             p['b_ih_b'] + p['b_hh_b']]).reshape(1, G8)
  w_big = jnp.concatenate([p['doc_rep_w'].T,
                           p['salience_w'][0].T,
                           p['novelty_w'][0]], axis=1)                # (2H, 6H)
  vec2 = jnp.stack([p['doc_rep_b'], p['content_w'][0]], axis=0)       # (2, 2H)
  pos = p['pos_emb'][:T].T                                            # (1, T)
  misc = jnp.concatenate([p['content_b'], p['salience_b'], p['novelty_b'],
                          p['classifier_w'][0], p['classifier_b'],
                          jnp.zeros((3,), jnp.float32)])              # (8,) -> SMEM

  kernel = functools.partial(_summarunner_kernel, hidden_dim=H,
                             split_recurrence=H >= 64)
  out = pl.pallas_call(
      kernel,
      out_shape=jax.ShapeDtypeStruct((Bp, T), jnp.float32),
      grid_spec=pltpu.PrefetchScalarGridSpec(
          num_scalar_prefetch=0,
          grid=(Bp // Bt,),
          in_specs=[
              pl.BlockSpec((Bt, T, E), lambda b: (b, 0, 0)),   # x
              pl.BlockSpec((Bt, 2), lambda b: (b, 0)),         # lengths
              pl.BlockSpec((E, G8), lambda b: (0, 0)),         # w_in
              pl.BlockSpec((D2, G8), lambda b: (0, 0)),        # w_rec
              pl.BlockSpec((1, G8), lambda b: (0, 0)),         # b_gates
              pl.BlockSpec((D2, 3 * D2), lambda b: (0, 0)),    # w_big
              pl.BlockSpec((2, D2), lambda b: (0, 0)),         # vec2
              pl.BlockSpec((1, T), lambda b: (0, 0)),          # pos
              pl.BlockSpec(memory_space=pltpu.MemorySpace.SMEM),  # misc scalars
          ],
          out_specs=pl.BlockSpec((Bt, T), lambda b: (b, 0)),
          scratch_shapes=[
              pltpu.VMEM((Bt, T, G8), jnp.float32),   # g (input projection)
              pltpu.VMEM((Bt, T, D2), jnp.float32),   # sent (BiLSTM outputs)
              pltpu.VMEM((Bt, T, D2), jnp.float32),   # v_nov (sent @ novelty_A)
          ],
      ),
      compiler_params=pltpu.CompilerParams(
          dimension_semantics=("parallel",),
          vmem_limit_bytes=vmem_limit,
      ),
  )(x, lens, w_in, w_rec, b_gates, w_big, vec2, pos, misc)
  return out[:B]


if __name__ == "__main__":
  key = jax.random.PRNGKey(0)
  B, T, E, H = 2, 8, 32, 16     # batch, max_doc_len, embedding_dim, hidden_dim
  k_x, k_p = jax.random.split(key)

  sent_embeddings = jax.random.normal(k_x, (B, T, E), jnp.float32)
  sentence_lengths = jnp.array([T, 5], dtype=jnp.int32)   # lengths used for packing
  doc_length = jnp.array([T, 5], dtype=jnp.int32)         # lengths used for doc mask

  params = make_params(k_p, E, H)

  probs = summarunner_forward(sent_embeddings, sentence_lengths, doc_length,
                              params, H)
  probs = jax.block_until_ready(probs)

  assert probs.shape == (B, T)
  assert bool(jnp.all(jnp.isfinite(probs)))
  assert bool(jnp.all((probs > 0.0) & (probs < 1.0)))
  print("KERNEL_OK")
</pallas_src>

<mosaic_0001>
module attributes {stable_mosaic.version = 11 : i64} {
  func.func @_summarunner_kernel(%arg0: i32, %arg1: memref<8x8x32xbf16, #tpu.memory_space<vmem>>, %arg2: memref<8x2xi32, #tpu.memory_space<vmem>>, %arg3: memref<32x128xbf16, #tpu.memory_space<vmem>>, %arg4: memref<32x128xbf16, #tpu.memory_space<vmem>>, %arg5: memref<1x128xf32, #tpu.memory_space<vmem>>, %arg6: memref<32x96xf32, #tpu.memory_space<vmem>>, %arg7: memref<2x32xf32, #tpu.memory_space<vmem>>, %arg8: memref<1x8xf32, #tpu.memory_space<vmem>>, %arg9: memref<8xf32, #tpu.memory_space<smem>>, %arg10: memref<8x8xf32, #tpu.memory_space<vmem>>, %arg11: memref<8x8x128xf32, #tpu.memory_space<vmem>>, %arg12: memref<8x8x32xf32, #tpu.memory_space<vmem>>, %arg13: memref<8x8x32xf32, #tpu.memory_space<vmem>>) attributes {dimension_semantics = [#tpu.dimension_semantics<parallel>], iteration_bounds = array<i64: 1>, scalar_prefetch = 0 : i64, scratch_operands = 3 : i64, tpu.core_type = #tpu.core_type<tc>, window_params = [{transform_indices = @transform_0, window_bounds = array<i64: 8, 8, 32>}, {transform_indices = @transform_1, window_bounds = array<i64: 8, 2>}, {pipeline_mode = #tpu.pipeline_mode<synchronous>, transform_indices = @transform_2, window_bounds = array<i64: 32, 128>}, {pipeline_mode = #tpu.pipeline_mode<synchronous>, transform_indices = @transform_3, window_bounds = array<i64: 32, 128>}, {pipeline_mode = #tpu.pipeline_mode<synchronous>, transform_indices = @transform_4, window_bounds = array<i64: 1, 128>}, {pipeline_mode = #tpu.pipeline_mode<synchronous>, transform_indices = @transform_5, window_bounds = array<i64: 32, 96>}, {pipeline_mode = #tpu.pipeline_mode<synchronous>, transform_indices = @transform_6, window_bounds = array<i64: 2, 32>}, {pipeline_mode = #tpu.pipeline_mode<synchronous>, transform_indices = @transform_7, window_bounds = array<i64: 1, 8>}, {transform_indices = @transform_8, window_bounds = array<i64: 8>}, {transform_indices = @transform_9, window_bounds = array<i64: 8, 8>}]} {
    %c0 = arith.constant 0 : index
    %c0_0 = arith.constant 0 : index
    %c0_1 = arith.constant 0 : index
    %0 = vector.load %arg1[%c0, %c0_0, %c0_1] : memref<8x8x32xbf16, #tpu.memory_space<vmem>>, vector<8x8x32xbf16>
    %c0_2 = arith.constant 0 : index
    %c0_3 = arith.constant 0 : index
    %1 = vector.load %arg2[%c0_2, %c0_3] : memref<8x2xi32, #tpu.memory_space<vmem>>, vector<8x2xi32>
    %2 = vector.extract_strided_slice %1 {offsets = [0, 0], sizes = [8, 1], strides = [1, 1]} : vector<8x2xi32> to vector<8x1xi32>
    %3 = vector.extract_strided_slice %1 {offsets = [0, 1], sizes = [8, 1], strides = [1, 1]} : vector<8x2xi32> to vector<8x1xi32>
    %c0_4 = arith.constant 0 : index
    %4 = memref.load %arg9[%c0_4] : memref<8xf32, #tpu.memory_space<smem>>
    %c1 = arith.constant 1 : index
    %5 = memref.load %arg9[%c1] : memref<8xf32, #tpu.memory_space<smem>>
    %c2 = arith.constant 2 : index
    %6 = memref.load %arg9[%c2] : memref<8xf32, #tpu.memory_space<smem>>
    %c3 = arith.constant 3 : index
    %7 = memref.load %arg9[%c3] : memref<8xf32, #tpu.memory_space<smem>>
    %c4 = arith.constant 4 : index
    %8 = memref.load %arg9[%c4] : memref<8xf32, #tpu.memory_space<smem>>
    %9 = vector.shape_cast %0 : vector<8x8x32xbf16> to vector<64x32xbf16>
    %c0_5 = arith.constant 0 : index
    %c0_6 = arith.constant 0 : index
    %10 = vector.load %arg3[%c0_5, %c0_6] : memref<32x128xbf16, #tpu.memory_space<vmem>>, vector<32x128xbf16>
    %cst = arith.constant dense<0.000000e+00> : vector<64x128xf32>
    %11 = tpu.matmul %9, %10, %cst {dimension_numbers = #tpu.dot_dimension_numbers<[1], [0], [0], [1], [0, 0, 1, 1], [], []>} : vector<64x32xbf16>, vector<32x128xbf16>, vector<64x128xf32> -> vector<64x128xf32>
    %c0_7 = arith.constant 0 : index
    %c0_8 = arith.constant 0 : index
    %12 = vector.load %arg5[%c0_7, %c0_8] : memref<1x128xf32, #tpu.memory_space<vmem>>, vector<1x128xf32>
    %13 = vector.broadcast %12 : vector<1x128xf32> to vector<64x128xf32>
    %14 = arith.addf %11, %13 : vector<64x128xf32>
    %15 = vector.shape_cast %14 : vector<64x128xf32> to vector<8x8x128xf32>
    %c0_9 = arith.constant 0 : index
    %c0_10 = arith.constant 0 : index
    %c0_11 = arith.constant 0 : index
    %16 = vector.load %arg11[%c0_9, %c0_10, %c0_11] : memref<8x8x128xf32, #tpu.memory_space<vmem>>, vector<8x8x128xf32>
    tpu.vector_store %arg11[%c0_9, %c0_10, %c0_11], %15 {strides = array<i32>} : memref<8x8x128xf32, #tpu.memory_space<vmem>>, vector<8x8x128xf32>,
    %17 = tpu.iota {dimensions = array<i32: 1>} : vector<8x8xi32>
    %18 = vector.broadcast %2 : vector<8x1xi32> to vector<8x8xi32>
    %19 = arith.cmpi slt, %17, %18 : vector<8x8xi32>
    %20 = arith.extui %19 : vector<8x8xi1> to vector<8x8xi32>
    %21 = arith.sitofp %20 : vector<8x8xi32> to vector<8x8xf32>
    %cst_12 = arith.constant 1.000000e+00 : f32
    %22 = vector.broadcast %cst_12 : f32 to vector<8x8xf32>
    %23 = arith.subf %22, %21 : vector<8x8xf32>
    %24 = vector.broadcast %3 : vector<8x1xi32> to vector<8x8xi32>
    %25 = arith.cmpi slt, %17, %24 : vector<8x8xi32>
    %26 = arith.extui %25 : vector<8x8xi1> to vector<8x8xi32>
    %27 = arith.sitofp %26 : vector<8x8xi32> to vector<8x8xf32>
    %c0_13 = arith.constant 0 : index
    %c0_14 = arith.constant 0 : index
    %28 = vector.load %arg4[%c0_13, %c0_14] : memref<32x128xbf16, #tpu.memory_space<vmem>>, vector<32x128xbf16>
    %cst_15 = arith.constant 0.000000e+00 : f32
    %29 = vector.broadcast %cst_15 : f32 to vector<8x16xf32>
    %cst_16 = arith.constant 0.000000e+00 : f32
    %30 = vector.broadcast %cst_16 : f32 to vector<8x16xf32>
    %cst_17 = arith.constant 0.000000e+00 : f32
    %31 = vector.broadcast %cst_17 : f32 to vector<8x16xf32>
    %cst_18 = arith.constant 0.000000e+00 : f32
    %32 = vector.broadcast %cst_18 : f32 to vector<8x16xf32>
    %33 = tpu.concatenate %29, %31 in 1 : vector<8x16xf32>, vector<8x16xf32> -> vector<8x32xf32>
    %34 = arith.truncf %33 : vector<8x32xf32> to vector<8x32xbf16>
    %cst_19 = arith.constant dense<0.000000e+00> : vector<8x128xf32>
    %35 = tpu.matmul %34, %28, %cst_19 {dimension_numbers = #tpu.dot_dimension_numbers<[1], [0], [0], [1], [0, 0, 1, 1], [], []>} : vector<8x32xbf16>, vector<32x128xbf16>, vector<8x128xf32> -> vector<8x128xf32>
    %36 = vector.extract_strided_slice %35 {offsets = [0, 0], sizes = [8, 64], strides = [1, 1]} : vector<8x128xf32> to vector<8x64xf32>
    %37 = vector.extract_strided_slice %35 {offsets = [0, 64], sizes = [8, 64], strides = [1, 1]} : vector<8x128xf32> to vector<8x64xf32>
    %c0_20 = arith.constant 0 : index
    %c0_21 = arith.constant 0 : index
    %c0_22 = arith.constant 0 : index
    %38 = vector.load %arg11[%c0_20, %c0_21, %c0_22] : memref<8x8x128xf32, #tpu.memory_space<vmem>>, vector<8x1x64xf32>
    %39 = vector.shape_cast %38 : vector<8x1x64xf32> to vector<8x64xf32>
    %40 = arith.addf %36, %39 : vector<8x64xf32>
    %41 = vector.extract_strided_slice %40 {offsets = [0, 0], sizes = [8, 16], strides = [1, 1]} : vector<8x64xf32> to vector<8x16xf32>
    %42 = arith.negf %41 : vector<8x16xf32>
    %43 = math.exp %42 : vector<8x16xf32>
    %cst_23 = arith.constant 1.000000e+00 : f32
    %44 = vector.broadcast %cst_23 : f32 to vector<8x16xf32>
    %45 = arith.addf %44, %43 : vector<8x16xf32>
    %46 = arith.divf %44, %45 : vector<8x16xf32>
    %47 = vector.extract_strided_slice %40 {offsets = [0, 16], sizes = [8, 16], strides = [1, 1]} : vector<8x64xf32> to vector<8x16xf32>
    %48 = arith.negf %47 : vector<8x16xf32>
    %49 = math.exp %48 : vector<8x16xf32>
    %cst_24 = arith.constant 1.000000e+00 : f32
    %50 = vector.broadcast %cst_24 : f32 to vector<8x16xf32>
    %51 = arith.addf %50, %49 : vector<8x16xf32>
    %52 = arith.divf %50, %51 : vector<8x16xf32>
    %53 = vector.extract_strided_slice %40 {offsets = [0, 32], sizes = [8, 16], strides = [1, 1]} : vector<8x64xf32> to vector<8x16xf32>
    %54 = math.tanh %53 : vector<8x16xf32>
    %55 = vector.extract_strided_slice %40 {offsets = [0, 48], sizes = [8, 16], strides = [1, 1]} : vector<8x64xf32> to vector<8x16xf32>
    %56 = arith.negf %55 : vector<8x16xf32>
    %57 = math.exp %56 : vector<8x16xf32>
    %cst_25 = arith.constant 1.000000e+00 : f32
    %58 = vector.broadcast %cst_25 : f32 to vector<8x16xf32>
    %59 = arith.addf %58, %57 : vector<8x16xf32>
    %60 = arith.divf %58, %59 : vector<8x16xf32>
    %61 = arith.mulf %52, %30 : vector<8x16xf32>
    %62 = arith.mulf %46, %54 : vector<8x16xf32>
    %63 = arith.addf %61, %62 : vector<8x16xf32>
    %64 = math.tanh %63 : vector<8x16xf32>
    %65 = arith.mulf %60, %64 : vector<8x16xf32>
    %c0_26 = arith.constant 0 : index
    %c7 = arith.constant 7 : index
    %c64 = arith.constant 64 : index
    %66 = vector.load %arg11[%c0_26, %c7, %c64] : memref<8x8x128xf32, #tpu.memory_space<vmem>>, vector<8x1x64xf32>
    %67 = vector.shape_cast %66 : vector<8x1x64xf32> to vector<8x64xf32>
    %68 = arith.addf %37, %67 : vector<8x64xf32>
    %69 = vector.extract_strided_slice %68 {offsets = [0, 0], sizes = [8, 16], strides = [1, 1]} : vector<8x64xf32> to vector<8x16xf32>
    %70 = arith.negf %69 : vector<8x16xf32>
    %71 = math.exp %70 : vector<8x16xf32>
    %cst_27 = arith.constant 1.000000e+00 : f32
    %72 = vector.broadcast %cst_27 : f32 to vector<8x16xf32>
    %73 = arith.addf %72, %71 : vector<8x16xf32>
    %74 = arith.divf %72, %73 : vector<8x16xf32>
    %75 = vector.extract_strided_slice %68 {offsets = [0, 16], sizes = [8, 16], strides = [1, 1]} : vector<8x64xf32> to vector<8x16xf32>
    %76 = arith.negf %75 : vector<8x16xf32>
    %77 = math.exp %76 : vector<8x16xf32>
    %cst_28 = arith.constant 1.000000e+00 : f32
    %78 = vector.broadcast %cst_28 : f32 to vector<8x16xf32>
    %79 = arith.addf %78, %77 : vector<8x16xf32>
    %80 = arith.divf %78, %79 : vector<8x16xf32>
    %81 = vector.extract_strided_slice %68 {offsets = [0, 32], sizes = [8, 16], strides = [1, 1]} : vector<8x64xf32> to vector<8x16xf32>
    %82 = math.tanh %81 : vector<8x16xf32>
    %83 = vector.extract_strided_slice %68 {offsets = [0, 48], sizes = [8, 16], strides = [1, 1]} : vector<8x64xf32> to vector<8x16xf32>
    %84 = arith.negf %83 : vector<8x16xf32>
    %85 = math.exp %84 : vector<8x16xf32>
    %cst_29 = arith.constant 1.000000e+00 : f32
    %86 = vector.broadcast %cst_29 : f32 to vector<8x16xf32>
    %87 = arith.addf %86, %85 : vector<8x16xf32>
    %88 = arith.divf %86, %87 : vector<8x16xf32>
    %89 = arith.mulf %80, %32 : vector<8x16xf32>
    %90 = arith.mulf %74, %82 : vector<8x16xf32>
    %91 = arith.addf %89, %90 : vector<8x16xf32>
    %92 = math.tanh %91 : vector<8x16xf32>
    %93 = arith.mulf %88, %92 : vector<8x16xf32>
    %94 = vector.extract_strided_slice %21 {offsets = [0, 7], sizes = [8, 1], strides = [1, 1]} : vector<8x8xf32> to vector<8x1xf32>
    %95 = vector.extract_strided_slice %23 {offsets = [0, 7], sizes = [8, 1], strides = [1, 1]} : vector<8x8xf32> to vector<8x1xf32>
    %96 = vector.broadcast %94 : vector<8x1xf32> to vector<8x16xf32>
    %97 = arith.mulf %96, %93 : vector<8x16xf32>
    %98 = vector.broadcast %95 : vector<8x1xf32> to vector<8x16xf32>
    %99 = arith.mulf %98, %31 : vector<8x16xf32>
    %100 = arith.addf %97, %99 : vector<8x16xf32>
    %101 = vector.broadcast %94 : vector<8x1xf32> to vector<8x16xf32>
    %102 = arith.mulf %101, %91 : vector<8x16xf32>
    %103 = vector.broadcast %95 : vector<8x1xf32> to vector<8x16xf32>
    %104 = arith.mulf %103, %32 : vector<8x16xf32>
    %105 = arith.addf %102, %104 : vector<8x16xf32>
    %106 = tpu.concatenate %65, %100 in 1 : vector<8x16xf32>, vector<8x16xf32> -> vector<8x32xf32>
    %107 = arith.truncf %106 : vector<8x32xf32> to vector<8x32xbf16>
    %cst_30 = arith.constant dense<0.000000e+00> : vector<8x128xf32>
    %108 = tpu.matmul %107, %28, %cst_30 {dimension_numbers = #tpu.dot_dimension_numbers<[1], [0], [0], [1], [0, 0, 1, 1], [], []>} : vector<8x32xbf16>, vector<32x128xbf16>, vector<8x128xf32> -> vector<8x128xf32>
    %109 = vector.extract_strided_slice %108 {offsets = [0, 0], sizes = [8, 64], strides = [1, 1]} : vector<8x128xf32> to vector<8x64xf32>
    %110 = vector.extract_strided_slice %108 {offsets = [0, 64], sizes = [8, 64], strides = [1, 1]} : vector<8x128xf32> to vector<8x64xf32>
    %c0_31 = arith.constant 0 : index
    %c1_32 = arith.constant 1 : index
    %c0_33 = arith.constant 0 : index
    %111 = vector.load %arg11[%c0_31, %c1_32, %c0_33] : memref<8x8x128xf32, #tpu.memory_space<vmem>>, vector<8x1x64xf32>
    %112 = vector.shape_cast %111 : vector<8x1x64xf32> to vector<8x64xf32>
    %113 = arith.addf %109, %112 : vector<8x64xf32>
    %114 = vector.extract_strided_slice %113 {offsets = [0, 0], sizes = [8, 16], strides = [1, 1]} : vector<8x64xf32> to vector<8x16xf32>
    %115 = arith.negf %114 : vector<8x16xf32>
    %116 = math.exp %115 : vector<8x16xf32>
    %cst_34 = arith.constant 1.000000e+00 : f32
    %117 = vector.broadcast %cst_34 : f32 to vector<8x16xf32>
    %118 = arith.addf %117, %116 : vector<8x16xf32>
    %119 = arith.divf %117, %118 : vector<8x16xf32>
    %120 = vector.extract_strided_slice %113 {offsets = [0, 16], sizes = [8, 16], strides = [1, 1]} : vector<8x64xf32> to vector<8x16xf32>
    %121 = arith.negf %120 : vector<8x16xf32>
    %122 = math.exp %121 : vector<8x16xf32>
    %cst_35 = arith.constant 1.000000e+00 : f32
    %123 = vector.broadcast %cst_35 : f32 to vector<8x16xf32>
    %124 = arith.addf %123, %122 : vector<8x16xf32>
    %125 = arith.divf %123, %124 : vector<8x16xf32>
    %126 = vector.extract_strided_slice %113 {offsets = [0, 32], sizes = [8, 16], strides = [1, 1]} : vector<8x64xf32> to vector<8x16xf32>
    %127 = math.tanh %126 : vector<8x16xf32>
    %128 = vector.extract_strided_slice %113 {offsets = [0, 48], sizes = [8, 16], strides = [1, 1]} : vector<8x64xf32> to vector<8x16xf32>
    %129 = arith.negf %128 : vector<8x16xf32>
    %130 = math.exp %129 : vector<8x16xf32>
    %cst_36 = arith.constant 1.000000e+00 : f32
    %131 = vector.broadcast %cst_36 : f32 to vector<8x16xf32>
    %132 = arith.addf %131, %130 : vector<8x16xf32>
    %133 = arith.divf %131, %132 : vector<8x16xf32>
    %134 = arith.mulf %125, %63 : vector<8x16xf32>
    %135 = arith.mulf %119, %127 : vector<8x16xf32>
    %136 = arith.addf %134, %135 : vector<8x16xf32>
    %137 = math.tanh %136 : vector<8x16xf32>
    %138 = arith.mulf %133, %137 : vector<8x16xf32>
    %c0_37 = arith.constant 0 : index
    %c6 = arith.constant 6 : index
    %c64_38 = arith.constant 64 : index
    %139 = vector.load %arg11[%c0_37, %c6, %c64_38] : memref<8x8x128xf32, #tpu.memory_space<vmem>>, vector<8x1x64xf32>
    %140 = vector.shape_cast %139 : vector<8x1x64xf32> to vector<8x64xf32>
    %141 = arith.addf %110, %140 : vector<8x64xf32>
    %142 = vector.extract_strided_slice %141 {offsets = [0, 0], sizes = [8, 16], strides = [1, 1]} : vector<8x64xf32> to vector<8x16xf32>
    %143 = arith.negf %142 : vector<8x16xf32>
    %144 = math.exp %143 : vector<8x16xf32>
    %cst_39 = arith.constant 1.000000e+00 : f32
    %145 = vector.broadcast %cst_39 : f32 to vector<8x16xf32>
    %146 = arith.addf %145, %144 : vector<8x16xf32>
    %147 = arith.divf %145, %146 : vector<8x16xf32>
    %148 = vector.extract_strided_slice %141 {offsets = [0, 16], sizes = [8, 16], strides = [1, 1]} : vector<8x64xf32> to vector<8x16xf32>
    %149 = arith.negf %148 : vector<8x16xf32>
    %150 = math.exp %149 : vector<8x16xf32>
    %cst_40 = arith.constant 1.000000e+00 : f32
    %151 = vector.broadcast %cst_40 : f32 to vector<8x16xf32>
    %152 = arith.addf %151, %150 : vector<8x16xf32>
    %153 = arith.divf %151, %152 : vector<8x16xf32>
    %154 = vector.extract_strided_slice %141 {offsets = [0, 32], sizes = [8, 16], strides = [1, 1]} : vector<8x64xf32> to vector<8x16xf32>
    %155 = math.tanh %154 : vector<8x16xf32>
    %156 = vector.extract_strided_slice %141 {offsets = [0, 48], sizes = [8, 16], strides = [1, 1]} : vector<8x64xf32> to vector<8x16xf32>
    %157 = arith.negf %156 : vector<8x16xf32>
    %158 = math.exp %157 : vector<8x16xf32>
    %cst_41 = arith.constant 1.000000e+00 : f32
    %159 = vector.broadcast %cst_41 : f32 to vector<8x16xf32>
    %160 = arith.addf %159, %158 : vector<8x16xf32>
    %161 = arith.divf %159, %160 : vector<8x16xf32>
    %162 = arith.mulf %153, %105 : vector<8x16xf32>
    %163 = arith.mulf %147, %155 : vector<8x16xf32>
    %164 = arith.addf %162, %163 : vector<8x16xf32>
    %165 = math.tanh %164 : vector<8x16xf32>
    %166 = arith.mulf %161, %165 : vector<8x16xf32>
    %167 = vector.extract_strided_slice %21 {offsets = [0, 6], sizes = [8, 1], strides = [1, 1]} : vector<8x8xf32> to vector<8x1xf32>
    %168 = vector.extract_strided_slice %23 {offsets = [0, 6], sizes = [8, 1], strides = [1, 1]} : vector<8x8xf32> to vector<8x1xf32>
    %169 = vector.broadcast %167 : vector<8x1xf32> to vector<8x16xf32>
    %170 = arith.mulf %169, %166 : vector<8x16xf32>
    %171 = vector.broadcast %168 : vector<8x1xf32> to vector<8x16xf32>
    %172 = arith.mulf %171, %100 : vector<8x16xf32>
    %173 = arith.addf %170, %172 : vector<8x16xf32>
    %174 = vector.broadcast %167 : vector<8x1xf32> to vector<8x16xf32>
    %175 = arith.mulf %174, %164 : vector<8x16xf32>
    %176 = vector.broadcast %168 : vector<8x1xf32> to vector<8x16xf32>
    %177 = arith.mulf %176, %105 : vector<8x16xf32>
    %178 = arith.addf %175, %177 : vector<8x16xf32>
    %179 = tpu.concatenate %138, %173 in 1 : vector<8x16xf32>, vector<8x16xf32> -> vector<8x32xf32>
    %180 = arith.truncf %179 : vector<8x32xf32> to vector<8x32xbf16>
    %cst_42 = arith.constant dense<0.000000e+00> : vector<8x128xf32>
    %181 = tpu.matmul %180, %28, %cst_42 {dimension_numbers = #tpu.dot_dimension_numbers<[1], [0], [0], [1], [0, 0, 1, 1], [], []>} : vector<8x32xbf16>, vector<32x128xbf16>, vector<8x128xf32> -> vector<8x128xf32>
    %182 = vector.extract_strided_slice %181 {offsets = [0, 0], sizes = [8, 64], strides = [1, 1]} : vector<8x128xf32> to vector<8x64xf32>
    %183 = vector.extract_strided_slice %181 {offsets = [0, 64], sizes = [8, 64], strides = [1, 1]} : vector<8x128xf32> to vector<8x64xf32>
    %c0_43 = arith.constant 0 : index
    %c2_44 = arith.constant 2 : index
    %c0_45 = arith.constant 0 : index
    %184 = vector.load %arg11[%c0_43, %c2_44, %c0_45] : memref<8x8x128xf32, #tpu.memory_space<vmem>>, vector<8x1x64xf32>
    %185 = vector.shape_cast %184 : vector<8x1x64xf32> to vector<8x64xf32>
    %186 = arith.addf %182, %185 : vector<8x64xf32>
    %187 = vector.extract_strided_slice %186 {offsets = [0, 0], sizes = [8, 16], strides = [1, 1]} : vector<8x64xf32> to vector<8x16xf32>
    %188 = arith.negf %187 : vector<8x16xf32>
    %189 = math.exp %188 : vector<8x16xf32>
    %cst_46 = arith.constant 1.000000e+00 : f32
    %190 = vector.broadcast %cst_46 : f32 to vector<8x16xf32>
    %191 = arith.addf %190, %189 : vector<8x16xf32>
    %192 = arith.divf %190, %191 : vector<8x16xf32>
    %193 = vector.extract_strided_slice %186 {offsets = [0, 16], sizes = [8, 16], strides = [1, 1]} : vector<8x64xf32> to vector<8x16xf32>
    %194 = arith.negf %193 : vector<8x16xf32>
    %195 = math.exp %194 : vector<8x16xf32>
    %cst_47 = arith.constant 1.000000e+00 : f32
    %196 = vector.broadcast %cst_47 : f32 to vector<8x16xf32>
    %197 = arith.addf %196, %195 : vector<8x16xf32>
    %198 = arith.divf %196, %197 : vector<8x16xf32>
    %199 = vector.extract_strided_slice %186 {offsets = [0, 32], sizes = [8, 16], strides = [1, 1]} : vector<8x64xf32> to vector<8x16xf32>
    %200 = math.tanh %199 : vector<8x16xf32>
    %201 = vector.extract_strided_slice %186 {offsets = [0, 48], sizes = [8, 16], strides = [1, 1]} : vector<8x64xf32> to vector<8x16xf32>
    %202 = arith.negf %201 : vector<8x16xf32>
    %203 = math.exp %202 : vector<8x16xf32>
    %cst_48 = arith.constant 1.000000e+00 : f32
    %204 = vector.broadcast %cst_48 : f32 to vector<8x16xf32>
    %205 = arith.addf %204, %203 : vector<8x16xf32>
    %206 = arith.divf %204, %205 : vector<8x16xf32>
    %207 = arith.mulf %198, %136 : vector<8x16xf32>
    %208 = arith.mulf %192, %200 : vector<8x16xf32>
    %209 = arith.addf %207, %208 : vector<8x16xf32>
    %210 = math.tanh %209 : vector<8x16xf32>
    %211 = arith.mulf %206, %210 : vector<8x16xf32>
    %c0_49 = arith.constant 0 : index
    %c5 = arith.constant 5 : index
    %c64_50 = arith.constant 64 : index
    %212 = vector.load %arg11[%c0_49, %c5, %c64_50] : memref<8x8x128xf32, #tpu.memory_space<vmem>>, vector<8x1x64xf32>
    %213 = vector.shape_cast %212 : vector<8x1x64xf32> to vector<8x64xf32>
    %214 = arith.addf %183, %213 : vector<8x64xf32>
    %215 = vector.extract_strided_slice %214 {offsets = [0, 0], sizes = [8, 16], strides = [1, 1]} : vector<8x64xf32> to vector<8x16xf32>
    %216 = arith.negf %215 : vector<8x16xf32>
    %217 = math.exp %216 : vector<8x16xf32>
    %cst_51 = arith.constant 1.000000e+00 : f32
    %218 = vector.broadcast %cst_51 : f32 to vector<8x16xf32>
    %219 = arith.addf %218, %217 : vector<8x16xf32>
    %220 = arith.divf %218, %219 : vector<8x16xf32>
    %221 = vector.extract_strided_slice %214 {offsets = [0, 16], sizes = [8, 16], strides = [1, 1]} : vector<8x64xf32> to vector<8x16xf32>
    %222 = arith.negf %221 : vector<8x16xf32>
    %223 = math.exp %222 : vector<8x16xf32>
    %cst_52 = arith.constant 1.000000e+00 : f32
    %224 = vector.broadcast %cst_52 : f32 to vector<8x16xf32>
    %225 = arith.addf %224, %223 : vector<8x16xf32>
    %226 = arith.divf %224, %225 : vector<8x16xf32>
    %227 = vector.extract_strided_slice %214 {offsets = [0, 32], sizes = [8, 16], strides = [1, 1]} : vector<8x64xf32> to vector<8x16xf32>
    %228 = math.tanh %227 : vector<8x16xf32>
    %229 = vector.extract_strided_slice %214 {offsets = [0, 48], sizes = [8, 16], strides = [1, 1]} : vector<8x64xf32> to vector<8x16xf32>
    %230 = arith.negf %229 : vector<8x16xf32>
    %231 = math.exp %230 : vector<8x16xf32>
    %cst_53 = arith.constant 1.000000e+00 : f32
    %232 = vector.broadcast %cst_53 : f32 to vector<8x16xf32>
    %233 = arith.addf %232, %231 : vector<8x16xf32>
    %234 = arith.divf %232, %233 : vector<8x16xf32>
    %235 = arith.mulf %226, %178 : vector<8x16xf32>
    %236 = arith.mulf %220, %228 : vector<8x16xf32>
    %237 = arith.addf %235, %236 : vector<8x16xf32>
    %238 = math.tanh %237 : vector<8x16xf32>
    %239 = arith.mulf %234, %238 : vector<8x16xf32>
    %240 = vector.extract_strided_slice %21 {offsets = [0, 5], sizes = [8, 1], strides = [1, 1]} : vector<8x8xf32> to vector<8x1xf32>
    %241 = vector.extract_strided_slice %23 {offsets = [0, 5], sizes = [8, 1], strides = [1, 1]} : vector<8x8xf32> to vector<8x1xf32>
    %242 = vector.broadcast %240 : vector<8x1xf32> to vector<8x16xf32>
    %243 = arith.mulf %242, %239 : vector<8x16xf32>
    %244 = vector.broadcast %241 : vector<8x1xf32> to vector<8x16xf32>
    %245 = arith.mulf %244, %173 : vector<8x16xf32>
    %246 = arith.addf %243, %245 : vector<8x16xf32>
    %247 = vector.broadcast %240 : vector<8x1xf32> to vector<8x16xf32>
    %248 = arith.mulf %247, %237 : vector<8x16xf32>
    %249 = vector.broadcast %241 : vector<8x1xf32> to vector<8x16xf32>
    %250 = arith.mulf %249, %178 : vector<8x16xf32>
    %251 = arith.addf %248, %250 : vector<8x16xf32>
    %252 = tpu.concatenate %211, %246 in 1 : vector<8x16xf32>, vector<8x16xf32> -> vector<8x32xf32>
    %253 = arith.truncf %252 : vector<8x32xf32> to vector<8x32xbf16>
    %cst_54 = arith.constant dense<0.000000e+00> : vector<8x128xf32>
    %254 = tpu.matmul %253, %28, %cst_54 {dimension_numbers = #tpu.dot_dimension_numbers<[1], [0], [0], [1], [0, 0, 1, 1], [], []>} : vector<8x32xbf16>, vector<32x128xbf16>, vector<8x128xf32> -> vector<8x128xf32>
    %255 = vector.extract_strided_slice %254 {offsets = [0, 0], sizes = [8, 64], strides = [1, 1]} : vector<8x128xf32> to vector<8x64xf32>
    %256 = vector.extract_strided_slice %254 {offsets = [0, 64], sizes = [8, 64], strides = [1, 1]} : vector<8x128xf32> to vector<8x64xf32>
    %c0_55 = arith.constant 0 : index
    %c3_56 = arith.constant 3 : index
    %c0_57 = arith.constant 0 : index
    %257 = vector.load %arg11[%c0_55, %c3_56, %c0_57] : memref<8x8x128xf32, #tpu.memory_space<vmem>>, vector<8x1x64xf32>
    %258 = vector.shape_cast %257 : vector<8x1x64xf32> to vector<8x64xf32>
    %259 = arith.addf %255, %258 : vector<8x64xf32>
    %260 = vector.extract_strided_slice %259 {offsets = [0, 0], sizes = [8, 16], strides = [1, 1]} : vector<8x64xf32> to vector<8x16xf32>
    %261 = arith.negf %260 : vector<8x16xf32>
    %262 = math.exp %261 : vector<8x16xf32>
    %cst_58 = arith.constant 1.000000e+00 : f32
    %263 = vector.broadcast %cst_58 : f32 to vector<8x16xf32>
    %264 = arith.addf %263, %262 : vector<8x16xf32>
    %265 = arith.divf %263, %264 : vector<8x16xf32>
    %266 = vector.extract_strided_slice %259 {offsets = [0, 16], sizes = [8, 16], strides = [1, 1]} : vector<8x64xf32> to vector<8x16xf32>
    %267 = arith.negf %266 : vector<8x16xf32>
    %268 = math.exp %267 : vector<8x16xf32>
    %cst_59 = arith.constant 1.000000e+00 : f32
    %269 = vector.broadcast %cst_59 : f32 to vector<8x16xf32>
    %270 = arith.addf %269, %268 : vector<8x16xf32>
    %271 = arith.divf %269, %270 : vector<8x16xf32>
    %272 = vector.extract_strided_slice %259 {offsets = [0, 32], sizes = [8, 16], strides = [1, 1]} : vector<8x64xf32> to vector<8x16xf32>
    %273 = math.tanh %272 : vector<8x16xf32>
    %274 = vector.extract_strided_slice %259 {offsets = [0, 48], sizes = [8, 16], strides = [1, 1]} : vector<8x64xf32> to vector<8x16xf32>
    %275 = arith.negf %274 : vector<8x16xf32>
    %276 = math.exp %275 : vector<8x16xf32>
    %cst_60 = arith.constant 1.000000e+00 : f32
    %277 = vector.broadcast %cst_60 : f32 to vector<8x16xf32>
    %278 = arith.addf %277, %276 : vector<8x16xf32>
    %279 = arith.divf %277, %278 : vector<8x16xf32>
    %280 = arith.mulf %271, %209 : vector<8x16xf32>
    %281 = arith.mulf %265, %273 : vector<8x16xf32>
    %282 = arith.addf %280, %281 : vector<8x16xf32>
    %283 = math.tanh %282 : vector<8x16xf32>
    %284 = arith.mulf %279, %283 : vector<8x16xf32>
    %c0_61 = arith.constant 0 : index
    %c4_62 = arith.constant 4 : index
    %c64_63 = arith.constant 64 : index
    %285 = vector.load %arg11[%c0_61, %c4_62, %c64_63] : memref<8x8x128xf32, #tpu.memory_space<vmem>>, vector<8x1x64xf32>
    %286 = vector.shape_cast %285 : vector<8x1x64xf32> to vector<8x64xf32>
    %287 = arith.addf %256, %286 : vector<8x64xf32>
    %288 = vector.extract_strided_slice %287 {offsets = [0, 0], sizes = [8, 16], strides = [1, 1]} : vector<8x64xf32> to vector<8x16xf32>
    %289 = arith.negf %288 : vector<8x16xf32>
    %290 = math.exp %289 : vector<8x16xf32>
    %cst_64 = arith.constant 1.000000e+00 : f32
    %291 = vector.broadcast %cst_64 : f32 to vector<8x16xf32>
    %292 = arith.addf %291, %290 : vector<8x16xf32>
    %293 = arith.divf %291, %292 : vector<8x16xf32>
    %294 = vector.extract_strided_slice %287 {offsets = [0, 16], sizes = [8, 16], strides = [1, 1]} : vector<8x64xf32> to vector<8x16xf32>
    %295 = arith.negf %294 : vector<8x16xf32>
    %296 = math.exp %295 : vector<8x16xf32>
    %cst_65 = arith.constant 1.000000e+00 : f32
    %297 = vector.broadcast %cst_65 : f32 to vector<8x16xf32>
    %298 = arith.addf %297, %296 : vector<8x16xf32>
    %299 = arith.divf %297, %298 : vector<8x16xf32>
    %300 = vector.extract_strided_slice %287 {offsets = [0, 32], sizes = [8, 16], strides = [1, 1]} : vector<8x64xf32> to vector<8x16xf32>
    %301 = math.tanh %300 : vector<8x16xf32>
    %302 = vector.extract_strided_slice %287 {offsets = [0, 48], sizes = [8, 16], strides = [1, 1]} : vector<8x64xf32> to vector<8x16xf32>
    %303 = arith.negf %302 : vector<8x16xf32>
    %304 = math.exp %303 : vector<8x16xf32>
    %cst_66 = arith.constant 1.000000e+00 : f32
    %305 = vector.broadcast %cst_66 : f32 to vector<8x16xf32>
    %306 = arith.addf %305, %304 : vector<8x16xf32>
    %307 = arith.divf %305, %306 : vector<8x16xf32>
    %308 = arith.mulf %299, %251 : vector<8x16xf32>
    %309 = arith.mulf %293, %301 : vector<8x16xf32>
    %310 = arith.addf %308, %309 : vector<8x16xf32>
    %311 = math.tanh %310 : vector<8x16xf32>
    %312 = arith.mulf %307, %311 : vector<8x16xf32>
    %313 = vector.extract_strided_slice %21 {offsets = [0, 4], sizes = [8, 1], strides = [1, 1]} : vector<8x8xf32> to vector<8x1xf32>
    %314 = vector.extract_strided_slice %23 {offsets = [0, 4], sizes = [8, 1], strides = [1, 1]} : vector<8x8xf32> to vector<8x1xf32>
    %315 = vector.broadcast %313 : vector<8x1xf32> to vector<8x16xf32>
    %316 = arith.mulf %315, %312 : vector<8x16xf32>
    %317 = vector.broadcast %314 : vector<8x1xf32> to vector<8x16xf32>
    %318 = arith.mulf %317, %246 : vector<8x16xf32>
    %319 = arith.addf %316, %318 : vector<8x16xf32>
    %320 = vector.broadcast %313 : vector<8x1xf32> to vector<8x16xf32>
    %321 = arith.mulf %320, %310 : vector<8x16xf32>
    %322 = vector.broadcast %314 : vector<8x1xf32> to vector<8x16xf32>
    %323 = arith.mulf %322, %251 : vector<8x16xf32>
    %324 = arith.addf %321, %323 : vector<8x16xf32>
    %325 = tpu.concatenate %284, %319 in 1 : vector<8x16xf32>, vector<8x16xf32> -> vector<8x32xf32>
    %326 = arith.truncf %325 : vector<8x32xf32> to vector<8x32xbf16>
    %cst_67 = arith.constant dense<0.000000e+00> : vector<8x128xf32>
    %327 = tpu.matmul %326, %28, %cst_67 {dimension_numbers = #tpu.dot_dimension_numbers<[1], [0], [0], [1], [0, 0, 1, 1], [], []>} : vector<8x32xbf16>, vector<32x128xbf16>, vector<8x128xf32> -> vector<8x128xf32>
    %328 = vector.extract_strided_slice %327 {offsets = [0, 0], sizes = [8, 64], strides = [1, 1]} : vector<8x128xf32> to vector<8x64xf32>
    %329 = vector.extract_strided_slice %327 {offsets = [0, 64], sizes = [8, 64], strides = [1, 1]} : vector<8x128xf32> to vector<8x64xf32>
    %c0_68 = arith.constant 0 : index
    %c4_69 = arith.constant 4 : index
    %c0_70 = arith.constant 0 : index
    %330 = vector.load %arg11[%c0_68, %c4_69, %c0_70] : memref<8x8x128xf32, #tpu.memory_space<vmem>>, vector<8x1x64xf32>
    %331 = vector.shape_cast %330 : vector<8x1x64xf32> to vector<8x64xf32>
    %332 = arith.addf %328, %331 : vector<8x64xf32>
    %333 = vector.extract_strided_slice %332 {offsets = [0, 0], sizes = [8, 16], strides = [1, 1]} : vector<8x64xf32> to vector<8x16xf32>
    %334 = arith.negf %333 : vector<8x16xf32>
    %335 = math.exp %334 : vector<8x16xf32>
    %cst_71 = arith.constant 1.000000e+00 : f32
    %336 = vector.broadcast %cst_71 : f32 to vector<8x16xf32>
    %337 = arith.addf %336, %335 : vector<8x16xf32>
    %338 = arith.divf %336, %337 : vector<8x16xf32>
    %339 = vector.extract_strided_slice %332 {offsets = [0, 16], sizes = [8, 16], strides = [1, 1]} : vector<8x64xf32> to vector<8x16xf32>
    %340 = arith.negf %339 : vector<8x16xf32>
    %341 = math.exp %340 : vector<8x16xf32>
    %cst_72 = arith.constant 1.000000e+00 : f32
    %342 = vector.broadcast %cst_72 : f32 to vector<8x16xf32>
    %343 = arith.addf %342, %341 : vector<8x16xf32>
    %344 = arith.divf %342, %343 : vector<8x16xf32>
    %345 = vector.extract_strided_slice %332 {offsets = [0, 32], sizes = [8, 16], strides = [1, 1]} : vector<8x64xf32> to vector<8x16xf32>
    %346 = math.tanh %345 : vector<8x16xf32>
    %347 = vector.extract_strided_slice %332 {offsets = [0, 48], sizes = [8, 16], strides = [1, 1]} : vector<8x64xf32> to vector<8x16xf32>
    %348 = arith.negf %347 : vector<8x16xf32>
    %349 = math.exp %348 : vector<8x16xf32>
    %cst_73 = arith.constant 1.000000e+00 : f32
    %350 = vector.broadcast %cst_73 : f32 to vector<8x16xf32>
    %351 = arith.addf %350, %349 : vector<8x16xf32>
    %352 = arith.divf %350, %351 : vector<8x16xf32>
    %353 = arith.mulf %344, %282 : vector<8x16xf32>
    %354 = arith.mulf %338, %346 : vector<8x16xf32>
    %355 = arith.addf %353, %354 : vector<8x16xf32>
    %356 = math.tanh %355 : vector<8x16xf32>
    %357 = arith.mulf %352, %356 : vector<8x16xf32>
    %c0_74 = arith.constant 0 : index
    %c3_75 = arith.constant 3 : index
    %c64_76 = arith.constant 64 : index
    %358 = vector.load %arg11[%c0_74, %c3_75, %c64_76] : memref<8x8x128xf32, #tpu.memory_space<vmem>>, vector<8x1x64xf32>
    %359 = vector.shape_cast %358 : vector<8x1x64xf32> to vector<8x64xf32>
    %360 = arith.addf %329, %359 : vector<8x64xf32>
    %361 = vector.extract_strided_slice %360 {offsets = [0, 0], sizes = [8, 16], strides = [1, 1]} : vector<8x64xf32> to vector<8x16xf32>
    %362 = arith.negf %361 : vector<8x16xf32>
    %363 = math.exp %362 : vector<8x16xf32>
    %cst_77 = arith.constant 1.000000e+00 : f32
    %364 = vector.broadcast %cst_77 : f32 to vector<8x16xf32>
    %365 = arith.addf %364, %363 : vector<8x16xf32>
    %366 = arith.divf %364, %365 : vector<8x16xf32>
    %367 = vector.extract_strided_slice %360 {offsets = [0, 16], sizes = [8, 16], strides = [1, 1]} : vector<8x64xf32> to vector<8x16xf32>
    %368 = arith.negf %367 : vector<8x16xf32>
    %369 = math.exp %368 : vector<8x16xf32>
    %cst_78 = arith.constant 1.000000e+00 : f32
    %370 = vector.broadcast %cst_78 : f32 to vector<8x16xf32>
    %371 = arith.addf %370, %369 : vector<8x16xf32>
    %372 = arith.divf %370, %371 : vector<8x16xf32>
    %373 = vector.extract_strided_slice %360 {offsets = [0, 32], sizes = [8, 16], strides = [1, 1]} : vector<8x64xf32> to vector<8x16xf32>
    %374 = math.tanh %373 : vector<8x16xf32>
    %375 = vector.extract_strided_slice %360 {offsets = [0, 48], sizes = [8, 16], strides = [1, 1]} : vector<8x64xf32> to vector<8x16xf32>
    %376 = arith.negf %375 : vector<8x16xf32>
    %377 = math.exp %376 : vector<8x16xf32>
    %cst_79 = arith.constant 1.000000e+00 : f32
    %378 = vector.broadcast %cst_79 : f32 to vector<8x16xf32>
    %379 = arith.addf %378, %377 : vector<8x16xf32>
    %380 = arith.divf %378, %379 : vector<8x16xf32>
    %381 = arith.mulf %372, %324 : vector<8x16xf32>
    %382 = arith.mulf %366, %374 : vector<8x16xf32>
    %383 = arith.addf %381, %382 : vector<8x16xf32>
    %384 = math.tanh %383 : vector<8x16xf32>
    %385 = arith.mulf %380, %384 : vector<8x16xf32>
    %386 = vector.extract_strided_slice %21 {offsets = [0, 3], sizes = [8, 1], strides = [1, 1]} : vector<8x8xf32> to vector<8x1xf32>
    %387 = vector.extract_strided_slice %23 {offsets = [0, 3], sizes = [8, 1], strides = [1, 1]} : vector<8x8xf32> to vector<8x1xf32>
    %388 = vector.broadcast %386 : vector<8x1xf32> to vector<8x16xf32>
    %389 = arith.mulf %388, %385 : vector<8x16xf32>
    %390 = vector.broadcast %387 : vector<8x1xf32> to vector<8x16xf32>
    %391 = arith.mulf %390, %319 : vector<8x16xf32>
    %392 = arith.addf %389, %391 : vector<8x16xf32>
    %393 = vector.broadcast %386 : vector<8x1xf32> to vector<8x16xf32>
    %394 = arith.mulf %393, %383 : vector<8x16xf32>
    %395 = vector.broadcast %387 : vector<8x1xf32> to vector<8x16xf32>
    %396 = arith.mulf %395, %324 : vector<8x16xf32>
    %397 = arith.addf %394, %396 : vector<8x16xf32>
    %398 = tpu.concatenate %357, %392 in 1 : vector<8x16xf32>, vector<8x16xf32> -> vector<8x32xf32>
    %399 = arith.truncf %398 : vector<8x32xf32> to vector<8x32xbf16>
    %cst_80 = arith.constant dense<0.000000e+00> : vector<8x128xf32>
    %400 = tpu.matmul %399, %28, %cst_80 {dimension_numbers = #tpu.dot_dimension_numbers<[1], [0], [0], [1], [0, 0, 1, 1], [], []>} : vector<8x32xbf16>, vector<32x128xbf16>, vector<8x128xf32> -> vector<8x128xf32>
    %401 = vector.extract_strided_slice %400 {offsets = [0, 0], sizes = [8, 64], strides = [1, 1]} : vector<8x128xf32> to vector<8x64xf32>
    %402 = vector.extract_strided_slice %400 {offsets = [0, 64], sizes = [8, 64], strides = [1, 1]} : vector<8x128xf32> to vector<8x64xf32>
    %c0_81 = arith.constant 0 : index
    %c5_82 = arith.constant 5 : index
    %c0_83 = arith.constant 0 : index
    %403 = vector.load %arg11[%c0_81, %c5_82, %c0_83] : memref<8x8x128xf32, #tpu.memory_space<vmem>>, vector<8x1x64xf32>
    %404 = vector.shape_cast %403 : vector<8x1x64xf32> to vector<8x64xf32>
    %405 = arith.addf %401, %404 : vector<8x64xf32>
    %406 = vector.extract_strided_slice %405 {offsets = [0, 0], sizes = [8, 16], strides = [1, 1]} : vector<8x64xf32> to vector<8x16xf32>
    %407 = arith.negf %406 : vector<8x16xf32>
    %408 = math.exp %407 : vector<8x16xf32>
    %cst_84 = arith.constant 1.000000e+00 : f32
    %409 = vector.broadcast %cst_84 : f32 to vector<8x16xf32>
    %410 = arith.addf %409, %408 : vector<8x16xf32>
    %411 = arith.divf %409, %410 : vector<8x16xf32>
    %412 = vector.extract_strided_slice %405 {offsets = [0, 16], sizes = [8, 16], strides = [1, 1]} : vector<8x64xf32> to vector<8x16xf32>
    %413 = arith.negf %412 : vector<8x16xf32>
    %414 = math.exp %413 : vector<8x16xf32>
    %cst_85 = arith.constant 1.000000e+00 : f32
    %415 = vector.broadcast %cst_85 : f32 to vector<8x16xf32>
    %416 = arith.addf %415, %414 : vector<8x16xf32>
    %417 = arith.divf %415, %416 : vector<8x16xf32>
    %418 = vector.extract_strided_slice %405 {offsets = [0, 32], sizes = [8, 16], strides = [1, 1]} : vector<8x64xf32> to vector<8x16xf32>
    %419 = math.tanh %418 : vector<8x16xf32>
    %420 = vector.extract_strided_slice %405 {offsets = [0, 48], sizes = [8, 16], strides = [1, 1]} : vector<8x64xf32> to vector<8x16xf32>
    %421 = arith.negf %420 : vector<8x16xf32>
    %422 = math.exp %421 : vector<8x16xf32>
    %cst_86 = arith.constant 1.000000e+00 : f32
    %423 = vector.broadcast %cst_86 : f32 to vector<8x16xf32>
    %424 = arith.addf %423, %422 : vector<8x16xf32>
    %425 = arith.divf %423, %424 : vector<8x16xf32>
    %426 = arith.mulf %417, %355 : vector<8x16xf32>
    %427 = arith.mulf %411, %419 : vector<8x16xf32>
    %428 = arith.addf %426, %427 : vector<8x16xf32>
    %429 = math.tanh %428 : vector<8x16xf32>
    %430 = arith.mulf %425, %429 : vector<8x16xf32>
    %c0_87 = arith.constant 0 : index
    %c2_88 = arith.constant 2 : index
    %c64_89 = arith.constant 64 : index
    %431 = vector.load %arg11[%c0_87, %c2_88, %c64_89] : memref<8x8x128xf32, #tpu.memory_space<vmem>>, vector<8x1x64xf32>
    %432 = vector.shape_cast %431 : vector<8x1x64xf32> to vector<8x64xf32>
    %433 = arith.addf %402, %432 : vector<8x64xf32>
    %434 = vector.extract_strided_slice %433 {offsets = [0, 0], sizes = [8, 16], strides = [1, 1]} : vector<8x64xf32> to vector<8x16xf32>
    %435 = arith.negf %434 : vector<8x16xf32>
    %436 = math.exp %435 : vector<8x16xf32>
    %cst_90 = arith.constant 1.000000e+00 : f32
    %437 = vector.broadcast %cst_90 : f32 to vector<8x16xf32>
    %438 = arith.addf %437, %436 : vector<8x16xf32>
    %439 = arith.divf %437, %438 : vector<8x16xf32>
    %440 = vector.extract_strided_slice %433 {offsets = [0, 16], sizes = [8, 16], strides = [1, 1]} : vector<8x64xf32> to vector<8x16xf32>
    %441 = arith.negf %440 : vector<8x16xf32>
    %442 = math.exp %441 : vector<8x16xf32>
    %cst_91 = arith.constant 1.000000e+00 : f32
    %443 = vector.broadcast %cst_91 : f32 to vector<8x16xf32>
    %444 = arith.addf %443, %442 : vector<8x16xf32>
    %445 = arith.divf %443, %444 : vector<8x16xf32>
    %446 = vector.extract_strided_slice %433 {offsets = [0, 32], sizes = [8, 16], strides = [1, 1]} : vector<8x64xf32> to vector<8x16xf32>
    %447 = math.tanh %446 : vector<8x16xf32>
    %448 = vector.extract_strided_slice %433 {offsets = [0, 48], sizes = [8, 16], strides = [1, 1]} : vector<8x64xf32> to vector<8x16xf32>
    %449 = arith.negf %448 : vector<8x16xf32>
    %450 = math.exp %449 : vector<8x16xf32>
    %cst_92 = arith.constant 1.000000e+00 : f32
    %451 = vector.broadcast %cst_92 : f32 to vector<8x16xf32>
    %452 = arith.addf %451, %450 : vector<8x16xf32>
    %453 = arith.divf %451, %452 : vector<8x16xf32>
    %454 = arith.mulf %445, %397 : vector<8x16xf32>
    %455 = arith.mulf %439, %447 : vector<8x16xf32>
    %456 = arith.addf %454, %455 : vector<8x16xf32>
    %457 = math.tanh %456 : vector<8x16xf32>
    %458 = arith.mulf %453, %457 : vector<8x16xf32>
    %459 = vector.extract_strided_slice %21 {offsets = [0, 2], sizes = [8, 1], strides = [1, 1]} : vector<8x8xf32> to vector<8x1xf32>
    %460 = vector.extract_strided_slice %23 {offsets = [0, 2], sizes = [8, 1], strides = [1, 1]} : vector<8x8xf32> to vector<8x1xf32>
    %461 = vector.broadcast %459 : vector<8x1xf32> to vector<8x16xf32>
    %462 = arith.mulf %461, %458 : vector<8x16xf32>
    %463 = vector.broadcast %460 : vector<8x1xf32> to vector<8x16xf32>
    %464 = arith.mulf %463, %392 : vector<8x16xf32>
    %465 = arith.addf %462, %464 : vector<8x16xf32>
    %466 = vector.broadcast %459 : vector<8x1xf32> to vector<8x16xf32>
    %467 = arith.mulf %466, %456 : vector<8x16xf32>
    %468 = vector.broadcast %460 : vector<8x1xf32> to vector<8x16xf32>
    %469 = arith.mulf %468, %397 : vector<8x16xf32>
    %470 = arith.addf %467, %469 : vector<8x16xf32>
    %471 = tpu.concatenate %430, %465 in 1 : vector<8x16xf32>, vector<8x16xf32> -> vector<8x32xf32>
    %472 = arith.truncf %471 : vector<8x32xf32> to vector<8x32xbf16>
    %cst_93 = arith.constant dense<0.000000e+00> : vector<8x128xf32>
    %473 = tpu.matmul %472, %28, %cst_93 {dimension_numbers = #tpu.dot_dimension_numbers<[1], [0], [0], [1], [0, 0, 1, 1], [], []>} : vector<8x32xbf16>, vector<32x128xbf16>, vector<8x128xf32> -> vector<8x128xf32>
    %474 = vector.extract_strided_slice %473 {offsets = [0, 0], sizes = [8, 64], strides = [1, 1]} : vector<8x128xf32> to vector<8x64xf32>
    %475 = vector.extract_strided_slice %473 {offsets = [0, 64], sizes = [8, 64], strides = [1, 1]} : vector<8x128xf32> to vector<8x64xf32>
    %c0_94 = arith.constant 0 : index
    %c6_95 = arith.constant 6 : index
    %c0_96 = arith.constant 0 : index
    %476 = vector.load %arg11[%c0_94, %c6_95, %c0_96] : memref<8x8x128xf32, #tpu.memory_space<vmem>>, vector<8x1x64xf32>
    %477 = vector.shape_cast %476 : vector<8x1x64xf32> to vector<8x64xf32>
    %478 = arith.addf %474, %477 : vector<8x64xf32>
    %479 = vector.extract_strided_slice %478 {offsets = [0, 0], sizes = [8, 16], strides = [1, 1]} : vector<8x64xf32> to vector<8x16xf32>
    %480 = arith.negf %479 : vector<8x16xf32>
    %481 = math.exp %480 : vector<8x16xf32>
    %cst_97 = arith.constant 1.000000e+00 : f32
    %482 = vector.broadcast %cst_97 : f32 to vector<8x16xf32>
    %483 = arith.addf %482, %481 : vector<8x16xf32>
    %484 = arith.divf %482, %483 : vector<8x16xf32>
    %485 = vector.extract_strided_slice %478 {offsets = [0, 16], sizes = [8, 16], strides = [1, 1]} : vector<8x64xf32> to vector<8x16xf32>
    %486 = arith.negf %485 : vector<8x16xf32>
    %487 = math.exp %486 : vector<8x16xf32>
    %cst_98 = arith.constant 1.000000e+00 : f32
    %488 = vector.broadcast %cst_98 : f32 to vector<8x16xf32>
    %489 = arith.addf %488, %487 : vector<8x16xf32>
    %490 = arith.divf %488, %489 : vector<8x16xf32>
    %491 = vector.extract_strided_slice %478 {offsets = [0, 32], sizes = [8, 16], strides = [1, 1]} : vector<8x64xf32> to vector<8x16xf32>
    %492 = math.tanh %491 : vector<8x16xf32>
    %493 = vector.extract_strided_slice %478 {offsets = [0, 48], sizes = [8, 16], strides = [1, 1]} : vector<8x64xf32> to vector<8x16xf32>
    %494 = arith.negf %493 : vector<8x16xf32>
    %495 = math.exp %494 : vector<8x16xf32>
    %cst_99 = arith.constant 1.000000e+00 : f32
    %496 = vector.broadcast %cst_99 : f32 to vector<8x16xf32>
    %497 = arith.addf %496, %495 : vector<8x16xf32>
    %498 = arith.divf %496, %497 : vector<8x16xf32>
    %499 = arith.mulf %490, %428 : vector<8x16xf32>
    %500 = arith.mulf %484, %492 : vector<8x16xf32>
    %501 = arith.addf %499, %500 : vector<8x16xf32>
    %502 = math.tanh %501 : vector<8x16xf32>
    %503 = arith.mulf %498, %502 : vector<8x16xf32>
    %c0_100 = arith.constant 0 : index
    %c1_101 = arith.constant 1 : index
    %c64_102 = arith.constant 64 : index
    %504 = vector.load %arg11[%c0_100, %c1_101, %c64_102] : memref<8x8x128xf32, #tpu.memory_space<vmem>>, vector<8x1x64xf32>
    %505 = vector.shape_cast %504 : vector<8x1x64xf32> to vector<8x64xf32>
    %506 = arith.addf %475, %505 : vector<8x64xf32>
    %507 = vector.extract_strided_slice %506 {offsets = [0, 0], sizes = [8, 16], strides = [1, 1]} : vector<8x64xf32> to vector<8x16xf32>
    %508 = arith.negf %507 : vector<8x16xf32>
    %509 = math.exp %508 : vector<8x16xf32>
    %cst_103 = arith.constant 1.000000e+00 : f32
    %510 = vector.broadcast %cst_103 : f32 to vector<8x16xf32>
    %511 = arith.addf %510, %509 : vector<8x16xf32>
    %512 = arith.divf %510, %511 : vector<8x16xf32>
    %513 = vector.extract_strided_slice %506 {offsets = [0, 16], sizes = [8, 16], strides = [1, 1]} : vector<8x64xf32> to vector<8x16xf32>
    %514 = arith.negf %513 : vector<8x16xf32>
    %515 = math.exp %514 : vector<8x16xf32>
    %cst_104 = arith.constant 1.000000e+00 : f32
    %516 = vector.broadcast %cst_104 : f32 to vector<8x16xf32>
    %517 = arith.addf %516, %515 : vector<8x16xf32>
    %518 = arith.divf %516, %517 : vector<8x16xf32>
    %519 = vector.extract_strided_slice %506 {offsets = [0, 32], sizes = [8, 16], strides = [1, 1]} : vector<8x64xf32> to vector<8x16xf32>
    %520 = math.tanh %519 : vector<8x16xf32>
    %521 = vector.extract_strided_slice %506 {offsets = [0, 48], sizes = [8, 16], strides = [1, 1]} : vector<8x64xf32> to vector<8x16xf32>
    %522 = arith.negf %521 : vector<8x16xf32>
    %523 = math.exp %522 : vector<8x16xf32>
    %cst_105 = arith.constant 1.000000e+00 : f32
    %524 = vector.broadcast %cst_105 : f32 to vector<8x16xf32>
    %525 = arith.addf %524, %523 : vector<8x16xf32>
    %526 = arith.divf %524, %525 : vector<8x16xf32>
    %527 = arith.mulf %518, %470 : vector<8x16xf32>
    %528 = arith.mulf %512, %520 : vector<8x16xf32>
    %529 = arith.addf %527, %528 : vector<8x16xf32>
    %530 = math.tanh %529 : vector<8x16xf32>
    %531 = arith.mulf %526, %530 : vector<8x16xf32>
    %532 = vector.extract_strided_slice %21 {offsets = [0, 1], sizes = [8, 1], strides = [1, 1]} : vector<8x8xf32> to vector<8x1xf32>
    %533 = vector.extract_strided_slice %23 {offsets = [0, 1], sizes = [8, 1], strides = [1, 1]} : vector<8x8xf32> to vector<8x1xf32>
    %534 = vector.broadcast %532 : vector<8x1xf32> to vector<8x16xf32>
    %535 = arith.mulf %534, %531 : vector<8x16xf32>
    %536 = vector.broadcast %533 : vector<8x1xf32> to vector<8x16xf32>
    %537 = arith.mulf %536, %465 : vector<8x16xf32>
    %538 = arith.addf %535, %537 : vector<8x16xf32>
    %539 = vector.broadcast %532 : vector<8x1xf32> to vector<8x16xf32>
    %540 = arith.mulf %539, %529 : vector<8x16xf32>
    %541 = vector.broadcast %533 : vector<8x1xf32> to vector<8x16xf32>
    %542 = arith.mulf %541, %470 : vector<8x16xf32>
    %543 = arith.addf %540, %542 : vector<8x16xf32>
    %544 = tpu.concatenate %503, %538 in 1 : vector<8x16xf32>, vector<8x16xf32> -> vector<8x32xf32>
    %545 = arith.truncf %544 : vector<8x32xf32> to vector<8x32xbf16>
    %cst_106 = arith.constant dense<0.000000e+00> : vector<8x128xf32>
    %546 = tpu.matmul %545, %28, %cst_106 {dimension_numbers = #tpu.dot_dimension_numbers<[1], [0], [0], [1], [0, 0, 1, 1], [], []>} : vector<8x32xbf16>, vector<32x128xbf16>, vector<8x128xf32> -> vector<8x128xf32>
    %547 = vector.extract_strided_slice %546 {offsets = [0, 0], sizes = [8, 64], strides = [1, 1]} : vector<8x128xf32> to vector<8x64xf32>
    %548 = vector.extract_strided_slice %546 {offsets = [0, 64], sizes = [8, 64], strides = [1, 1]} : vector<8x128xf32> to vector<8x64xf32>
    %c0_107 = arith.constant 0 : index
    %c7_108 = arith.constant 7 : index
    %c0_109 = arith.constant 0 : index
    %549 = vector.load %arg11[%c0_107, %c7_108, %c0_109] : memref<8x8x128xf32, #tpu.memory_space<vmem>>, vector<8x1x64xf32>
    %550 = vector.shape_cast %549 : vector<8x1x64xf32> to vector<8x64xf32>
    %551 = arith.addf %547, %550 : vector<8x64xf32>
    %552 = vector.extract_strided_slice %551 {offsets = [0, 0], sizes = [8, 16], strides = [1, 1]} : vector<8x64xf32> to vector<8x16xf32>
    %553 = arith.negf %552 : vector<8x16xf32>
    %554 = math.exp %553 : vector<8x16xf32>
    %cst_110 = arith.constant 1.000000e+00 : f32
    %555 = vector.broadcast %cst_110 : f32 to vector<8x16xf32>
    %556 = arith.addf %555, %554 : vector<8x16xf32>
    %557 = arith.divf %555, %556 : vector<8x16xf32>
    %558 = vector.extract_strided_slice %551 {offsets = [0, 16], sizes = [8, 16], strides = [1, 1]} : vector<8x64xf32> to vector<8x16xf32>
    %559 = arith.negf %558 : vector<8x16xf32>
    %560 = math.exp %559 : vector<8x16xf32>
    %cst_111 = arith.constant 1.000000e+00 : f32
    %561 = vector.broadcast %cst_111 : f32 to vector<8x16xf32>
    %562 = arith.addf %561, %560 : vector<8x16xf32>
    %563 = arith.divf %561, %562 : vector<8x16xf32>
    %564 = vector.extract_strided_slice %551 {offsets = [0, 32], sizes = [8, 16], strides = [1, 1]} : vector<8x64xf32> to vector<8x16xf32>
    %565 = math.tanh %564 : vector<8x16xf32>
    %566 = vector.extract_strided_slice %551 {offsets = [0, 48], sizes = [8, 16], strides = [1, 1]} : vector<8x64xf32> to vector<8x16xf32>
    %567 = arith.negf %566 : vector<8x16xf32>
    %568 = math.exp %567 : vector<8x16xf32>
    %cst_112 = arith.constant 1.000000e+00 : f32
    %569 = vector.broadcast %cst_112 : f32 to vector<8x16xf32>
    %570 = arith.addf %569, %568 : vector<8x16xf32>
    %571 = arith.divf %569, %570 : vector<8x16xf32>
    %572 = arith.mulf %563, %501 : vector<8x16xf32>
    %573 = arith.mulf %557, %565 : vector<8x16xf32>
    %574 = arith.addf %572, %573 : vector<8x16xf32>
    %575 = math.tanh %574 : vector<8x16xf32>
    %576 = arith.mulf %571, %575 : vector<8x16xf32>
    %c0_113 = arith.constant 0 : index
    %c0_114 = arith.constant 0 : index
    %c64_115 = arith.constant 64 : index
    %577 = vector.load %arg11[%c0_113, %c0_114, %c64_115] : memref<8x8x128xf32, #tpu.memory_space<vmem>>, vector<8x1x64xf32>
    %578 = vector.shape_cast %577 : vector<8x1x64xf32> to vector<8x64xf32>
    %579 = arith.addf %548, %578 : vector<8x64xf32>
    %580 = vector.extract_strided_slice %579 {offsets = [0, 0], sizes = [8, 16], strides = [1, 1]} : vector<8x64xf32> to vector<8x16xf32>
    %581 = arith.negf %580 : vector<8x16xf32>
    %582 = math.exp %581 : vector<8x16xf32>
    %cst_116 = arith.constant 1.000000e+00 : f32
    %583 = vector.broadcast %cst_116 : f32 to vector<8x16xf32>
    %584 = arith.addf %583, %582 : vector<8x16xf32>
    %585 = arith.divf %583, %584 : vector<8x16xf32>
    %586 = vector.extract_strided_slice %579 {offsets = [0, 16], sizes = [8, 16], strides = [1, 1]} : vector<8x64xf32> to vector<8x16xf32>
    %587 = arith.negf %586 : vector<8x16xf32>
    %588 = math.exp %587 : vector<8x16xf32>
    %cst_117 = arith.constant 1.000000e+00 : f32
    %589 = vector.broadcast %cst_117 : f32 to vector<8x16xf32>
    %590 = arith.addf %589, %588 : vector<8x16xf32>
    %591 = arith.divf %589, %590 : vector<8x16xf32>
    %592 = vector.extract_strided_slice %579 {offsets = [0, 32], sizes = [8, 16], strides = [1, 1]} : vector<8x64xf32> to vector<8x16xf32>
    %593 = math.tanh %592 : vector<8x16xf32>
    %594 = vector.extract_strided_slice %579 {offsets = [0, 48], sizes = [8, 16], strides = [1, 1]} : vector<8x64xf32> to vector<8x16xf32>
    %595 = arith.negf %594 : vector<8x16xf32>
    %596 = math.exp %595 : vector<8x16xf32>
    %cst_118 = arith.constant 1.000000e+00 : f32
    %597 = vector.broadcast %cst_118 : f32 to vector<8x16xf32>
    %598 = arith.addf %597, %596 : vector<8x16xf32>
    %599 = arith.divf %597, %598 : vector<8x16xf32>
    %600 = arith.mulf %591, %543 : vector<8x16xf32>
    %601 = arith.mulf %585, %593 : vector<8x16xf32>
    %602 = arith.addf %600, %601 : vector<8x16xf32>
    %603 = math.tanh %602 : vector<8x16xf32>
    %604 = arith.mulf %599, %603 : vector<8x16xf32>
    %605 = vector.extract_strided_slice %21 {offsets = [0, 0], sizes = [8, 1], strides = [1, 1]} : vector<8x8xf32> to vector<8x1xf32>
    %606 = vector.extract_strided_slice %23 {offsets = [0, 0], sizes = [8, 1], strides = [1, 1]} : vector<8x8xf32> to vector<8x1xf32>
    %607 = vector.broadcast %605 : vector<8x1xf32> to vector<8x16xf32>
    %608 = arith.mulf %607, %604 : vector<8x16xf32>
    %609 = vector.broadcast %606 : vector<8x1xf32> to vector<8x16xf32>
    %610 = arith.mulf %609, %538 : vector<8x16xf32>
    %611 = arith.addf %608, %610 : vector<8x16xf32>
    %612 = vector.shape_cast %65 : vector<8x16xf32> to vector<8x1x16xf32>
    %613 = vector.shape_cast %138 : vector<8x16xf32> to vector<8x1x16xf32>
    %614 = vector.shape_cast %211 : vector<8x16xf32> to vector<8x1x16xf32>
    %615 = vector.shape_cast %284 : vector<8x16xf32> to vector<8x1x16xf32>
    %616 = vector.shape_cast %357 : vector<8x16xf32> to vector<8x1x16xf32>
    %617 = vector.shape_cast %430 : vector<8x16xf32> to vector<8x1x16xf32>
    %618 = vector.shape_cast %503 : vector<8x16xf32> to vector<8x1x16xf32>
    %619 = vector.shape_cast %576 : vector<8x16xf32> to vector<8x1x16xf32>
    %620 = tpu.concatenate %612, %613, %614, %615, %616, %617, %618, %619 in 1 : vector<8x1x16xf32>, vector<8x1x16xf32>, vector<8x1x16xf32>, vector<8x1x16xf32>, vector<8x1x16xf32>, vector<8x1x16xf32>, vector<8x1x16xf32>, vector<8x1x16xf32> -> vector<8x8x16xf32>
    %621 = vector.shape_cast %21 : vector<8x8xf32> to vector<8x8x1xf32>
    %622 = vector.broadcast %621 : vector<8x8x1xf32> to vector<8x8x16xf32>
    %623 = arith.mulf %620, %622 : vector<8x8x16xf32>
    %624 = vector.shape_cast %611 : vector<8x16xf32> to vector<8x1x16xf32>
    %625 = vector.shape_cast %538 : vector<8x16xf32> to vector<8x1x16xf32>
    %626 = vector.shape_cast %465 : vector<8x16xf32> to vector<8x1x16xf32>
    %627 = vector.shape_cast %392 : vector<8x16xf32> to vector<8x1x16xf32>
    %628 = vector.shape_cast %319 : vector<8x16xf32> to vector<8x1x16xf32>
    %629 = vector.shape_cast %246 : vector<8x16xf32> to vector<8x1x16xf32>
    %630 = vector.shape_cast %173 : vector<8x16xf32> to vector<8x1x16xf32>
    %631 = vector.shape_cast %100 : vector<8x16xf32> to vector<8x1x16xf32>
    %632 = tpu.concatenate %624, %625, %626, %627, %628, %629, %630, %631 in 1 : vector<8x1x16xf32>, vector<8x1x16xf32>, vector<8x1x16xf32>, vector<8x1x16xf32>, vector<8x1x16xf32>, vector<8x1x16xf32>, vector<8x1x16xf32>, vector<8x1x16xf32> -> vector<8x8x16xf32>
    %633 = tpu.concatenate %623, %632 in 2 : vector<8x8x16xf32>, vector<8x8x16xf32> -> vector<8x8x32xf32>
    %c0_119 = arith.constant 0 : index
    %c0_120 = arith.constant 0 : index
    %c0_121 = arith.constant 0 : index
    %634 = vector.load %arg12[%c0_119, %c0_120, %c0_121] : memref<8x8x32xf32, #tpu.memory_space<vmem>>, vector<8x8x32xf32>
    tpu.vector_store %arg12[%c0_119, %c0_120, %c0_121], %633 {strides = array<i32>} : memref<8x8x32xf32, #tpu.memory_space<vmem>>, vector<8x8x32xf32>,
    %c0_122 = arith.constant 0 : index
    %c0_123 = arith.constant 0 : index
    %635 = vector.load %arg6[%c0_122, %c0_123] : memref<32x96xf32, #tpu.memory_space<vmem>>, vector<32x96xf32>
    %636 = vector.extract_strided_slice %635 {offsets = [0, 0], sizes = [32, 32], strides = [1, 1]} : vector<32x96xf32> to vector<32x32xf32>
    %637 = vector.extract_strided_slice %635 {offsets = [0, 32], sizes = [32, 32], strides = [1, 1]} : vector<32x96xf32> to vector<32x32xf32>
    %638 = vector.extract_strided_slice %635 {offsets = [0, 64], sizes = [32, 32], strides = [1, 1]} : vector<32x96xf32> to vector<32x32xf32>
    %c0_124 = arith.constant 0 : index
    %c0_125 = arith.constant 0 : index
    %639 = vector.load %arg7[%c0_124, %c0_125] : memref<2x32xf32, #tpu.memory_space<vmem>>, vector<2x32xf32>
    %640 = vector.extract_strided_slice %639 {offsets = [0, 0], sizes = [1, 32], strides = [1, 1]} : vector<2x32xf32> to vector<1x32xf32>
    %641 = vector.extract_strided_slice %639 {offsets = [1, 0], sizes = [1, 32], strides = [1, 1]} : vector<2x32xf32> to vector<1x32xf32>
    %642 = vector.shape_cast %27 : vector<8x8xf32> to vector<8x8x1xf32>
    %643 = vector.broadcast %642 : vector<8x8x1xf32> to vector<8x8x32xf32>
    %644 = arith.mulf %633, %643 : vector<8x8x32xf32>
    %cst_126 = arith.constant dense<0.000000e+00> : vector<8x32xf32>
    %645 = vector.multi_reduction <add>, %644, %cst_126 [1] : vector<8x8x32xf32> to vector<8x32xf32>
    %646 = arith.sitofp %3 : vector<8x1xi32> to vector<8x1xf32>
    %cst_127 = arith.constant 1.000000e+00 : f32
    %647 = vector.broadcast %cst_127 : f32 to vector<8x1xf32>
    %648 = arith.maximumf %646, %647 : vector<8x1xf32>
    %649 = vector.broadcast %648 : vector<8x1xf32> to vector<8x32xf32>
    %650 = arith.divf %645, %649 : vector<8x32xf32>
    %cst_128 = arith.constant dense<0.000000e+00> : vector<8x32xf32>
    %651 = tpu.matmul %650, %636, %cst_128 {dimension_numbers = #tpu.dot_dimension_numbers<[1], [0], [0], [1], [0, 0, 1, 1], [], []>} : vector<8x32xf32>, vector<32x32xf32>, vector<8x32xf32> -> vector<8x32xf32>
    %652 = vector.broadcast %640 : vector<1x32xf32> to vector<8x32xf32>
    %653 = arith.addf %651, %652 : vector<8x32xf32>
    %654 = vector.shape_cast %641 : vector<1x32xf32> to vector<1x1x32xf32>
    %655 = vector.broadcast %654 : vector<1x1x32xf32> to vector<8x8x32xf32>
    %656 = arith.mulf %633, %655 : vector<8x8x32xf32>
    %cst_129 = arith.constant dense<0.000000e+00> : vector<8x8xf32>
    %657 = vector.multi_reduction <add>, %656, %cst_129 [2] : vector<8x8x32xf32> to vector<8x8xf32>
    %658 = vector.broadcast %4 : f32 to vector<8x8xf32>
    %659 = arith.addf %657, %658 : vector<8x8xf32>
    %cst_130 = arith.constant dense<0.000000e+00> : vector<8x32xf32>
    %660 = tpu.matmul %653, %637, %cst_130 {dimension_numbers = #tpu.dot_dimension_numbers<[1], [0], [0], [1], [0, 0, 1, 1], [], []>} : vector<8x32xf32>, vector<32x32xf32>, vector<8x32xf32> -> vector<8x32xf32>
    %661 = vector.shape_cast %660 : vector<8x32xf32> to vector<8x1x32xf32>
    %662 = vector.broadcast %661 : vector<8x1x32xf32> to vector<8x8x32xf32>
    %663 = arith.mulf %633, %662 : vector<8x8x32xf32>
    %cst_131 = arith.constant dense<0.000000e+00> : vector<8x8xf32>
    %664 = vector.multi_reduction <add>, %663, %cst_131 [2] : vector<8x8x32xf32> to vector<8x8xf32>
    %665 = vector.broadcast %5 : f32 to vector<8x8xf32>
    %666 = arith.addf %664, %665 : vector<8x8xf32>
    %667 = arith.addf %659, %666 : vector<8x8xf32>
    %c0_132 = arith.constant 0 : index
    %c0_133 = arith.constant 0 : index
    %668 = vector.load %arg8[%c0_132, %c0_133] : memref<1x8xf32, #tpu.memory_space<vmem>>, vector<1x8xf32>
    %669 = vector.broadcast %668 : vector<1x8xf32> to vector<8x8xf32>
    %670 = arith.addf %667, %669 : vector<8x8xf32>
    %671 = vector.broadcast %7 : f32 to vector<8x8xf32>
    %672 = arith.mulf %670, %671 : vector<8x8xf32>
    %673 = vector.broadcast %8 : f32 to vector<8x8xf32>
    %674 = arith.addf %672, %673 : vector<8x8xf32>
    %675 = vector.shape_cast %633 : vector<8x8x32xf32> to vector<64x32xf32>
    %cst_134 = arith.constant dense<0.000000e+00> : vector<64x32xf32>
    %676 = tpu.matmul %675, %638, %cst_134 {dimension_numbers = #tpu.dot_dimension_numbers<[1], [0], [0], [1], [0, 0, 1, 1], [], []>} : vector<64x32xf32>, vector<32x32xf32>, vector<64x32xf32> -> vector<64x32xf32>
    %677 = vector.shape_cast %676 : vector<64x32xf32> to vector<8x8x32xf32>
    %c0_135 = arith.constant 0 : index
    %c0_136 = arith.constant 0 : index
    %c0_137 = arith.constant 0 : index
    %678 = vector.load %arg13[%c0_135, %c0_136, %c0_137] : memref<8x8x32xf32, #tpu.memory_space<vmem>>, vector<8x8x32xf32>
    tpu.vector_store %arg13[%c0_135, %c0_136, %c0_137], %677 {strides = array<i32>} : memref<8x8x32xf32, #tpu.memory_space<vmem>>, vector<8x8x32xf32>,
    %cst_138 = arith.constant 0.000000e+00 : f32
    %679 = vector.broadcast %cst_138 : f32 to vector<8x32xf32>
    %680 = vector.extract_strided_slice %674 {offsets = [0, 0], sizes = [8, 1], strides = [1, 1]} : vector<8x8xf32> to vector<8x1xf32>
    %681 = arith.negf %680 : vector<8x1xf32>
    %682 = math.exp %681 : vector<8x1xf32>
    %cst_139 = arith.constant 1.000000e+00 : f32
    %683 = vector.broadcast %cst_139 : f32 to vector<8x1xf32>
    %684 = arith.addf %683, %682 : vector<8x1xf32>
    %685 = arith.divf %683, %684 : vector<8x1xf32>
    %c0_140 = arith.constant 0 : index
    %c0_141 = arith.constant 0 : index
    %c0_142 = arith.constant 0 : index
    %686 = vector.load %arg12[%c0_140, %c0_141, %c0_142] : memref<8x8x32xf32, #tpu.memory_space<vmem>>, vector<8x1x32xf32>
    %687 = vector.shape_cast %686 : vector<8x1x32xf32> to vector<8x32xf32>
    %688 = vector.broadcast %685 : vector<8x1xf32> to vector<8x32xf32>
    %689 = arith.mulf %687, %688 : vector<8x32xf32>
    %690 = arith.addf %679, %689 : vector<8x32xf32>
    %c0_143 = arith.constant 0 : index
    %c1_144 = arith.constant 1 : index
    %c0_145 = arith.constant 0 : index
    %691 = vector.load %arg13[%c0_143, %c1_144, %c0_145] : memref<8x8x32xf32, #tpu.memory_space<vmem>>, vector<8x1x32xf32>
    %692 = vector.shape_cast %691 : vector<8x1x32xf32> to vector<8x32xf32>
    %693 = arith.mulf %690, %692 : vector<8x32xf32>
    %cst_146 = arith.constant dense<0.000000e+00> : vector<8xf32>
    %694 = vector.multi_reduction <add>, %693, %cst_146 [1] : vector<8x32xf32> to vector<8xf32>
    %695 = vector.shape_cast %694 : vector<8xf32> to vector<8x1xf32>
    %696 = vector.broadcast %6 : f32 to vector<8x1xf32>
    %697 = arith.addf %695, %696 : vector<8x1xf32>
    %698 = vector.extract_strided_slice %674 {offsets = [0, 1], sizes = [8, 1], strides = [1, 1]} : vector<8x8xf32> to vector<8x1xf32>
    %699 = vector.broadcast %7 : f32 to vector<8x1xf32>
    %700 = arith.mulf %697, %699 : vector<8x1xf32>
    %701 = arith.addf %698, %700 : vector<8x1xf32>
    %702 = arith.negf %701 : vector<8x1xf32>
    %703 = math.exp %702 : vector<8x1xf32>
    %cst_147 = arith.constant 1.000000e+00 : f32
    %704 = vector.broadcast %cst_147 : f32 to vector<8x1xf32>
    %705 = arith.addf %704, %703 : vector<8x1xf32>
    %706 = arith.divf %704, %705 : vector<8x1xf32>
    %c0_148 = arith.constant 0 : index
    %c1_149 = arith.constant 1 : index
    %c0_150 = arith.constant 0 : index
    %707 = vector.load %arg12[%c0_148, %c1_149, %c0_150] : memref<8x8x32xf32, #tpu.memory_space<vmem>>, vector<8x1x32xf32>
    %708 = vector.shape_cast %707 : vector<8x1x32xf32> to vector<8x32xf32>
    %709 = vector.broadcast %706 : vector<8x1xf32> to vector<8x32xf32>
    %710 = arith.mulf %708, %709 : vector<8x32xf32>
    %711 = arith.addf %690, %710 : vector<8x32xf32>
    %c0_151 = arith.constant 0 : index
    %c2_152 = arith.constant 2 : index
    %c0_153 = arith.constant 0 : index
    %712 = vector.load %arg13[%c0_151, %c2_152, %c0_153] : memref<8x8x32xf32, #tpu.memory_space<vmem>>, vector<8x1x32xf32>
    %713 = vector.shape_cast %712 : vector<8x1x32xf32> to vector<8x32xf32>
    %714 = arith.mulf %711, %713 : vector<8x32xf32>
    %cst_154 = arith.constant dense<0.000000e+00> : vector<8xf32>
    %715 = vector.multi_reduction <add>, %714, %cst_154 [1] : vector<8x32xf32> to vector<8xf32>
    %716 = vector.shape_cast %715 : vector<8xf32> to vector<8x1xf32>
    %717 = vector.broadcast %6 : f32 to vector<8x1xf32>
    %718 = arith.addf %716, %717 : vector<8x1xf32>
    %719 = vector.extract_strided_slice %674 {offsets = [0, 2], sizes = [8, 1], strides = [1, 1]} : vector<8x8xf32> to vector<8x1xf32>
    %720 = vector.broadcast %7 : f32 to vector<8x1xf32>
    %721 = arith.mulf %718, %720 : vector<8x1xf32>
    %722 = arith.addf %719, %721 : vector<8x1xf32>
    %723 = arith.negf %722 : vector<8x1xf32>
    %724 = math.exp %723 : vector<8x1xf32>
    %cst_155 = arith.constant 1.000000e+00 : f32
    %725 = vector.broadcast %cst_155 : f32 to vector<8x1xf32>
    %726 = arith.addf %725, %724 : vector<8x1xf32>
    %727 = arith.divf %725, %726 : vector<8x1xf32>
    %c0_156 = arith.constant 0 : index
    %c2_157 = arith.constant 2 : index
    %c0_158 = arith.constant 0 : index
    %728 = vector.load %arg12[%c0_156, %c2_157, %c0_158] : memref<8x8x32xf32, #tpu.memory_space<vmem>>, vector<8x1x32xf32>
    %729 = vector.shape_cast %728 : vector<8x1x32xf32> to vector<8x32xf32>
    %730 = vector.broadcast %727 : vector<8x1xf32> to vector<8x32xf32>
    %731 = arith.mulf %729, %730 : vector<8x32xf32>
    %732 = arith.addf %711, %731 : vector<8x32xf32>
    %c0_159 = arith.constant 0 : index
    %c3_160 = arith.constant 3 : index
    %c0_161 = arith.constant 0 : index
    %733 = vector.load %arg13[%c0_159, %c3_160, %c0_161] : memref<8x8x32xf32, #tpu.memory_space<vmem>>, vector<8x1x32xf32>
    %734 = vector.shape_cast %733 : vector<8x1x32xf32> to vector<8x32xf32>
    %735 = arith.mulf %732, %734 : vector<8x32xf32>
    %cst_162 = arith.constant dense<0.000000e+00> : vector<8xf32>
    %736 = vector.multi_reduction <add>, %735, %cst_162 [1] : vector<8x32xf32> to vector<8xf32>
    %737 = vector.shape_cast %736 : vector<8xf32> to vector<8x1xf32>
    %738 = vector.broadcast %6 : f32 to vector<8x1xf32>
    %739 = arith.addf %737, %738 : vector<8x1xf32>
    %740 = vector.extract_strided_slice %674 {offsets = [0, 3], sizes = [8, 1], strides = [1, 1]} : vector<8x8xf32> to vector<8x1xf32>
    %741 = vector.broadcast %7 : f32 to vector<8x1xf32>
    %742 = arith.mulf %739, %741 : vector<8x1xf32>
    %743 = arith.addf %740, %742 : vector<8x1xf32>
    %744 = arith.negf %743 : vector<8x1xf32>
    %745 = math.exp %744 : vector<8x1xf32>
    %cst_163 = arith.constant 1.000000e+00 : f32
    %746 = vector.broadcast %cst_163 : f32 to vector<8x1xf32>
    %747 = arith.addf %746, %745 : vector<8x1xf32>
    %748 = arith.divf %746, %747 : vector<8x1xf32>
    %c0_164 = arith.constant 0 : index
    %c3_165 = arith.constant 3 : index
    %c0_166 = arith.constant 0 : index
    %749 = vector.load %arg12[%c0_164, %c3_165, %c0_166] : memref<8x8x32xf32, #tpu.memory_space<vmem>>, vector<8x1x32xf32>
    %750 = vector.shape_cast %749 : vector<8x1x32xf32> to vector<8x32xf32>
    %751 = vector.broadcast %748 : vector<8x1xf32> to vector<8x32xf32>
    %752 = arith.mulf %750, %751 : vector<8x32xf32>
    %753 = arith.addf %732, %752 : vector<8x32xf32>
    %c0_167 = arith.constant 0 : index
    %c4_168 = arith.constant 4 : index
    %c0_169 = arith.constant 0 : index
    %754 = vector.load %arg13[%c0_167, %c4_168, %c0_169] : memref<8x8x32xf32, #tpu.memory_space<vmem>>, vector<8x1x32xf32>
    %755 = vector.shape_cast %754 : vector<8x1x32xf32> to vector<8x32xf32>
    %756 = arith.mulf %753, %755 : vector<8x32xf32>
    %cst_170 = arith.constant dense<0.000000e+00> : vector<8xf32>
    %757 = vector.multi_reduction <add>, %756, %cst_170 [1] : vector<8x32xf32> to vector<8xf32>
    %758 = vector.shape_cast %757 : vector<8xf32> to vector<8x1xf32>
    %759 = vector.broadcast %6 : f32 to vector<8x1xf32>
    %760 = arith.addf %758, %759 : vector<8x1xf32>
    %761 = vector.extract_strided_slice %674 {offsets = [0, 4], sizes = [8, 1], strides = [1, 1]} : vector<8x8xf32> to vector<8x1xf32>
    %762 = vector.broadcast %7 : f32 to vector<8x1xf32>
    %763 = arith.mulf %760, %762 : vector<8x1xf32>
    %764 = arith.addf %761, %763 : vector<8x1xf32>
    %765 = arith.negf %764 : vector<8x1xf32>
    %766 = math.exp %765 : vector<8x1xf32>
    %cst_171 = arith.constant 1.000000e+00 : f32
    %767 = vector.broadcast %cst_171 : f32 to vector<8x1xf32>
    %768 = arith.addf %767, %766 : vector<8x1xf32>
    %769 = arith.divf %767, %768 : vector<8x1xf32>
    %c0_172 = arith.constant 0 : index
    %c4_173 = arith.constant 4 : index
    %c0_174 = arith.constant 0 : index
    %770 = vector.load %arg12[%c0_172, %c4_173, %c0_174] : memref<8x8x32xf32, #tpu.memory_space<vmem>>, vector<8x1x32xf32>
    %771 = vector.shape_cast %770 : vector<8x1x32xf32> to vector<8x32xf32>
    %772 = vector.broadcast %769 : vector<8x1xf32> to vector<8x32xf32>
    %773 = arith.mulf %771, %772 : vector<8x32xf32>
    %774 = arith.addf %753, %773 : vector<8x32xf32>
    %c0_175 = arith.constant 0 : index
    %c5_176 = arith.constant 5 : index
    %c0_177 = arith.constant 0 : index
    %775 = vector.load %arg13[%c0_175, %c5_176, %c0_177] : memref<8x8x32xf32, #tpu.memory_space<vmem>>, vector<8x1x32xf32>
    %776 = vector.shape_cast %775 : vector<8x1x32xf32> to vector<8x32xf32>
    %777 = arith.mulf %774, %776 : vector<8x32xf32>
    %cst_178 = arith.constant dense<0.000000e+00> : vector<8xf32>
    %778 = vector.multi_reduction <add>, %777, %cst_178 [1] : vector<8x32xf32> to vector<8xf32>
    %779 = vector.shape_cast %778 : vector<8xf32> to vector<8x1xf32>
    %780 = vector.broadcast %6 : f32 to vector<8x1xf32>
    %781 = arith.addf %779, %780 : vector<8x1xf32>
    %782 = vector.extract_strided_slice %674 {offsets = [0, 5], sizes = [8, 1], strides = [1, 1]} : vector<8x8xf32> to vector<8x1xf32>
    %783 = vector.broadcast %7 : f32 to vector<8x1xf32>
    %784 = arith.mulf %781, %783 : vector<8x1xf32>
    %785 = arith.addf %782, %784 : vector<8x1xf32>
    %786 = arith.negf %785 : vector<8x1xf32>
    %787 = math.exp %786 : vector<8x1xf32>
    %cst_179 = arith.constant 1.000000e+00 : f32
    %788 = vector.broadcast %cst_179 : f32 to vector<8x1xf32>
    %789 = arith.addf %788, %787 : vector<8x1xf32>
    %790 = arith.divf %788, %789 : vector<8x1xf32>
    %c0_180 = arith.constant 0 : index
    %c5_181 = arith.constant 5 : index
    %c0_182 = arith.constant 0 : index
    %791 = vector.load %arg12[%c0_180, %c5_181, %c0_182] : memref<8x8x32xf32, #tpu.memory_space<vmem>>, vector<8x1x32xf32>
    %792 = vector.shape_cast %791 : vector<8x1x32xf32> to vector<8x32xf32>
    %793 = vector.broadcast %790 : vector<8x1xf32> to vector<8x32xf32>
    %794 = arith.mulf %792, %793 : vector<8x32xf32>
    %795 = arith.addf %774, %794 : vector<8x32xf32>
    %c0_183 = arith.constant 0 : index
    %c6_184 = arith.constant 6 : index
    %c0_185 = arith.constant 0 : index
    %796 = vector.load %arg13[%c0_183, %c6_184, %c0_185] : memref<8x8x32xf32, #tpu.memory_space<vmem>>, vector<8x1x32xf32>
    %797 = vector.shape_cast %796 : vector<8x1x32xf32> to vector<8x32xf32>
    %798 = arith.mulf %795, %797 : vector<8x32xf32>
    %cst_186 = arith.constant dense<0.000000e+00> : vector<8xf32>
    %799 = vector.multi_reduction <add>, %798, %cst_186 [1] : vector<8x32xf32> to vector<8xf32>
    %800 = vector.shape_cast %799 : vector<8xf32> to vector<8x1xf32>
    %801 = vector.broadcast %6 : f32 to vector<8x1xf32>
    %802 = arith.addf %800, %801 : vector<8x1xf32>
    %803 = vector.extract_strided_slice %674 {offsets = [0, 6], sizes = [8, 1], strides = [1, 1]} : vector<8x8xf32> to vector<8x1xf32>
    %804 = vector.broadcast %7 : f32 to vector<8x1xf32>
    %805 = arith.mulf %802, %804 : vector<8x1xf32>
    %806 = arith.addf %803, %805 : vector<8x1xf32>
    %807 = arith.negf %806 : vector<8x1xf32>
    %808 = math.exp %807 : vector<8x1xf32>
    %cst_187 = arith.constant 1.000000e+00 : f32
    %809 = vector.broadcast %cst_187 : f32 to vector<8x1xf32>
    %810 = arith.addf %809, %808 : vector<8x1xf32>
    %811 = arith.divf %809, %810 : vector<8x1xf32>
    %c0_188 = arith.constant 0 : index
    %c6_189 = arith.constant 6 : index
    %c0_190 = arith.constant 0 : index
    %812 = vector.load %arg12[%c0_188, %c6_189, %c0_190] : memref<8x8x32xf32, #tpu.memory_space<vmem>>, vector<8x1x32xf32>
    %813 = vector.shape_cast %812 : vector<8x1x32xf32> to vector<8x32xf32>
    %814 = vector.broadcast %811 : vector<8x1xf32> to vector<8x32xf32>
    %815 = arith.mulf %813, %814 : vector<8x32xf32>
    %816 = arith.addf %795, %815 : vector<8x32xf32>
    %c0_191 = arith.constant 0 : index
    %c7_192 = arith.constant 7 : index
    %c0_193 = arith.constant 0 : index
    %817 = vector.load %arg13[%c0_191, %c7_192, %c0_193] : memref<8x8x32xf32, #tpu.memory_space<vmem>>, vector<8x1x32xf32>
    %818 = vector.shape_cast %817 : vector<8x1x32xf32> to vector<8x32xf32>
    %819 = arith.mulf %816, %818 : vector<8x32xf32>
    %cst_194 = arith.constant dense<0.000000e+00> : vector<8xf32>
    %820 = vector.multi_reduction <add>, %819, %cst_194 [1] : vector<8x32xf32> to vector<8xf32>
    %821 = vector.shape_cast %820 : vector<8xf32> to vector<8x1xf32>
    %822 = vector.broadcast %6 : f32 to vector<8x1xf32>
    %823 = arith.addf %821, %822 : vector<8x1xf32>
    %824 = vector.extract_strided_slice %674 {offsets = [0, 7], sizes = [8, 1], strides = [1, 1]} : vector<8x8xf32> to vector<8x1xf32>
    %825 = vector.broadcast %7 : f32 to vector<8x1xf32>
    %826 = arith.mulf %823, %825 : vector<8x1xf32>
    %827 = arith.addf %824, %826 : vector<8x1xf32>
    %828 = arith.negf %827 : vector<8x1xf32>
    %829 = math.exp %828 : vector<8x1xf32>
    %cst_195 = arith.constant 1.000000e+00 : f32
    %830 = vector.broadcast %cst_195 : f32 to vector<8x1xf32>
    %831 = arith.addf %830, %829 : vector<8x1xf32>
    %832 = arith.divf %830, %831 : vector<8x1xf32>
    %833 = tpu.concatenate %685, %706, %727, %748, %769, %790, %811, %832 in 1 : vector<8x1xf32>, vector<8x1xf32>, vector<8x1xf32>, vector<8x1xf32>, vector<8x1xf32>, vector<8x1xf32>, vector<8x1xf32>, vector<8x1xf32> -> vector<8x8xf32>
    %c0_196 = arith.constant 0 : index
    %c0_197 = arith.constant 0 : index
    %834 = vector.load %arg10[%c0_196, %c0_197] : memref<8x8xf32, #tpu.memory_space<vmem>>, vector<8x8xf32>
    tpu.vector_store %arg10[%c0_196, %c0_197], %833 {strides = array<i32>} : memref<8x8xf32, #tpu.memory_space<vmem>>, vector<8x8xf32>,
    return
  }
  func.func @transform_0(%arg0: i32) -> (i32, i32, i32) {
    %c0_i32 = arith.constant 0 : i32
    %c0_i32_0 = arith.constant 0 : i32
    %c0_i32_1 = arith.constant 0 : i32
    return %arg0, %c0_i32, %c0_i32_0 : i32, i32, i32
  }
  func.func @transform_1(%arg0: i32) -> (i32, i32) {
    %c0_i32 = arith.constant 0 : i32
    %c0_i32_0 = arith.constant 0 : i32
    return %arg0, %c0_i32 : i32, i32
  }
  func.func @transform_2(%arg0: i32) -> (i32, i32) {
    %c0_i32 = arith.constant 0 : i32
    %c0_i32_0 = arith.constant 0 : i32
    %c0_i32_1 = arith.constant 0 : i32
    return %c0_i32, %c0_i32_0 : i32, i32
  }
  func.func @transform_3(%arg0: i32) -> (i32, i32) {
    %c0_i32 = arith.constant 0 : i32
    %c0_i32_0 = arith.constant 0 : i32
    %c0_i32_1 = arith.constant 0 : i32
    return %c0_i32, %c0_i32_0 : i32, i32
  }
  func.func @transform_4(%arg0: i32) -> (i32, i32) {
    %c0_i32 = arith.constant 0 : i32
    %c0_i32_0 = arith.constant 0 : i32
    %c0_i32_1 = arith.constant 0 : i32
    return %c0_i32, %c0_i32_0 : i32, i32
  }
  func.func @transform_5(%arg0: i32) -> (i32, i32) {
    %c0_i32 = arith.constant 0 : i32
    %c0_i32_0 = arith.constant 0 : i32
    %c0_i32_1 = arith.constant 0 : i32
    return %c0_i32, %c0_i32_0 : i32, i32
  }
  func.func @transform_6(%arg0: i32) -> (i32, i32) {
    %c0_i32 = arith.constant 0 : i32
    %c0_i32_0 = arith.constant 0 : i32
    %c0_i32_1 = arith.constant 0 : i32
    return %c0_i32, %c0_i32_0 : i32, i32
  }
  func.func @transform_7(%arg0: i32) -> (i32, i32) {
    %c0_i32 = arith.constant 0 : i32
    %c0_i32_0 = arith.constant 0 : i32
    %c0_i32_1 = arith.constant 0 : i32
    return %c0_i32, %c0_i32_0 : i32, i32
  }
  func.func @transform_8(%arg0: i32) -> i32 {
    %c0_i32 = arith.constant 0 : i32
    %c0_i32_0 = arith.constant 0 : i32
    return %c0_i32 : i32
  }
  func.func @transform_9(%arg0: i32) -> (i32, i32) {
    %c0_i32 = arith.constant 0 : i32
    %c0_i32_0 = arith.constant 0 : i32
    return %arg0, %c0_i32 : i32, i32
  }
}

</mosaic_0001>

<bundles_post_ra>
// kernel: tpu_custom_call.1
= control target key start
LH: loop header
LB: loop body
LE: loop exit
PB: predicated region body
PF: predicated region fallthrough
CT: control target
= control target key end

     0   :  { %14 = vsyncpa [#allocation6], 0  ;;  %s8792_s0 = inlined_call_operand.hbm [shape: bf16[8,8,32], index: 0, kind: input, shape index: {}]   ;;  %s8793_s1 = inlined_call_operand.vmem [shape: s32[8,2], index: 1, kind: input, shape index: {}]   ;;  %s8794_s2 = inlined_call_operand.vmem [shape: bf16[32,128], index: 2, kind: input, shape index: {}]   ;;  %s8795_s3 = inlined_call_operand.hbm [shape: bf16[32,128], index: 3, kind: input, shape index: {}]   ;;  %s8796_s4 = inlined_call_operand.vmem [shape: f32[1,128], index: 4, kind: input, shape index: {}]   ;;  %s8797_s5 = inlined_call_operand.hbm [shape: f32[32,96], index: 5, kind: input, shape index: {}]   ;;  %s8798_s6 = inlined_call_operand.vmem [shape: f32[2,32], index: 6, kind: input, shape index: {}]   ;;  %s8799_s7 = inlined_call_operand.vmem [shape: f32[1,8], index: 7, kind: input, shape index: {}]   ;;  %s8800_s8 = inlined_call_operand.vmem [shape: f32[8], index: 8, kind: input, shape index: {}]   ;;  %s8801_s9 = inlined_call_operand.hbm [shape: f32[8,8], index: 9, kind: output, shape index: {}]  }
   0x1   :  { %15 = vsyncpa [#allocation10], 0 }
   0x2   :  { %16 = vsyncpa [#allocation8], 0 }
   0x3   :  { %17 = vsyncpa [#allocation7], 0  ;;  %s6627_s30 = smov [#allocation9]   ;;  %s6628_s11 = smov [#allocation5]  }
   0x4   :  { %s39_s10 = sshll.u32 %s6627_s30, 4  ;;  %s23_s12 = sshll.u32 %s6628_s11, 4  ;;  %s40_s10 = int_to_ptr.vmem [resolvable:$true] %s39_s10  ;;  %s6708_s12 = int_to_ptr.vmem [resolvable:$true] %s23_s12 }
   0x5   :  { %s6519_s15 = scalar_lea.hbm %s8795_s3, 256 }
   0x6   :  { %p6520_p0 = scmp.ne.s32.totalorder %s8795_s3, %s6519_s15  ;;  %p6523_p1 = scmp.lt.u32.totalorder %s6519_s15, %s8795_s3 }
   0x8   :  { %p6525_p2 = pnand %p6523_p1, %p6520_p0 }
   0xa   :  { %6528 = shalt.err (!%p6525_p2)
}
   0xb   :  { %s6529_s20 = scalar_lea.vmem %s40_s10, 256  ;;  %p6534_p4 = scmp.lt.s32.totalorder %s40_s10, %s40_s10 }
   0xc   :  { %p6530_p3 = scmp.ne.s32.totalorder %s40_s10, %s6529_s20  ;;  %p6535_p5 = scmp.lt.s32.totalorder %s6529_s20, %s6529_s20 }
   0xe   :  { %p6536_p6 = por %p6535_p5, %p6534_p4 }
  0x10   :  { %p6537_p7 = pnand %p6536_p6, %p6530_p3 }
  0x12   :  { %6540 = shalt.err (!%p6537_p7)
}
  0x13   :  { %s6629_s21 = smov 64   ;;  %s6630_s22 = smov 4  }
  0x14   :  { %45 = dma.hbm_to_vmem [thread:$0]  %s8795_s3, 256, %s40_s10, [#allocation10], %s6629_s21, %s6629_s21, %s6630_s22  }
  0x15   :  { %s6541_s27 = scalar_lea.hbm %s8792_s0, 512 }
  0x16   :  { %p6542_p8 = scmp.ne.s32.totalorder %s8792_s0, %s6541_s27  ;;  %p6545_p9 = scmp.lt.u32.totalorder %s6541_s27, %s8792_s0 }
  0x18   :  { %p6547_p10 = pnand %p6545_p9, %p6542_p8 }
  0x1a   :  { %6550 = shalt.err (!%p6547_p10)
}
  0x1b   :  { %s6551_s13 = scalar_lea.vmem %s6708_s12, 512  ;;  %p6556_p12 = scmp.lt.s32.totalorder %s6708_s12, %s6708_s12 }
  0x1c   :  { %p6552_p11 = scmp.ne.s32.totalorder %s6708_s12, %s6551_s13  ;;  %p6557_p13 = scmp.lt.s32.totalorder %s6551_s13, %s6551_s13 }
  0x1e   :  { %p6558_p0 = por %p6557_p13, %p6556_p12 }
  0x20   :  { %p6559_p1 = pnand %p6558_p0, %p6552_p11 }
  0x22   :  { %6562 = shalt.err (!%p6559_p1)
}
  0x23   :  { %29 = dma.hbm_to_vmem [thread:$0]  %s8792_s0, 512, %s6708_s12, [#allocation6], %s6629_s21, %s6629_s21, %s6630_s22  }
  0x24   :  { %s6631_s14 = smov [#allocation11]   ;;  %s70_s18 = sshll.u32 %s8800_s8, 4  ;;  %s71_s18 = int_to_ptr.vmem [resolvable:$true] %s70_s18 }
  0x25   :  { %s53_s15 = sshll.u32 %s6631_s14, 4  ;;  %s6563_s23 = scalar_lea.hbm %s8797_s5, 512  ;;  %s54_s15 = int_to_ptr.vmem [resolvable:$true] %s53_s15 }
  0x26   :  { %p6564_p2 = scmp.ne.s32.totalorder %s8797_s5, %s6563_s23  ;;  %p6567_p3 = scmp.lt.u32.totalorder %s6563_s23, %s8797_s5 }
  0x28   :  { %p6569_p4 = pnand %p6567_p3, %p6564_p2 }
  0x2a   :  { %6572 = shalt.err (!%p6569_p4)
}
  0x2b   :  { %s6573_s0 = scalar_lea.vmem %s54_s15, 512  ;;  %p6578_p6 = scmp.lt.s32.totalorder %s54_s15, %s54_s15 }
  0x2c   :  { %p6574_p5 = scmp.ne.s32.totalorder %s54_s15, %s6573_s0  ;;  %p6579_p7 = scmp.lt.s32.totalorder %s6573_s0, %s6573_s0 }
  0x2e   :  { %p6580_p8 = por %p6579_p7, %p6578_p6 }
  0x30   :  { %p6581_p9 = pnand %p6580_p8, %p6574_p5 }
  0x32   :  { %6584 = shalt.err (!%p6581_p9)
}
  0x33   :  { %s6632_s8 = smov 128   ;;  %s6633_s12 = smov 8  }
  0x34   :  { %59 = dma.hbm_to_vmem [thread:$0]  %s8797_s5, 512, %s54_s15, [#allocation10], %s6632_s8, %s6632_s8, %s6633_s12  }
  0x35   :  { %s6585_s30 = scalar_lea.vmem %s71_s18, 16  ;;  %p6590_p11 = scmp.lt.s32.totalorder %s71_s18, %s71_s18 }
  0x36   :  { %p6586_p10 = scmp.ne.s32.totalorder %s71_s18, %s6585_s30  ;;  %p6591_p12 = scmp.lt.s32.totalorder %s6585_s30, %s6585_s30 }
  0x38   :  { %p6592_p13 = por %p6591_p12, %p6590_p11 }
  0x3a   :  { %p6593_p0 = pnand %p6592_p13, %p6586_p10 }
  0x3c   :  { %6596 = shalt.err (!%p6593_p0)
}
  0x3d   :  { %s6634_s11 = smov [#allocation12]  }
  0x3e   :  { %73 = dma.vmem_to_smem %s71_s18, 16, %s6634_s11, [#allocation8]  }
  0x3f   :  { %6619 = dma.done.wait [#allocation6], 512  }
  0x40   :  { %6620 = vsyncadd [#allocation6], 4294966784 }
  0x41   :  { %6621 = dma.done.wait [#allocation10], 768  }
  0x42   :  { %6622 = vsyncadd [#allocation10], 4294966528 }
  0x43   :  { %6623 = dma.done.wait [#allocation8], 16  }
  0x44   :  { %6624 = vsyncadd [#allocation8], 4294967280 }
  0x45   :  { %86 = sfence }
  0x46   :  { %v6108_v0 = vld [vmem:[%s8794_s2] sm:$0xff]   ;;  %v6109_v1 = vld [vmem:[%s8794_s2 + $0x8] sm:$0xff]   ;;  %vm145_vm0 = vcmask 261120   ;;  %v6112_v3 = vld [vmem:[#allocation5 + $0x10] sm:$0xff]   ;;  %v8804_v7 = vmov 0.0   ;;  %vm6636_vm1 = vmmov 0  }
  0x47   :  { %5894 = vmatprep.subr.bf16.mxu0 %v6108_v0  ;;  %6032 = vmatprep.subr.bf16.mxu1 %v6108_v0  ;;  %v6110_v2 = vld [vmem:[#allocation5] sm:$0xff]   ;;  %v6111_v4 = vld [vmem:[#allocation5 + $0x8] sm:$0xff]   ;;  %v6113_v5 = vld [vmem:[#allocation5 + $0x18] sm:$0xff]   ;;  %v8802_v9 = vmov 0.0|0.0   ;;  %v6638_v10 = vmov 0   ;;  %vm323_vm2 = vcmask 1041409  }
  0x48   :  { %5895 = vmatpush3.bf16.msra.mxu0 %v6108_v0  ;;  %6034 = vmatpush3.bf16.msra.mxu1 %v6108_v0  ;;  %v6768_v6 = vld [vmem:[#allocation9] sm:$0xff]   ;;  %v6775_v8 = vld [vmem:[#allocation9 + $0x8] sm:$0xff]   ;;  %vm326_vm3 = vcmask 1042434   ;;  %vm329_vm4 = vcmask 1043459   ;;  %vm332_vm5 = vcmask 1044484   ;;  %vm335_vm6 = vcmask 1045509  }
  0x49   :  { %5896 = vmatprep.subr.bf16.mxu0 %v6109_v1  ;;  %6033 = vmatprep.subr.bf16.mxu1 %v6109_v1  ;;  %v96_v11 = vld [vmem:[%s8793_s1] sm:$0xff]  ;;  %vm338_vm7 = vcmask 1046534   ;;  %vm341_vm8 = vcmask 1047559   ;;  %s6641_s17 = smov 16   ;;  %s6642_s18 = smov 32   ;;  %vm448_vm10 = vcmask 130048  }
  0x4a   :  { %5898 = vmatprep.mubr.msk.bf16.mxu0 %vm145_vm0, %v6110_v2  ;;  %5902 = vmatprep.mubr.msk.bf16.mxu1 %vm145_vm0, %v6112_v3  ;;  %v5729_v12 = vld [vmem:[%s8796_s4] ss:$0 sm:$0xff]  ;;  %s6640_s4 = smov 96   ;;  %s6643_s19 = smov 80   ;;  %vm2124_vm11 = vcmask 1040384   ;;  %vm2133_vm12 = vcmask 1041408  }
  0x4b   :  { %6067 = vset.pattern.permute.xlu1 %v6638_v10  ;;  %vm2142_vm13 = vcmask 1042432   ;;  %vm2151_vm14 = vcmask 1043456   ;;  %vm2160_vm15 = vcmask 1044480   ;;  %s5725_s25 = sld [smem:[#allocation12 + $0x1]]  ;;  %s97_s26 = sld [smem:[#allocation12]] }
  0x4c   :  { %5897 = vmatpush3.bf16.msra.mxu0 %v6109_v1  ;;  %6035 = vmatpush3.bf16.msra.mxu1 %v6109_v1  ;;  %s5727_s27 = sld [smem:[#allocation12 + $0x3]]  ;;  %s5726_s0 = sld [smem:[#allocation12 + $0x2]] }
  0x4d   :  { %5906 = vmatprep.subr.bf16.mxu1 %v8804_v7  ;;  %5922 = vmatprep.subr.bf16.mxu0 %v8804_v7  ;;  %s6651_s8 = smov 1   ;;  %s6652_s12 = smov 2  }
  0x4e   :  { %234 = vperm.xlu1 %6067, %v96_v11   ;;  %s6653_s28 = smov 3   ;;  %s6654_s29 = smov 5  }
  0x4f   :  { %5899 = vmatmul.mubr.msk.bf16.vlgmr.msra.gmra.mrb[0].mxu0 %vm145_vm0, %v6111_v4  ;;  %5903 = vmatmul.mubr.msk.bf16.vlgmr.msra.gmra.mrb[0].mxu1 %vm145_vm0, %v6113_v5  ;;  %s6655_s30 = smov 6   ;;  %s6657_s11 = smov [#allocation13]  }
  0x50   :  { %5907 = vmatpush3.bf16.msra.mxu1 %v6768_v6  ;;  %5910 = vmatprep.mubr.msk.bf16.mxu1 %vm6636_vm1, %v8804_v7  ;;  %s5714_s13 = sshll.u32 %s6657_s11, 4  ;;  %s5715_s13 = int_to_ptr.vmem [resolvable:$true] %s5714_s13 }
  0x51   :  { %5908 = vmatprep.subr.bf16.mxu1 %v8804_v7  ;;  %5923 = vmatpush3.bf16.msra.mxu0 %v6768_v6  ;;  %s6597_s3 = scalar_lea.vmem %s5715_s13, 128  ;;  %p6602_p2 = scmp.lt.s32.totalorder %s5715_s13, %s5715_s13 }
  0x52   :  { %5924 = vmatprep.subr.bf16.mxu0 %v8804_v7  ;;  %5926 = vmatprep.mubr.msk.bf16.mxu0 %vm6636_vm1, %v8804_v7  ;;  %p6598_p1 = scmp.ne.s32.totalorder %s5715_s13, %s6597_s3  ;;  %p6603_p3 = scmp.lt.s32.totalorder %s6597_s3, %s6597_s3 }
  0x54   :  { %5909 = vmatpush3.bf16.msra.mxu1 %v6775_v8  ;;  %p6604_p4 = por %p6603_p3, %p6602_p2 }
  0x55   :  { %5914 = vmatprep.subr.bf16.mxu1 %v8804_v7  ;;  %5925 = vmatpush3.bf16.msra.mxu0 %v6775_v8 }
  0x56   :  { %5938 = vmatprep.subr.bf16.mxu0 %v8804_v7  ;;  %p6605_p5 = pnand %p6604_p4, %p6598_p1 }
  0x57   :  { %5911 = vmatmul.mubr.bf16.vlgmr.msra.gmra.mrb[4].mxu1 %v8802_v9 }
  0x58   :  { %5915 = vmatpush3.bf16.msra.mxu1 %v6768_v6  ;;  %5918 = vmatprep.mubr.msk.bf16.mxu1 %vm6636_vm1, %v8804_v7 }
  0x59   :  { %5916 = vmatprep.subr.bf16.mxu1 %v8804_v7 }
  0x5c   :  { %5917 = vmatpush3.bf16.msra.mxu1 %v6775_v8 }
  0x5d   :  { %5930 = vmatprep.subr.bf16.mxu1 %v8804_v7 }
 0x122   :  { %v5900_v13 = vpop.f32.mrb[0].mxu0  ;;  %v5904_v14 = vpop.f32.mrb[0].mxu1 }
 0x123   :  { %v201_v15 = vadd.f32 %v5900_v13, %v5729_v12  ;;  %v192_v16 = vpop.f32.mrb[1].mxu0  ;;  %v217_v17 = vadd.f32 %v5904_v14, %v5729_v12  ;;  %v208_v18 = vpop.f32.mrb[1].mxu1 }
 0x124   :  { %v193_v19 = vadd.f32 %v5729_v12, %v192_v16  ;;  %v5901_v20 = vpop.f32.mrb[2].mxu0  ;;  %v209_v21 = vadd.f32 %v5729_v12, %v208_v18  ;;  %v5905_v22 = vpop.f32.mrb[2].mxu1 }
 0x125   :  { %225 = vst [vmem:[#allocation2 + $0x10] sm:$0xff] %v201_v15  ;;  %229 = vst [vmem:[#allocation2 + $0x30] sm:$0xff] %v217_v17  ;;  %v204_v23 = vadd.f32 %v5901_v20, %v5729_v12  ;;  %v195_v24 = vpop.f32.mrb[3].mxu0  ;;  %v220_v25 = vadd.f32 %v5905_v22, %v5729_v12  ;;  %v211_v26 = vpop.f32.mrb[3].mxu1  ;;  %v6639_v20 = vmov 7  }
 0x126   :  { %223 = vst [vmem:[#allocation2] sm:$0xff] %v193_v19  ;;  %227 = vst [vmem:[#allocation2 + $0x20] sm:$0xff] %v209_v21  ;;  %v196_v27 = vadd.f32 %v5729_v12, %v195_v24  ;;  %v212_v28 = vadd.f32 %v5729_v12, %v211_v26  ;;  %6068 = vset.pattern.permute.xlu1 %v6639_v20  ;;  %6069 = vset.pattern.permute.xlu0 %v6639_v20 }
 0x127   :  { %226 = vst [vmem:[#allocation2 + $0x18] sm:$0xff] %v204_v23  ;;  %230 = vst [vmem:[#allocation2 + $0x38] sm:$0xff] %v220_v25 }
 0x128   :  { %224 = vst [vmem:[#allocation2 + $0x8] sm:$0xff] %v196_v27  ;;  %228 = vst [vmem:[#allocation2 + $0x28] sm:$0xff] %v212_v28 }
 0x12a   :  { %v300_v29 = vpop.f32.mrb[4].mxu1 }
 0x12b   :  { %v5912_v30 = vpop.f32.mrb[5].mxu1 }
 0x12c   :  { %v308_v31 = vld [vmem:[#allocation2 + $0x10] sm:$0x1]  ;;  %v371_v32 = vld [vmem:[#allocation2 + $0x17] sm:$0x1]  ;;  %v303_v52 = vpop.f32.mrb[6].mxu1 }
 0x12d   :  { %v310_v35 = vld [vmem:[#allocation2 + $0x20] sm:$0x1]  ;;  %v312_v40 = vld [vmem:[#allocation2 + $0x30] sm:$0x1]  ;;  %v325_v41 = vrot.slane %v308_v31, 6  ;;  %v387_v51 = vrot.slane %v371_v32, 6  ;;  %v235_v31 = vpop.permute.xlu1 %234 }
 0x12e   :  { %v309_v34 = vld [vmem:[#allocation2 + $0x18] sm:$0x1]  ;;  %v306_v36 = vld [vmem:[#allocation2] sm:$0x1]  ;;  %v372_v42 = vld [vmem:[#allocation2 + $0x1f] sm:$0x1] }
 0x12f   :  { %v307_v33 = vld [vmem:[#allocation2 + $0x8] sm:$0x1]  ;;  %v370_v38 = vld [vmem:[#allocation2 + $0xf] sm:$0x1]  ;;  %v328_v44 = vrot.slane %v309_v34, 5  ;;  %v331_v45 = vrot.slane %v310_v35, 4 }
 0x130   :  { %v322_v37 = vrot.slane %v307_v33, 7  ;;  %v311_v39 = vld [vmem:[#allocation2 + $0x28] sm:$0x1]  ;;  %v373_v46 = vld [vmem:[#allocation2 + $0x27] sm:$0x1]  ;;  %v385_v47 = vrot.slane %v370_v38, 7 }
 0x131   :  { %v369_v49 = vld [vmem:[#allocation2 + $0x7] sm:$0x1]  ;;  %v374_v50 = vld [vmem:[#allocation2 + $0x2f] sm:$0x1]  ;;  %v334_v54 = vrot.slane %v311_v39, 3  ;;  %v389_v57 = vrot.slane %v372_v42, 5 }
 0x132   :  { %v324_v43 = vsel %vm323_vm2, %v322_v37, %v306_v36  ;;  %v375_v55 = vld [vmem:[#allocation2 + $0x37] sm:$0x1]  ;;  %v386_v56 = vsel %vm323_vm2, %v385_v47, %v369_v49  ;;  %v5913_v58 = vpop.f32.mrb[7].mxu1  ;;  %v376_v60 = vld [vmem:[#allocation2 + $0x3f] sm:$0x1]  ;;  %v391_v62 = vrot.slane %v373_v46, 4 }
 0x133   :  { %v327_v48 = vsel %vm326_vm3, %v325_v41, %v324_v43  ;;  %v388_v61 = vsel %vm326_vm3, %v387_v51, %v386_v56  ;;  %v313_v63 = vld [vmem:[#allocation2 + $0x38] sm:$0x1]  ;;  %v337_v1 = vrot.slane %v312_v40, 2  ;;  %v393_v3 = vrot.slane %v374_v50, 3  ;;  %v498_v20 = vld [vmem:[#allocation2 + $0x21] sm:$0x1] }
 0x134   :  { %v330_v53 = vsel %vm329_vm4, %v328_v44, %v327_v48  ;;  %v390_v2 = vsel %vm329_vm4, %v389_v57, %v388_v61  ;;  %v395_v5 = vrot.slane %v375_v55, 2  ;;  %v397_v13 = vrot.slane %v376_v60, 1  ;;  %v495_v61 = vld [vmem:[#allocation2 + $0x9] sm:$0x1] }
 0x135   :  { %v333_v59 = vsel %vm332_vm5, %v331_v45, %v330_v53  ;;  %v392_v4 = vsel %vm332_vm5, %v391_v62, %v390_v2  ;;  %v340_v14 = vrot.slane %v313_v63, 1  ;;  %v551_v62 = vld [vmem:[#allocation2 + $0xe] sm:$0x1]  ;;  %v510_v63 = vrot.slane %v495_v61, 7  ;;  %v552_v2 = vld [vmem:[#allocation2 + $0x16] sm:$0x1] }
 0x136   :  { %v336_v0 = vsel %vm335_vm6, %v334_v54, %v333_v59  ;;  %v394_v12 = vsel %vm335_vm6, %v393_v3, %v392_v4  ;;  %v494_v3 = vld [vmem:[#allocation2 + $0x1] sm:$0x1]  ;;  %v550_v4 = vld [vmem:[#allocation2 + $0x6] sm:$0x1] }
 0x137   :  { %v339_v11 = vsel %vm338_vm7, %v337_v1, %v336_v0  ;;  %v396_v15 = vsel %vm338_vm7, %v395_v5, %v394_v12  ;;  %v566_v0 = vrot.slane %v551_v62, 7  ;;  %v496_v1 = vld [vmem:[#allocation2 + $0x11] sm:$0x1]  ;;  %v511_v5 = vsel %vm323_vm2, %v510_v63, %v494_v3  ;;  %v497_v12 = vld [vmem:[#allocation2 + $0x19] sm:$0x1] }
 0x138   :  { %v6815_v16 = vsel %vm341_vm8, %v397_v13, %v396_v15  ;;  %v6818_v17 = vsel %vm341_vm8, %v340_v14, %v339_v11  ;;  %v512_v13 = vrot.slane %v496_v1, 6  ;;  %v553_v14 = vld [vmem:[#allocation2 + $0x1e] sm:$0x1]  ;;  %v568_v15 = vrot.slane %v552_v2, 6 }
 0x139   :  { %v400_v18 = vadd.f32 %v6815_v16, %v300_v29  ;;  %v344_v19 = vadd.f32 %v6818_v17, %v300_v29  ;;  %v231_v29 = vlaneseq  ;;  %v567_v11 = vsel %vm323_vm2, %v566_v0, %v550_v4 }
 0x13a   :  { %v6644_v0 = vmov 6  }
 0x13b   :  { %6116 = vtanh.f32 %v400_v18  ;;  %v5745_v23 = vmul.f32 -1.442695, %v400_v18  ;;  %v5744_v24 = vmul.f32 -1.442695, %v344_v19  ;;  %v6825_v30 = vand.u32 127, %v231_v29 }
 0x13c   :  { %6118 = vtanh.f32 %v344_v19  ;;  %v513_v18 = vsel %vm326_vm3, %v512_v13, %v511_v5  ;;  %v569_v19 = vsel %vm326_vm3, %v568_v15, %v567_v11 }
 0x13d   :  { %6120 = vpow2.f32 %v5745_v23  ;;  %vm236_vm9 = vcmp.lt.s32.totalorder %v6825_v30, %v235_v31  ;;  %v570_v23 = vrot.slane %v553_v14, 5 }
 0x13e   :  { %6122 = vpow2.f32 %v5744_v24  ;;  %v6830_v36 = vsel %vm236_vm9, 1.0, %v8804_v7  ;;  %vm2169_vm9 = vcmask 1045504  }
 0x13f   :  { %v6835_v39 = vsub.f32 1.0, %v6830_v36 }
 0x145   :  { %v6117_v21 = vpop.eup %6116 }
 0x146   :  { %410 = vrot.lane.b32.xlu0 %v6117_v21, %s6640_s4  ;;  %v6119_v22 = vpop.eup %6118  ;;  %v514_v21 = vrot.slane %v497_v12, 5 }
 0x147   :  { %v6121_v25 = vpop.eup %6120 }
 0x148   :  { %v404_v26 = vadd.f32 1.0, %v6121_v25  ;;  %v6123_v27 = vpop.eup %6122  ;;  %v515_v24 = vsel %vm329_vm4, %v514_v21, %v513_v18  ;;  %v571_v25 = vsel %vm329_vm4, %v570_v23, %v569_v19 }
 0x149   :  { %v348_v28 = vadd.f32 1.0, %v6123_v27  ;;  %v516_v27 = vrot.slane %v498_v20, 4 }
 0x14a   :  { %354 = vrot.lane.b32.xlu0 %v6119_v22, %s6640_s4  ;;  %6124 = vrcp.f32 %v404_v26  ;;  %v554_v22 = vld [vmem:[#allocation2 + $0x26] sm:$0x1]  ;;  %v499_v26 = vld [vmem:[#allocation2 + $0x29] sm:$0x1] }
 0x14b   :  { %6126 = vrcp.f32 %v348_v28  ;;  %v555_v28 = vld [vmem:[#allocation2 + $0x2e] sm:$0x1]  ;;  %v572_v31 = vrot.slane %v554_v22, 4 }
 0x154   :  { %v6125_v32 = vpop.eup %6124 }
 0x155   :  { %v6127_v35 = vpop.eup %6126  ;;  %v408_v40 = vmul.f32 0.0, %v6125_v32 }
 0x156   :  { %v352_v43 = vmul.f32 0.0, %v6127_v35 }
 0x1b8   :  { %v411_v33 = vpop.permute.xlu0 %410 }
 0x1b9   :  { %v413_v34 = vmul.f32 %v6125_v32, %v411_v33  ;;  %v573_v33 = vsel %vm332_vm5, %v572_v31, %v571_v25 }
 0x1bb   :  { %415 = vrot.lane.b32.xlu1 %v413_v34, %s6641_s17  ;;  %v500_v34 = vld [vmem:[#allocation2 + $0x31] sm:$0x1] }
 0x1bc   :  { %v355_v37 = vpop.permute.xlu0 %354 }
 0x1bd   :  { %v357_v38 = vmul.f32 %v6127_v35, %v355_v37  ;;  %v556_v37 = vld [vmem:[#allocation2 + $0x36] sm:$0x1] }
 0x1bf   :  { %427 = vperm.xlu1 %6068, %v6830_v36   ;;  %359 = vrot.lane.b32.xlu0 %v357_v38, %s6641_s17  ;;  %v574_v38 = vrot.slane %v555_v28, 3 }
 0x1c3   :  { %433 = vperm.xlu0 %6069, %v6835_v39   ;;  %6071 = vset.pattern.permute.xlu1 %v6644_v0 }
 0x1c7   :  { %6070 = vset.pattern.permute.xlu0 %v6644_v0 }
 0x22d   :  { %v416_v41 = vpop.permute.xlu1 %415 }
 0x22e   :  { %v6838_v42 = vadd.f32 %v416_v41, %v408_v40  ;;  %v575_v41 = vsel %vm335_vm6, %v574_v38, %v573_v33 }
 0x230   :  { %6128 = vtanh.f32 %v6838_v42 }
 0x231   :  { %v360_v44 = vpop.permute.xlu0 %359 }
 0x232   :  { %v6841_v45 = vadd.f32 %v360_v44, %v352_v43  ;;  %v501_v43 = vld [vmem:[#allocation2 + $0x39] sm:$0x1]  ;;  %v520_v44 = vrot.slane %v500_v34, 2 }
 0x234   :  { %6130 = vtanh.f32 %v6841_v45 }
 0x23a   :  { %v6129_v46 = vpop.eup %6128 }
 0x23b   :  { %421 = vrot.lane.b32.xlu1 %v6129_v46, %s6642_s18  ;;  %v557_v46 = vld [vmem:[#allocation2 + $0x3e] sm:$0x1] }
 0x23e   :  { %v6131_v47 = vpop.eup %6130  ;;  %v6846_v48 = vpop.permute.xlu1 %427 }
 0x23f   :  { %365 = vrot.lane.b32.xlu1 %v6131_v47, %s6642_s18  ;;  %v576_v47 = vrot.slane %v556_v37, 2  ;;  %v438_v22 = vmul.f32 %v6846_v48, %v6838_v42  ;;  %v6645_v42 = vmov 1966171168  }
 0x242   :  { %v434_v49 = vpop.permute.xlu0 %433 }
 0x243   :  { %v6848_v52 = vmul.f32 0.0, %v434_v49 }
 0x245   :  { %v6897_v23 = vadd.f32 %v438_v22, %v6848_v52 }
 0x2ad   :  { %v422_v50 = vpop.permute.xlu1 %421 }
 0x2ae   :  { %v424_v51 = vmul.f32 %v6125_v32, %v422_v50  ;;  %v517_v32 = vsel %vm332_vm5, %v516_v27, %v515_v24  ;;  %v577_v50 = vsel %vm338_vm7, %v576_v47, %v575_v41 }
 0x2b0   :  { %v430_v53 = vmul.f32 %v6846_v48, %v424_v51  ;;  %v522_v51 = vrot.slane %v501_v43, 1 }
 0x2b1   :  { %v366_v54 = vpop.permute.xlu1 %365 }
 0x2b2   :  { %v6852_v55 = vadd.f32 %v6848_v52, %v430_v53  ;;  %v6854_v56 = vmul.f32 %v6127_v35, %v366_v54  ;;  %v518_v35 = vrot.slane %v499_v26, 3  ;;  %v578_v53 = vrot.slane %v557_v46, 1 }
 0x2b3   :  { %v6910_v52 = vshrl.u32 %v231_v29, 7 }
 0x2b4   :  { %445 = vrot.lane.b32.xlu1 %v6852_v55, %s6642_s18  ;;  %441 = vrot.lane.b32.xlu0 %v6854_v56, %s6643_s19  ;;  %v519_v40 = vsel %vm335_vm6, %v518_v35, %v517_v32  ;;  %v1443_v35 = vcombine.high %v6854_v56, %v6854_v56 }
 0x2b5   :  { %v521_v49 = vsel %vm338_vm7, %v520_v44, %v519_v40 }
 0x326   :  { %v442_v57 = vpop.permute.xlu0 %441  ;;  %v446_v58 = vpop.permute.xlu1 %445 }
 0x327   :  { %v449_v59 = vsel %vm448_vm10, %v442_v57, %v446_v58  ;;  %v6881_v57 = vsel %vm341_vm8, %v522_v51, %v521_v49  ;;  %v6884_v58 = vsel %vm341_vm8, %v578_v53, %v577_v50 }
 0x328   :  { %v450_v60 = vpack.c.bf16 %v449_v59, %v449_v59 }
 0x32a   :  { %5919 = vmatmul.mubr.msk.bf16.vlgmr.msra.gmra.mrb[8].mxu1 %vm145_vm0, %v450_v60 }
 0x32b   :  { %5931 = vmatpush3.bf16.msra.mxu1 %v6768_v6  ;;  %5934 = vmatprep.mubr.msk.bf16.mxu1 %vm6636_vm1, %v8804_v7 }
 0x32c   :  { %5932 = vmatprep.subr.bf16.mxu1 %v8804_v7 }
 0x32f   :  { %5933 = vmatpush3.bf16.msra.mxu1 %v6775_v8 }
 0x330   :  { %5946 = vmatprep.subr.bf16.mxu1 %v8804_v7 }
 0x3fd   :  { %v488_v54 = vpop.f32.mrb[8].mxu1 }
 0x3fe   :  { %v525_v59 = vadd.f32 %v6881_v57, %v488_v54  ;;  %v581_v60 = vadd.f32 %v6884_v58, %v488_v54  ;;  %v5920_v61 = vpop.f32.mrb[9].mxu1 }
 0x3ff   :  { %v491_v62 = vpop.f32.mrb[10].mxu1 }
 0x400   :  { %6132 = vtanh.f32 %v525_v59  ;;  %v5921_v63 = vpop.f32.mrb[11].mxu1  ;;  %v5747_v3 = vmul.f32 -1.442695, %v525_v59  ;;  %v5748_v4 = vmul.f32 -1.442695, %v581_v60 }
 0x401   :  { %6134 = vtanh.f32 %v581_v60  ;;  %v6934_v63 = vsub.s32 0, %v6910_v52 }
 0x402   :  { %6136 = vpow2.f32 %v5747_v3 }
 0x403   :  { %6138 = vpow2.f32 %v5748_v4 }
 0x40a   :  { %v6133_v1 = vpop.eup %6132 }
 0x40b   :  { %v6135_v2 = vpop.eup %6134  ;;  %535 = vrot.lane.b32.xlu1 %v6133_v1, %s6640_s4 }
 0x40c   :  { %591 = vrot.lane.b32.xlu0 %v6135_v2, %s6640_s4  ;;  %v6137_v5 = vpop.eup %6136 }
 0x40d   :  { %v6139_v11 = vpop.eup %6138  ;;  %v529_v12 = vadd.f32 1.0, %v6137_v5 }
 0x40e   :  { %v585_v13 = vadd.f32 1.0, %v6139_v11 }
 0x40f   :  { %6140 = vrcp.f32 %v529_v12 }
 0x410   :  { %6142 = vrcp.f32 %v585_v13 }
 0x419   :  { %v6141_v14 = vpop.eup %6140 }
 0x41a   :  { %v6143_v18 = vpop.eup %6142  ;;  %v533_v24 = vmul.f32 %v6141_v14, %v6841_v45  ;;  %v1445_v45 = vunpack.c.l.s4 %v6645_v42 }
 0x41b   :  { %v589_v25 = vmul.f32 %v6143_v18, %v6897_v23 }
 0x41c   :  { %v1446_v48 = vunpack.c.0.s8 %v1445_v45 }
 0x41e   :  { %v6913_v34 = vsub.s32 %v1446_v48, %v6910_v52 }
 0x420   :  { %v1450_v40 = vrot.slane %v6854_v56, %v6913_v34  ;;  %v1457_v41 = vrot.slane %v1443_v35, %v6913_v34 }
 0x422   :  { %v1458_v29 = vcombine.high %v1450_v40, %v1450_v40  ;;  %v1466_v49 = vrot.slane %v1450_v40, %v6913_v34  ;;  %v1459_v53 = vcombine.high %v1457_v41, %v1457_v41  ;;  %v1473_v54 = vrot.slane %v1457_v41, %v6913_v34 }
 0x424   :  { %v1480_v0 = vrot.slane %v1458_v29, %v6913_v34  ;;  %v1487_v11 = vrot.slane %v1459_v53, %v6913_v34  ;;  %v1488_v12 = vcombine.high %v1466_v49, %v1466_v49  ;;  %v1489_v13 = vcombine.high %v1473_v54, %v1473_v54  ;;  %v730_v53 = vld [vmem:[#allocation2 + $0xd] sm:$0x1] }
 0x426   :  { %v1491_v42 = vcombine.high %v1487_v11, %v1487_v11 }
 0x47d   :  { %v536_v15 = vpop.permute.xlu1 %535 }
 0x47e   :  { %v592_v19 = vpop.permute.xlu0 %591  ;;  %v538_v20 = vmul.f32 %v6141_v14, %v536_v15 }
 0x47f   :  { %v594_v21 = vmul.f32 %v6143_v18, %v592_v19 }
 0x480   :  { %540 = vrot.lane.b32.xlu1 %v538_v20, %s6641_s17 }
 0x481   :  { %596 = vrot.lane.b32.xlu0 %v594_v21, %s6641_s17  ;;  %v1490_v21 = vcombine.high %v1480_v0, %v1480_v0 }
 0x484   :  { %612 = vperm.xlu1 %6071, %v6835_v39  }
 0x485   :  { %607 = vperm.xlu0 %6070, %v6830_v36  }
 0x4f2   :  { %v541_v26 = vpop.permute.xlu1 %540 }
 0x4f3   :  { %v597_v27 = vpop.permute.xlu0 %596  ;;  %v6901_v28 = vadd.f32 %v541_v26, %v533_v24 }
 0x4f4   :  { %v6903_v31 = vadd.f32 %v597_v27, %v589_v25 }
 0x4f5   :  { %6144 = vtanh.f32 %v6901_v28 }
 0x4f6   :  { %6146 = vtanh.f32 %v6903_v31 }
 0x4ff   :  { %v6145_v32 = vpop.eup %6144 }
 0x500   :  { %v6147_v33 = vpop.eup %6146  ;;  %546 = vrot.lane.b32.xlu0 %v6145_v32, %s6642_s18 }
 0x501   :  { %602 = vrot.lane.b32.xlu1 %v6147_v33, %s6642_s18 }
 0x503   :  { %v6919_v38 = vpop.permute.xlu1 %612 }
 0x504   :  { %v6917_v37 = vpop.permute.xlu0 %607  ;;  %v615_v56 = vmul.f32 %v6919_v38, %v6852_v55 }
 0x572   :  { %v547_v43 = vpop.permute.xlu0 %546 }
 0x573   :  { %v603_v44 = vpop.permute.xlu1 %602  ;;  %v549_v46 = vmul.f32 %v6141_v14, %v547_v43 }
 0x574   :  { %v605_v47 = vmul.f32 %v6143_v18, %v603_v44 }
 0x575   :  { %v1500_v50 = vcombine.high %v549_v46, %v549_v46  ;;  %v1507_v51 = vrot.slane %v549_v46, %v6913_v34  ;;  %621 = vrot.lane.b32.xlu1 %v549_v46, %s6643_s19 }
 0x576   :  { %v610_v59 = vmul.f32 %v6917_v37, %v605_v47 }
 0x577   :  { %v1514_v60 = vrot.slane %v1500_v50, %v6913_v34  ;;  %v1515_v61 = vcombine.high %v1507_v51, %v1507_v51  ;;  %v1523_v62 = vrot.slane %v1507_v51, %v6913_v34  ;;  %v674_v51 = vld [vmem:[#allocation2 + $0xa] sm:$0x1] }
 0x578   :  { %v6937_v1 = vadd.f32 %v615_v56, %v610_v59  ;;  %v745_v56 = vrot.slane %v730_v53, 7  ;;  %v675_v59 = vld [vmem:[#allocation2 + $0x12] sm:$0x1] }
 0x579   :  { %v1516_v2 = vcombine.high %v1514_v60, %v1514_v60  ;;  %v1530_v3 = vrot.slane %v1514_v60, %v6913_v34  ;;  %v1537_v4 = vrot.slane %v1515_v61, %v6913_v34  ;;  %v1545_v5 = vcombine.high %v1523_v62, %v1523_v62  ;;  %v731_v60 = vld [vmem:[#allocation2 + $0x15] sm:$0x1]  ;;  %v673_v61 = vld [vmem:[#allocation2 + $0x2] sm:$0x1] }
 0x57a   :  { %v1847_v14 = vrot.slane %v1523_v62, %v6934_v63  ;;  %625 = vrot.lane.b32.xlu0 %v6937_v1, %s6642_s18  ;;  %v729_v62 = vld [vmem:[#allocation2 + $0x5] sm:$0x1] }
 0x57b   :  { %v1544_v15 = vrot.slane %v1516_v2, %v6913_v34  ;;  %v1546_v18 = vcombine.high %v1530_v3, %v1530_v3  ;;  %v1547_v19 = vcombine.high %v1537_v4, %v1537_v4  ;;  %v1851_v20 = vrot.slane %v1537_v4, %v6934_v63 }
 0x57c   :  { %v1855_v22 = vrot.slane %v1545_v5, %v6934_v63  ;;  %v1863_v24 = vrot.slane %v1530_v3, %v6934_v63  ;;  %v6950_v25 = vsel %vm2124_vm11, %v1466_v49, %v1847_v14  ;;  %v746_v2 = vsel %vm323_vm2, %v745_v56, %v729_v62  ;;  %v676_v3 = vld [vmem:[#allocation2 + $0x1a] sm:$0x1]  ;;  %v732_v5 = vld [vmem:[#allocation2 + $0x1d] sm:$0x1]  ;;  %v677_v14 = vld [vmem:[#allocation2 + $0x22] sm:$0x1] }
 0x57d   :  { %v1548_v26 = vcombine.high %v1544_v15, %v1544_v15  ;;  %v1859_v27 = vrot.slane %v1547_v19, %v6934_v63  ;;  %v1867_v32 = vrot.slane %v1544_v15, %v6934_v63  ;;  %v1871_v33 = vrot.slane %v1546_v18, %v6934_v63  ;;  %v733_v18 = vld [vmem:[#allocation2 + $0x25] sm:$0x1] }
 0x57e   :  { %v6956_v45 = vsel %vm2124_vm11, %v1480_v0, %v1851_v20  ;;  %v6959_v48 = vsel %vm2124_vm11, %v1473_v54, %v1863_v24  ;;  %v6962_v35 = vsel %vm2124_vm11, %v1488_v12, %v1855_v22  ;;  %v689_v54 = vrot.slane %v674_v51, 7  ;;  %v678_v22 = vld [vmem:[#allocation2 + $0x2a] sm:$0x1]  ;;  %v680_v51 = vld [vmem:[#allocation2 + $0x3a] sm:$0x1] }
 0x57f   :  { %v1875_v40 = vrot.slane %v1548_v26, %v6934_v63  ;;  %v6966_v41 = vsel %vm2124_vm11, %v1489_v13, %v1871_v33  ;;  %v6969_v43 = vsel %vm2124_vm11, %v1490_v21, %v1859_v27  ;;  %v6972_v44 = vsel %vm2124_vm11, %v1487_v11, %v1867_v32  ;;  %v734_v26 = vld [vmem:[#allocation2 + $0x2d] sm:$0x1] }
 0x580   :  { %v690_v0 = vsel %vm323_vm2, %v689_v54, %v673_v61  ;;  %v691_v4 = vrot.slane %v675_v59, 6  ;;  %v747_v11 = vrot.slane %v731_v60, 6  ;;  %v693_v15 = vrot.slane %v676_v3, 5  ;;  %v736_v54 = vld [vmem:[#allocation2 + $0x3d] sm:$0x1] }
 0x581   :  { %v6975_v46 = vsel %vm2124_vm11, %v1491_v42, %v1875_v40  ;;  %v749_v19 = vrot.slane %v732_v5, 5  ;;  %v695_v24 = vrot.slane %v677_v14, 4  ;;  %v751_v27 = vrot.slane %v733_v18, 4  ;;  %v679_v42 = vld [vmem:[#allocation2 + $0x32] sm:$0x1] }
 0x582   :  { %v692_v12 = vsel %vm326_vm3, %v691_v4, %v690_v0  ;;  %v748_v13 = vsel %vm326_vm3, %v747_v11, %v746_v2  ;;  %v697_v40 = vrot.slane %v678_v22, 3  ;;  %v699_v53 = vrot.slane %v679_v42, 2 }
 0x583   :  { %v694_v20 = vsel %vm329_vm4, %v693_v15, %v692_v12  ;;  %v750_v21 = vsel %vm329_vm4, %v749_v19, %v748_v13  ;;  %v701_v61 = vrot.slane %v680_v51, 1  ;;  %v757_v62 = vrot.slane %v736_v54, 1 }
 0x584   :  { %v696_v32 = vsel %vm332_vm5, %v695_v24, %v694_v20  ;;  %v752_v33 = vsel %vm332_vm5, %v751_v27, %v750_v21  ;;  %v6646_v14 = vmov 5  }
 0x585   :  { %6073 = vset.pattern.permute.xlu0 %v6646_v14  ;;  %6072 = vset.pattern.permute.xlu1 %v6646_v14 }
 0x5e7   :  { %v622_v29 = vpop.permute.xlu1 %621 }
 0x5ec   :  { %v626_v47 = vpop.permute.xlu0 %625 }
 0x5ed   :  { %v628_v49 = vsel %vm448_vm10, %v622_v29, %v626_v47  ;;  %v735_v29 = vld [vmem:[#allocation2 + $0x35] sm:$0x1]  ;;  %v753_v47 = vrot.slane %v734_v26, 3 }
 0x5ee   :  { %v629_v50 = vpack.c.bf16 %v628_v49, %v628_v49  ;;  %v698_v49 = vsel %vm335_vm6, %v697_v40, %v696_v32  ;;  %v755_v56 = vrot.slane %v735_v29, 2 }
 0x5ef   :  { %v700_v59 = vsel %vm338_vm7, %v699_v53, %v698_v49  ;;  %v618_v49 = vmul.f32 %v6919_v38, %v6897_v23 }
 0x5f0   :  { %5927 = vmatmul.mubr.msk.bf16.vlgmr.msra.gmra.mrb[4].mxu0 %vm145_vm0, %v629_v50  ;;  %v754_v50 = vsel %vm335_vm6, %v753_v47, %v752_v33  ;;  %v6998_v2 = vsel %vm341_vm8, %v701_v61, %v700_v59  ;;  %v617_v47 = vmul.f32 %v6917_v37, %v6903_v31 }
 0x5f1   :  { %5939 = vmatpush3.bf16.msra.mxu0 %v6768_v6  ;;  %5942 = vmatprep.mubr.msk.bf16.mxu0 %vm6636_vm1, %v8804_v7  ;;  %v756_v60 = vsel %vm338_vm7, %v755_v56, %v754_v50 }
 0x5f2   :  { %5940 = vmatprep.subr.bf16.mxu0 %v8804_v7  ;;  %v7001_v3 = vsel %vm341_vm8, %v757_v62, %v756_v60  ;;  %v7015_v50 = vadd.f32 %v618_v49, %v617_v47 }
 0x5f5   :  { %5941 = vmatpush3.bf16.msra.mxu0 %v6775_v8 }
 0x5f6   :  { %5954 = vmatprep.subr.bf16.mxu0 %v8804_v7 }
 0x6c3   :  { %v667_v0 = vpop.f32.mrb[4].mxu0 }
 0x6c4   :  { %v704_v4 = vadd.f32 %v6998_v2, %v667_v0  ;;  %v760_v5 = vadd.f32 %v7001_v3, %v667_v0  ;;  %v5928_v11 = vpop.f32.mrb[5].mxu0 }
 0x6c5   :  { %v670_v12 = vpop.f32.mrb[6].mxu0 }
 0x6c6   :  { %6148 = vtanh.f32 %v704_v4  ;;  %v5929_v13 = vpop.f32.mrb[7].mxu0  ;;  %v5750_v19 = vmul.f32 -1.442695, %v704_v4  ;;  %v5751_v20 = vmul.f32 -1.442695, %v760_v5 }
 0x6c7   :  { %6150 = vtanh.f32 %v760_v5 }
 0x6c8   :  { %6152 = vpow2.f32 %v5750_v19 }
 0x6c9   :  { %6154 = vpow2.f32 %v5751_v20 }
 0x6d0   :  { %v6149_v15 = vpop.eup %6148 }
 0x6d1   :  { %v6151_v18 = vpop.eup %6150  ;;  %714 = vrot.lane.b32.xlu0 %v6149_v15, %s6640_s4 }
 0x6d2   :  { %770 = vrot.lane.b32.xlu1 %v6151_v18, %s6640_s4  ;;  %v6153_v21 = vpop.eup %6152 }
 0x6d3   :  { %v6155_v22 = vpop.eup %6154  ;;  %v708_v24 = vadd.f32 1.0, %v6153_v21 }
 0x6d4   :  { %v764_v26 = vadd.f32 1.0, %v6155_v22 }
 0x6d5   :  { %6156 = vrcp.f32 %v708_v24 }
 0x6d6   :  { %6158 = vrcp.f32 %v764_v26 }
 0x6df   :  { %v6157_v27 = vpop.eup %6156 }
 0x6e0   :  { %v6159_v33 = vpop.eup %6158  ;;  %v712_v59 = vmul.f32 %v6157_v27, %v6901_v28 }
 0x6e1   :  { %v768_v51 = vmul.f32 %v6159_v33, %v7015_v50 }
 0x743   :  { %v715_v32 = vpop.permute.xlu0 %714 }
 0x744   :  { %v771_v42 = vpop.permute.xlu1 %770  ;;  %v717_v40 = vmul.f32 %v6157_v27, %v715_v32 }
 0x745   :  { %v773_v29 = vmul.f32 %v6159_v33, %v771_v42 }
 0x746   :  { %719 = vrot.lane.b32.xlu0 %v717_v40, %s6641_s17 }
 0x747   :  { %775 = vrot.lane.b32.xlu1 %v773_v29, %s6641_s17 }
 0x74a   :  { %791 = vperm.xlu0 %6073, %v6835_v39  }
 0x74b   :  { %786 = vperm.xlu1 %6072, %v6830_v36  }
 0x7b8   :  { %v720_v54 = vpop.permute.xlu0 %719 }
 0x7b9   :  { %v776_v53 = vpop.permute.xlu1 %775  ;;  %v7022_v60 = vadd.f32 %v720_v54, %v712_v59 }
 0x7ba   :  { %v7018_v56 = vadd.f32 %v776_v53, %v768_v51 }
 0x7bc   :  { %6160 = vtanh.f32 %v7018_v56 }
 0x7bd   :  { %6162 = vtanh.f32 %v7022_v60 }
 0x7c6   :  { %v6161_v31 = vpop.eup %6160 }
 0x7c7   :  { %781 = vrot.lane.b32.xlu1 %v6161_v31, %s6642_s18  ;;  %v6163_v23 = vpop.eup %6162 }
 0x7c9   :  { %v7029_v38 = vpop.permute.xlu0 %791 }
 0x7ca   :  { %v7027_v37 = vpop.permute.xlu1 %786  ;;  %v794_v28 = vmul.f32 %v7029_v38, %v6937_v1 }
 0x7cb   :  { %725 = vrot.lane.b32.xlu1 %v6163_v23, %s6642_s18 }
 0x839   :  { %v782_v61 = vpop.permute.xlu1 %781 }
 0x83a   :  { %v784_v62 = vmul.f32 %v6159_v33, %v782_v61 }
 0x83c   :  { %v789_v0 = vmul.f32 %v7027_v37, %v784_v62 }
 0x83d   :  { %v726_v4 = vpop.permute.xlu1 %725 }
 0x83e   :  { %v7034_v5 = vadd.f32 %v794_v28, %v789_v0  ;;  %v728_v11 = vmul.f32 %v6157_v27, %v726_v4  ;;  %v854_v4 = vld [vmem:[#allocation2 + $0x13] sm:$0x1] }
 0x840   :  { %v1549_v12 = vcombine.high %v728_v11, %v728_v11  ;;  %v1556_v13 = vrot.slane %v728_v11, %v6913_v34  ;;  %804 = vrot.lane.b32.xlu1 %v7034_v5, %s6642_s18  ;;  %800 = vrot.lane.b32.xlu0 %v728_v11, %s6643_s19  ;;  %v910_v11 = vld [vmem:[#allocation2 + $0x14] sm:$0x1] }
 0x842   :  { %v1563_v14 = vrot.slane %v1549_v12, %v6913_v34  ;;  %v1564_v15 = vcombine.high %v1556_v13, %v1556_v13  ;;  %v1572_v18 = vrot.slane %v1556_v13, %v6913_v34  ;;  %v852_v12 = vld [vmem:[#allocation2 + $0x3] sm:$0x1]  ;;  %v908_v13 = vld [vmem:[#allocation2 + $0x4] sm:$0x1] }
 0x844   :  { %v1565_v19 = vcombine.high %v1563_v14, %v1563_v14  ;;  %v1579_v20 = vrot.slane %v1563_v14, %v6913_v34  ;;  %v1586_v21 = vrot.slane %v1564_v15, %v6913_v34  ;;  %v1594_v22 = vcombine.high %v1572_v18, %v1572_v18  ;;  %v855_v15 = vld [vmem:[#allocation2 + $0x1b] sm:$0x1] }
 0x845   :  { %v1887_v24 = vrot.slane %v1572_v18, %v6934_v63  ;;  %v870_v18 = vrot.slane %v854_v4, 6 }
 0x846   :  { %v1593_v26 = vrot.slane %v1565_v19, %v6913_v34  ;;  %v1595_v27 = vcombine.high %v1579_v20, %v1579_v20  ;;  %v1596_v32 = vcombine.high %v1586_v21, %v1586_v21  ;;  %v1891_v33 = vrot.slane %v1586_v21, %v6934_v63  ;;  %v911_v19 = vld [vmem:[#allocation2 + $0x1c] sm:$0x1] }
 0x847   :  { %v1895_v42 = vrot.slane %v1594_v22, %v6934_v63  ;;  %v1903_v40 = vrot.slane %v1579_v20, %v6934_v63  ;;  %v7051_v29 = vsel %vm2133_vm12, %v6950_v25, %v1887_v24  ;;  %v926_v20 = vrot.slane %v910_v11, 6  ;;  %v856_v22 = vld [vmem:[#allocation2 + $0x23] sm:$0x1] }
 0x848   :  { %v1597_v47 = vcombine.high %v1593_v26, %v1593_v26  ;;  %v1899_v49 = vrot.slane %v1596_v32, %v6934_v63  ;;  %v1907_v51 = vrot.slane %v1593_v26, %v6934_v63  ;;  %v1911_v53 = vrot.slane %v1595_v27, %v6934_v63  ;;  %v912_v26 = vld [vmem:[#allocation2 + $0x24] sm:$0x1] }
 0x849   :  { %v7058_v54 = vsel %vm2133_vm12, %v6956_v45, %v1891_v33  ;;  %v7062_v59 = vsel %vm2133_vm12, %v6959_v48, %v1903_v40  ;;  %v7066_v31 = vsel %vm2133_vm12, %v6962_v35, %v1895_v42  ;;  %v872_v24 = vrot.slane %v855_v15, 5  ;;  %v857_v42 = vld [vmem:[#allocation2 + $0x2b] sm:$0x1] }
 0x84a   :  { %v1915_v25 = vrot.slane %v1597_v47, %v6934_v63  ;;  %v7071_v23 = vsel %vm2133_vm12, %v6966_v41, %v1911_v53  ;;  %v7075_v61 = vsel %vm2133_vm12, %v6969_v43, %v1899_v49  ;;  %v7079_v45 = vsel %vm2133_vm12, %v6972_v44, %v1907_v51  ;;  %v853_v41 = vld [vmem:[#allocation2 + $0xb] sm:$0x1]  ;;  %v909_v43 = vld [vmem:[#allocation2 + $0xc] sm:$0x1] }
 0x84b   :  { %v868_v44 = vrot.slane %v853_v41, 7  ;;  %v928_v27 = vrot.slane %v911_v19, 5  ;;  %v874_v40 = vrot.slane %v856_v22, 4  ;;  %v913_v47 = vld [vmem:[#allocation2 + $0x2c] sm:$0x1]  ;;  %v930_v49 = vrot.slane %v912_v26, 4 }
 0x84c   :  { %v7083_v48 = vsel %vm2133_vm12, %v6975_v46, %v1915_v25  ;;  %v924_v46 = vrot.slane %v909_v43, 7  ;;  %v858_v25 = vld [vmem:[#allocation2 + $0x33] sm:$0x1]  ;;  %v859_v43 = vld [vmem:[#allocation2 + $0x3b] sm:$0x1] }
 0x84d   :  { %v869_v14 = vsel %vm323_vm2, %v868_v44, %v852_v12  ;;  %v878_v44 = vrot.slane %v858_v25, 2 }
 0x8b2   :  { %v805_v35 = vpop.permute.xlu1 %804  ;;  %v801_v62 = vpop.permute.xlu0 %800 }
 0x8b3   :  { %v807_v28 = vsel %vm448_vm10, %v801_v62, %v805_v35  ;;  %v876_v35 = vrot.slane %v857_v42, 3  ;;  %v914_v62 = vld [vmem:[#allocation2 + $0x34] sm:$0x1] }
 0x8b4   :  { %v808_v0 = vpack.c.bf16 %v807_v28, %v807_v28  ;;  %v932_v28 = vrot.slane %v913_v47, 3  ;;  %v934_v4 = vrot.slane %v914_v62, 2 }
 0x8b6   :  { %5935 = vmatmul.mubr.msk.bf16.vlgmr.msra.gmra.mrb[12].mxu1 %vm145_vm0, %v808_v0 }
 0x8b7   :  { %5947 = vmatpush3.bf16.msra.mxu1 %v6768_v6  ;;  %5950 = vmatprep.mubr.msk.bf16.mxu1 %vm6636_vm1, %v8804_v7  ;;  %v925_v6 = vsel %vm323_vm2, %v924_v46, %v908_v13  ;;  %v915_v46 = vld [vmem:[#allocation2 + $0x3c] sm:$0x1]  ;;  %v880_v13 = vrot.slane %v859_v43, 1 }
 0x8b8   :  { %5948 = vmatprep.subr.bf16.mxu1 %v8804_v7  ;;  %v927_v21 = vsel %vm326_vm3, %v926_v20, %v925_v6 }
 0x8b9   :  { %v929_v33 = vsel %vm329_vm4, %v928_v27, %v927_v21 }
 0x8ba   :  { %v931_v53 = vsel %vm332_vm5, %v930_v49, %v929_v33 }
 0x8bb   :  { %5949 = vmatpush3.bf16.msra.mxu1 %v6775_v8  ;;  %v871_v8 = vsel %vm326_vm3, %v870_v18, %v869_v14  ;;  %v933_v41 = vsel %vm335_vm6, %v932_v28, %v931_v53  ;;  %v936_v14 = vrot.slane %v915_v46, 1 }
 0x8bc   :  { %5962 = vmatprep.subr.bf16.mxu1 %v8804_v7  ;;  %v873_v32 = vsel %vm329_vm4, %v872_v24, %v871_v8  ;;  %v935_v12 = vsel %vm338_vm7, %v934_v4, %v933_v41  ;;  %v6647_v24 = vmov 4   ;;  %v797_v41 = vmul.f32 %v7029_v38, %v7015_v50 }
 0x8bd   :  { %v875_v51 = vsel %vm332_vm5, %v874_v40, %v873_v32  ;;  %v7109_v18 = vsel %vm341_vm8, %v936_v14, %v935_v12  ;;  %6075 = vset.pattern.permute.xlu1 %v6647_v24  ;;  %6074 = vset.pattern.permute.xlu0 %v6647_v24 }
 0x8be   :  { %v877_v0 = vsel %vm335_vm6, %v876_v35, %v875_v51 }
 0x8bf   :  { %v879_v11 = vsel %vm338_vm7, %v878_v44, %v877_v0  ;;  %v796_v0 = vmul.f32 %v7027_v37, %v7018_v56 }
 0x8c0   :  { %v7106_v15 = vsel %vm341_vm8, %v880_v13, %v879_v11 }
 0x8c1   :  { %v7123_v43 = vadd.f32 %v797_v41, %v796_v0 }
 0x989   :  { %v846_v6 = vpop.f32.mrb[12].mxu1 }
 0x98a   :  { %v883_v19 = vadd.f32 %v7106_v15, %v846_v6  ;;  %v939_v20 = vadd.f32 %v7109_v18, %v846_v6  ;;  %v5936_v8 = vpop.f32.mrb[13].mxu1 }
 0x98b   :  { %v849_v21 = vpop.f32.mrb[14].mxu1 }
 0x98c   :  { %6164 = vtanh.f32 %v883_v19  ;;  %v5937_v22 = vpop.f32.mrb[15].mxu1  ;;  %v5753_v32 = vmul.f32 -1.442695, %v883_v19  ;;  %v5754_v33 = vmul.f32 -1.442695, %v939_v20 }
 0x98d   :  { %6166 = vtanh.f32 %v939_v20 }
 0x98e   :  { %6168 = vpow2.f32 %v5753_v32 }
 0x98f   :  { %6170 = vpow2.f32 %v5754_v33 }
 0x996   :  { %v6165_v26 = vpop.eup %6164 }
 0x997   :  { %v6167_v27 = vpop.eup %6166  ;;  %893 = vrot.lane.b32.xlu1 %v6165_v26, %s6640_s4 }
 0x998   :  { %949 = vrot.lane.b32.xlu0 %v6167_v27, %s6640_s4  ;;  %v6169_v42 = vpop.eup %6168 }
 0x999   :  { %v6171_v40 = vpop.eup %6170  ;;  %v887_v47 = vadd.f32 1.0, %v6169_v42 }
 0x99a   :  { %v943_v49 = vadd.f32 1.0, %v6171_v40 }
 0x99b   :  { %6172 = vrcp.f32 %v887_v47 }
 0x99c   :  { %6174 = vrcp.f32 %v943_v49 }
 0x9a5   :  { %v6173_v51 = vpop.eup %6172 }
 0x9a6   :  { %v6175_v25 = vpop.eup %6174  ;;  %v891_v44 = vmul.f32 %v6173_v51, %v7022_v60 }
 0x9a7   :  { %v947_v46 = vmul.f32 %v6175_v25, %v7123_v43 }
 0xa09   :  { %v894_v53 = vpop.permute.xlu1 %893 }
 0xa0a   :  { %v950_v35 = vpop.permute.xlu0 %949  ;;  %v896_v62 = vmul.f32 %v6173_v51, %v894_v53 }
 0xa0b   :  { %v952_v28 = vmul.f32 %v6175_v25, %v950_v35 }
 0xa0c   :  { %898 = vrot.lane.b32.xlu1 %v896_v62, %s6641_s17 }
 0xa0d   :  { %954 = vrot.lane.b32.xlu0 %v952_v28, %s6641_s17 }
 0xa10   :  { %970 = vperm.xlu1 %6075, %v6835_v39  }
 0xa11   :  { %965 = vperm.xlu0 %6074, %v6830_v36  }
 0xa7e   :  { %v899_v4 = vpop.permute.xlu1 %898 }
 0xa7f   :  { %v955_v11 = vpop.permute.xlu0 %954  ;;  %v7127_v12 = vadd.f32 %v899_v4, %v891_v44 }
 0xa80   :  { %v7129_v13 = vadd.f32 %v955_v11, %v947_v46 }
 0xa81   :  { %6176 = vtanh.f32 %v7127_v12 }
 0xa82   :  { %6178 = vtanh.f32 %v7129_v13 }
 0xa8b   :  { %v6177_v56 = vpop.eup %6176 }
 0xa8c   :  { %v6179_v37 = vpop.eup %6178  ;;  %904 = vrot.lane.b32.xlu0 %v6177_v56, %s6642_s18 }
 0xa8d   :  { %960 = vrot.lane.b32.xlu1 %v6179_v37, %s6642_s18 }
 0xa8f   :  { %v7137_v60 = vpop.permute.xlu1 %970 }
 0xa90   :  { %v7135_v50 = vpop.permute.xlu0 %965  ;;  %v973_v21 = vmul.f32 %v7137_v60, %v7034_v5 }
 0xafe   :  { %v905_v38 = vpop.permute.xlu0 %904 }
 0xaff   :  { %v961_v14 = vpop.permute.xlu1 %960  ;;  %v907_v6 = vmul.f32 %v6173_v51, %v905_v38 }
 0xb00   :  { %v963_v19 = vmul.f32 %v6175_v25, %v961_v14 }
 0xb01   :  { %v1598_v20 = vcombine.high %v907_v6, %v907_v6  ;;  %v1605_v8 = vrot.slane %v907_v6, %v6913_v34  ;;  %979 = vrot.lane.b32.xlu1 %v907_v6, %s6643_s19 }
 0xb02   :  { %v968_v22 = vmul.f32 %v7135_v50, %v963_v19 }
 0xb03   :  { %v1612_v24 = vrot.slane %v1598_v20, %v6913_v34  ;;  %v1613_v26 = vcombine.high %v1605_v8, %v1605_v8  ;;  %v1621_v27 = vrot.slane %v1605_v8, %v6913_v34  ;;  %v7195_v20 = vld [vmem:[#allocation9] sm:$0xff]  }
 0xb04   :  { %v7146_v32 = vadd.f32 %v973_v21, %v968_v22 }
 0xb05   :  { %v1614_v33 = vcombine.high %v1612_v24, %v1612_v24  ;;  %v1628_v42 = vrot.slane %v1612_v24, %v6913_v34  ;;  %v1635_v40 = vrot.slane %v1613_v26, %v6913_v34  ;;  %v1643_v47 = vcombine.high %v1621_v27, %v1621_v27 }
 0xb06   :  { %v1927_v49 = vrot.slane %v1621_v27, %v6934_v63  ;;  %983 = vrot.lane.b32.xlu0 %v7146_v32, %s6642_s18  ;;  %v6648_v26 = vmov 3  }
 0xb07   :  { %v1642_v51 = vrot.slane %v1614_v33, %v6913_v34  ;;  %v1644_v53 = vcombine.high %v1628_v42, %v1628_v42  ;;  %v1645_v25 = vcombine.high %v1635_v40, %v1635_v40  ;;  %v1931_v35 = vrot.slane %v1635_v40, %v6934_v63  ;;  %6077 = vset.pattern.permute.xlu0 %v6648_v26 }
 0xb08   :  { %v1935_v62 = vrot.slane %v1643_v47, %v6934_v63  ;;  %v1943_v41 = vrot.slane %v1628_v42, %v6934_v63  ;;  %v7166_v11 = vsel %vm2142_vm13, %v7051_v29, %v1927_v49  ;;  %6076 = vset.pattern.permute.xlu1 %v6648_v26 }
 0xb09   :  { %v1646_v28 = vcombine.high %v1642_v51, %v1642_v51  ;;  %v1939_v0 = vrot.slane %v1645_v25, %v6934_v63  ;;  %v1947_v44 = vrot.slane %v1642_v51, %v6934_v63  ;;  %v1951_v46 = vrot.slane %v1644_v53, %v6934_v63 }
 0xb0a   :  { %v7162_v4 = vsel %vm2142_vm13, %v7058_v54, %v1931_v35  ;;  %v7170_v56 = vsel %vm2142_vm13, %v7062_v59, %v1943_v41  ;;  %v7174_v37 = vsel %vm2142_vm13, %v7066_v31, %v1935_v62  ;;  %v976_v41 = vmul.f32 %v7137_v60, %v7123_v43 }
 0xb0b   :  { %v7178_v38 = vsel %vm2142_vm13, %v7075_v61, %v1939_v0  ;;  %v7182_v54 = vsel %vm2142_vm13, %v7071_v23, %v1951_v46  ;;  %v7186_v29 = vsel %vm2142_vm13, %v7079_v45, %v1947_v44  ;;  %v1955_v14 = vrot.slane %v1646_v28, %v6934_v63  ;;  %v7201_v23 = vld [vmem:[#allocation9 + $0x8] sm:$0xff]  }
 0xb0c   :  { %v975_v0 = vmul.f32 %v7135_v50, %v7129_v13 }
 0xb0d   :  { %v7191_v59 = vsel %vm2142_vm13, %v7083_v48, %v1955_v14 }
 0xb0e   :  { %v7217_v44 = vadd.f32 %v976_v41, %v975_v0 }
 0xb73   :  { %v980_v31 = vpop.permute.xlu1 %979 }
 0xb78   :  { %v984_v6 = vpop.permute.xlu0 %983 }
 0xb79   :  { %v986_v19 = vsel %vm448_vm10, %v980_v31, %v984_v6 }
 0xb7a   :  { %v987_v61 = vpack.c.bf16 %v986_v19, %v986_v19 }
 0xb7c   :  { %5943 = vmatmul.mubr.msk.bf16.vlgmr.msra.gmra.mrb[8].mxu0 %vm145_vm0, %v987_v61 }
 0xb7d   :  { %5955 = vmatpush3.bf16.msra.mxu0 %v7195_v20  ;;  %5958 = vmatprep.mubr.msk.bf16.mxu0 %vm6636_vm1, %v8804_v7 }
 0xb7e   :  { %5956 = vmatprep.subr.bf16.mxu0 %v8804_v7 }
 0xb81   :  { %5957 = vmatpush3.bf16.msra.mxu0 %v7201_v23 }
 0xb82   :  { %6012 = vmatprep.subr.bf16.mxu0 %v8802_v9 }
 0xc4f   :  { %v1025_v45 = vpop.f32.mrb[8].mxu0 }
 0xc50   :  { %v1031_v48 = vadd.f32 %v1025_v45, %v7109_v18  ;;  %v1056_v8 = vadd.f32 %v1025_v45, %v7106_v15  ;;  %v5944_v21 = vpop.f32.mrb[9].mxu0 }
 0xc51   :  { %v1028_v22 = vpop.f32.mrb[10].mxu0 }
 0xc52   :  { %6180 = vtanh.f32 %v1031_v48  ;;  %v5945_v24 = vpop.f32.mrb[11].mxu0  ;;  %v5756_v42 = vmul.f32 -1.442695, %v1031_v48  ;;  %v5757_v40 = vmul.f32 -1.442695, %v1056_v8 }
 0xc53   :  { %6182 = vtanh.f32 %v1056_v8 }
 0xc54   :  { %6184 = vpow2.f32 %v5756_v42 }
 0xc55   :  { %6186 = vpow2.f32 %v5757_v40 }
 0xc5c   :  { %v6181_v27 = vpop.eup %6180 }
 0xc5d   :  { %v6183_v33 = vpop.eup %6182  ;;  %1041 = vrot.lane.b32.xlu0 %v6181_v27, %s6640_s4 }
 0xc5e   :  { %1066 = vrot.lane.b32.xlu1 %v6183_v33, %s6640_s4  ;;  %v6185_v18 = vpop.eup %6184 }
 0xc5f   :  { %v6187_v15 = vpop.eup %6186  ;;  %v1035_v47 = vadd.f32 1.0, %v6185_v18 }
 0xc60   :  { %v1060_v49 = vadd.f32 1.0, %v6187_v15 }
 0xc61   :  { %6188 = vrcp.f32 %v1035_v47 }
 0xc62   :  { %6190 = vrcp.f32 %v1060_v49 }
 0xc6b   :  { %v6189_v51 = vpop.eup %6188 }
 0xc6c   :  { %v6191_v25 = vpop.eup %6190  ;;  %v1039_v19 = vmul.f32 %v6189_v51, %v7127_v12 }
 0xc6d   :  { %v1064_v46 = vmul.f32 %v6191_v25, %v7217_v44 }
 0xccf   :  { %v1042_v53 = vpop.permute.xlu0 %1041 }
 0xcd0   :  { %v1067_v35 = vpop.permute.xlu1 %1066  ;;  %v1044_v62 = vmul.f32 %v6189_v51, %v1042_v53 }
 0xcd1   :  { %v1069_v28 = vmul.f32 %v6191_v25, %v1067_v35 }
 0xcd2   :  { %1046 = vrot.lane.b32.xlu0 %v1044_v62, %s6641_s17 }
 0xcd3   :  { %1071 = vrot.lane.b32.xlu1 %v1069_v28, %s6641_s17 }
 0xcd6   :  { %1087 = vperm.xlu0 %6077, %v6835_v39  }
 0xcd7   :  { %1082 = vperm.xlu1 %6076, %v6830_v36  }
 0xd44   :  { %v1047_v31 = vpop.permute.xlu0 %1046 }
 0xd45   :  { %v1072_v14 = vpop.permute.xlu1 %1071  ;;  %v7224_v61 = vadd.f32 %v1047_v31, %v1039_v19 }
 0xd46   :  { %v7220_v6 = vadd.f32 %v1072_v14, %v1064_v46 }
 0xd48   :  { %6192 = vtanh.f32 %v7220_v6 }
 0xd49   :  { %6194 = vtanh.f32 %v7224_v61 }
 0xd52   :  { %v6193_v13 = vpop.eup %6192 }
 0xd53   :  { %1077 = vrot.lane.b32.xlu1 %v6193_v13, %s6642_s18  ;;  %v6195_v43 = vpop.eup %6194 }
 0xd55   :  { %v7231_v60 = vpop.permute.xlu0 %1087 }
 0xd56   :  { %v7229_v50 = vpop.permute.xlu1 %1082  ;;  %v1090_v12 = vmul.f32 %v7231_v60, %v7146_v32 }
 0xd57   :  { %1052 = vrot.lane.b32.xlu1 %v6195_v43, %s6642_s18 }
 0xdc5   :  { %v1078_v45 = vpop.permute.xlu1 %1077 }
 0xdc6   :  { %v1080_v48 = vmul.f32 %v6191_v25, %v1078_v45 }
 0xdc8   :  { %v1085_v8 = vmul.f32 %v7229_v50, %v1080_v48 }
 0xdc9   :  { %v1053_v21 = vpop.permute.xlu1 %1052 }
 0xdca   :  { %v7236_v22 = vadd.f32 %v1090_v12, %v1085_v8  ;;  %v1055_v24 = vmul.f32 %v6189_v51, %v1053_v21 }
 0xdcc   :  { %v1647_v26 = vcombine.high %v1055_v24, %v1055_v24  ;;  %v1654_v27 = vrot.slane %v1055_v24, %v6913_v34  ;;  %1100 = vrot.lane.b32.xlu1 %v7236_v22, %s6642_s18  ;;  %1096 = vrot.lane.b32.xlu0 %v1055_v24, %s6643_s19 }
 0xdce   :  { %v1661_v33 = vrot.slane %v1647_v26, %v6913_v34  ;;  %v1662_v42 = vcombine.high %v1654_v27, %v1654_v27  ;;  %v1670_v40 = vrot.slane %v1654_v27, %v6913_v34 }
 0xdd0   :  { %v1663_v18 = vcombine.high %v1661_v33, %v1661_v33  ;;  %v1677_v15 = vrot.slane %v1661_v33, %v6913_v34  ;;  %v1684_v47 = vrot.slane %v1662_v42, %v6913_v34  ;;  %v1692_v49 = vcombine.high %v1670_v40, %v1670_v40 }
 0xdd1   :  { %v1967_v51 = vrot.slane %v1670_v40, %v6934_v63 }
 0xdd2   :  { %v1691_v53 = vrot.slane %v1663_v18, %v6913_v34  ;;  %v1693_v25 = vcombine.high %v1677_v15, %v1677_v15  ;;  %v1694_v35 = vcombine.high %v1684_v47, %v1684_v47  ;;  %v1971_v62 = vrot.slane %v1684_v47, %v6934_v63 }
 0xdd3   :  { %v1975_v28 = vrot.slane %v1692_v49, %v6934_v63  ;;  %v1983_v0 = vrot.slane %v1677_v15, %v6934_v63  ;;  %v7253_v41 = vsel %vm2151_vm14, %v7166_v11, %v1967_v51 }
 0xdd4   :  { %v1695_v46 = vcombine.high %v1691_v53, %v1691_v53  ;;  %v7257_v14 = vsel %vm2151_vm14, %v7162_v4, %v1971_v62  ;;  %v1991_v31 = vrot.slane %v1693_v25, %v6934_v63  ;;  %v1979_v19 = vrot.slane %v1694_v35, %v6934_v63 }
 0xdd5   :  { %v7263_v13 = vsel %vm2151_vm14, %v7170_v56, %v1983_v0  ;;  %v7267_v43 = vsel %vm2151_vm14, %v7174_v37, %v1975_v28  ;;  %v1987_v11 = vrot.slane %v1691_v53, %v6934_v63  ;;  %v1092_v62 = vmul.f32 %v7229_v50, %v7220_v6 }
 0xdd6   :  { %v7272_v45 = vsel %vm2151_vm14, %v7182_v54, %v1991_v31  ;;  %v7276_v4 = vsel %vm2151_vm14, %v7178_v38, %v1979_v19  ;;  %v1995_v48 = vrot.slane %v1695_v46, %v6934_v63  ;;  %v1093_v28 = vmul.f32 %v7231_v60, %v7217_v44 }
 0xdd7   :  { %v7281_v56 = vsel %vm2151_vm14, %v7186_v29, %v1987_v11 }
 0xdd8   :  { %v7285_v37 = vsel %vm2151_vm14, %v7191_v59, %v1995_v48  ;;  %v7307_v0 = vadd.f32 %v1093_v28, %v1092_v62 }
 0xe3e   :  { %v1101_v12 = vpop.permute.xlu1 %1100  ;;  %v1097_v8 = vpop.permute.xlu0 %1096 }
 0xe3f   :  { %v1103_v21 = vsel %vm448_vm10, %v1097_v8, %v1101_v12 }
 0xe40   :  { %v1104_v54 = vpack.c.bf16 %v1103_v21, %v1103_v21 }
 0xe42   :  { %5951 = vmatmul.mubr.msk.bf16.vlgmr.msra.gmra.mrb[16].mxu1 %vm145_vm0, %v1104_v54 }
 0xe43   :  { %5963 = vmatpush3.bf16.msra.mxu1 %v7195_v20  ;;  %5966 = vmatprep.mubr.msk.bf16.mxu1 %vm6636_vm1, %v8804_v7  ;;  %v6649_v20 = vmov 2  }
 0xe44   :  { %5964 = vmatprep.subr.bf16.mxu1 %v8804_v7  ;;  %6079 = vset.pattern.permute.xlu1 %v6649_v20 }
 0xe45   :  { %6078 = vset.pattern.permute.xlu0 %v6649_v20 }
 0xe47   :  { %5965 = vmatpush3.bf16.msra.mxu1 %v7201_v23 }
 0xe48   :  { %6018 = vmatprep.subr.bf16.mxu1 %v8802_v9 }
 0xf15   :  { %v1142_v38 = vpop.f32.mrb[16].mxu1 }
 0xf16   :  { %v1148_v29 = vadd.f32 %v1142_v38, %v7001_v3  ;;  %v1173_v59 = vadd.f32 %v1142_v38, %v6998_v2  ;;  %v5952_v24 = vpop.f32.mrb[17].mxu1 }
 0xf17   :  { %v1145_v26 = vpop.f32.mrb[18].mxu1 }
 0xf18   :  { %6196 = vtanh.f32 %v1148_v29  ;;  %v5953_v27 = vpop.f32.mrb[19].mxu1  ;;  %v5759_v23 = vmul.f32 -1.442695, %v1148_v29  ;;  %v5760_v40 = vmul.f32 -1.442695, %v1173_v59 }
 0xf19   :  { %6198 = vtanh.f32 %v1173_v59 }
 0xf1a   :  { %6200 = vpow2.f32 %v5759_v23 }
 0xf1b   :  { %6202 = vpow2.f32 %v5760_v40 }
 0xf22   :  { %v6197_v33 = vpop.eup %6196 }
 0xf23   :  { %v6199_v42 = vpop.eup %6198  ;;  %1158 = vrot.lane.b32.xlu1 %v6197_v33, %s6640_s4 }
 0xf24   :  { %1183 = vrot.lane.b32.xlu0 %v6199_v42, %s6640_s4  ;;  %v6201_v3 = vpop.eup %6200 }
 0xf25   :  { %v6203_v2 = vpop.eup %6202  ;;  %v1152_v18 = vadd.f32 1.0, %v6201_v3 }
 0xf26   :  { %v1177_v15 = vadd.f32 1.0, %v6203_v2 }
 0xf27   :  { %6204 = vrcp.f32 %v1152_v18 }
 0xf28   :  { %6206 = vrcp.f32 %v1177_v15 }
 0xf31   :  { %v6205_v47 = vpop.eup %6204 }
 0xf32   :  { %v6207_v51 = vpop.eup %6206  ;;  %v1156_v46 = vmul.f32 %v6205_v47, %v7224_v61 }
 0xf33   :  { %v1181_v31 = vmul.f32 %v6207_v51, %v7307_v0 }
 0xf95   :  { %v1159_v49 = vpop.permute.xlu1 %1158 }
 0xf96   :  { %v1184_v53 = vpop.permute.xlu0 %1183  ;;  %v1161_v25 = vmul.f32 %v6205_v47, %v1159_v49 }
 0xf97   :  { %v1186_v35 = vmul.f32 %v6207_v51, %v1184_v53 }
 0xf98   :  { %1163 = vrot.lane.b32.xlu1 %v1161_v25, %s6641_s17 }
 0xf99   :  { %1188 = vrot.lane.b32.xlu0 %v1186_v35, %s6641_s17 }
 0xf9c   :  { %1204 = vperm.xlu1 %6079, %v6835_v39  }
 0xf9d   :  { %1199 = vperm.xlu0 %6078, %v6830_v36  }
0x100a   :  { %v1164_v19 = vpop.permute.xlu1 %1163 }
0x100b   :  { %v1189_v11 = vpop.permute.xlu0 %1188  ;;  %v7311_v48 = vadd.f32 %v1164_v19, %v1156_v46 }
0x100c   :  { %v7313_v12 = vadd.f32 %v1189_v11, %v1181_v31 }
0x100d   :  { %6208 = vtanh.f32 %v7311_v48 }
0x100e   :  { %6210 = vtanh.f32 %v7313_v12 }
0x1017   :  { %v6209_v6 = vpop.eup %6208 }
0x1018   :  { %v6211_v50 = vpop.eup %6210  ;;  %1169 = vrot.lane.b32.xlu0 %v6209_v6, %s6642_s18 }
0x1019   :  { %1194 = vrot.lane.b32.xlu1 %v6211_v50, %s6642_s18 }
0x101b   :  { %v7321_v61 = vpop.permute.xlu1 %1204 }
0x101c   :  { %v7319_v44 = vpop.permute.xlu0 %1199  ;;  %v1207_v59 = vmul.f32 %v7321_v61, %v7236_v22 }
0x108a   :  { %v1170_v60 = vpop.permute.xlu0 %1169 }
0x108b   :  { %v1195_v8 = vpop.permute.xlu1 %1194  ;;  %v1172_v21 = vmul.f32 %v6205_v47, %v1170_v60 }
0x108c   :  { %v1197_v54 = vmul.f32 %v6207_v51, %v1195_v8 }
0x108d   :  { %v1696_v38 = vcombine.high %v1172_v21, %v1172_v21  ;;  %v1703_v29 = vrot.slane %v1172_v21, %v6913_v34  ;;  %1213 = vrot.lane.b32.xlu1 %v1172_v21, %s6643_s19 }
0x108e   :  { %v1202_v24 = vmul.f32 %v7319_v44, %v1197_v54 }
0x108f   :  { %v1710_v26 = vrot.slane %v1696_v38, %v6913_v34  ;;  %v1711_v27 = vcombine.high %v1703_v29, %v1703_v29  ;;  %v1719_v20 = vrot.slane %v1703_v29, %v6913_v34  ;;  %v6650_v29 = vmov 1  }
0x1090   :  { %v7330_v33 = vadd.f32 %v1207_v59, %v1202_v24  ;;  %6081 = vset.pattern.permute.xlu0 %v6650_v29  ;;  %6080 = vset.pattern.permute.xlu1 %v6650_v29 }
0x1091   :  { %v1712_v42 = vcombine.high %v1710_v26, %v1710_v26  ;;  %v1726_v23 = vrot.slane %v1710_v26, %v6913_v34  ;;  %v1733_v40 = vrot.slane %v1711_v27, %v6913_v34  ;;  %v1741_v3 = vcombine.high %v1719_v20, %v1719_v20 }
0x1092   :  { %v2007_v2 = vrot.slane %v1719_v20, %v6934_v63  ;;  %1217 = vrot.lane.b32.xlu0 %v7330_v33, %s6642_s18 }
0x1093   :  { %v1742_v18 = vcombine.high %v1726_v23, %v1726_v23  ;;  %v2011_v15 = vrot.slane %v1733_v40, %v6934_v63  ;;  %v1740_v47 = vrot.slane %v1712_v42, %v6913_v34  ;;  %v1743_v49 = vcombine.high %v1733_v40, %v1733_v40 }
0x1094   :  { %v7341_v51 = vsel %vm2160_vm15, %v7253_v41, %v2007_v2  ;;  %v2023_v25 = vrot.slane %v1726_v23, %v6934_v63  ;;  %v2015_v62 = vrot.slane %v1741_v3, %v6934_v63 }
0x1095   :  { %v7345_v53 = vsel %vm2160_vm15, %v7257_v14, %v2011_v15  ;;  %v2031_v35 = vrot.slane %v1742_v18, %v6934_v63  ;;  %v2019_v14 = vrot.slane %v1743_v49, %v6934_v63  ;;  %v2027_v31 = vrot.slane %v1740_v47, %v6934_v63 }
0x1096   :  { %v7352_v28 = vsel %vm2160_vm15, %v7263_v13, %v2023_v25  ;;  %v7360_v41 = vsel %vm2160_vm15, %v7267_v43, %v2015_v62  ;;  %v1744_v19 = vcombine.high %v1740_v47, %v1740_v47  ;;  %v1209_v47 = vmul.f32 %v7319_v44, %v7313_v12 }
0x1097   :  { %v7356_v46 = vsel %vm2160_vm15, %v7272_v45, %v2031_v35  ;;  %v7366_v11 = vsel %vm2160_vm15, %v7276_v4, %v2019_v14  ;;  %v7370_v13 = vsel %vm2160_vm15, %v7281_v56, %v2027_v31  ;;  %v1210_v49 = vmul.f32 %v7321_v61, %v7307_v0 }
0x1098   :  { %v2035_v45 = vrot.slane %v1744_v19, %v6934_v63 }
0x1099   :  { %v7397_v25 = vadd.f32 %v1210_v49, %v1209_v47 }
0x109a   :  { %v7375_v6 = vsel %vm2160_vm15, %v7285_v37, %v2035_v45 }
0x10ff   :  { %v1214_v43 = vpop.permute.xlu1 %1213 }
0x1104   :  { %v1218_v50 = vpop.permute.xlu0 %1217 }
0x1105   :  { %v1220_v60 = vsel %vm448_vm10, %v1214_v43, %v1218_v50 }
0x1106   :  { %v1221_v8 = vpack.c.bf16 %v1220_v60, %v1220_v60 }
0x1108   :  { %5959 = vmatmul.mubr.msk.bf16.vlgmr.msra.gmra.mrb[12].mxu0 %vm145_vm0, %v1221_v8 }
0x1109   :  { %5978 = vmatprep.mubr.msk.f32.mxu0 %vm6636_vm1, %v8804_v7 }
0x11db   :  { %v1259_v4 = vpop.f32.mrb[12].mxu0 }
0x11dc   :  { %v1265_v56 = vadd.f32 %v1259_v4, %v6884_v58  ;;  %v1290_v21 = vadd.f32 %v1259_v4, %v6881_v57  ;;  %v5960_v54 = vpop.f32.mrb[13].mxu0 }
0x11dd   :  { %v1262_v38 = vpop.f32.mrb[14].mxu0 }
0x11de   :  { %6212 = vtanh.f32 %v1265_v56  ;;  %v5961_v37 = vpop.f32.mrb[15].mxu0  ;;  %v5762_v26 = vmul.f32 -1.442695, %v1265_v56  ;;  %v5763_v58 = vmul.f32 -1.442695, %v1290_v21 }
0x11df   :  { %6214 = vtanh.f32 %v1290_v21 }
0x11e0   :  { %6216 = vpow2.f32 %v5762_v26 }
0x11e1   :  { %6218 = vpow2.f32 %v5763_v58 }
0x11e8   :  { %v6213_v59 = vpop.eup %6212 }
0x11e9   :  { %v6215_v24 = vpop.eup %6214  ;;  %1275 = vrot.lane.b32.xlu0 %v6213_v59, %s6640_s4 }
0x11ea   :  { %1300 = vrot.lane.b32.xlu1 %v6215_v24, %s6640_s4  ;;  %v6217_v57 = vpop.eup %6216 }
0x11eb   :  { %v6219_v27 = vpop.eup %6218  ;;  %v1269_v20 = vadd.f32 1.0, %v6217_v57 }
0x11ec   :  { %v1294_v42 = vadd.f32 1.0, %v6219_v27 }
0x11ed   :  { %6220 = vrcp.f32 %v1269_v20 }
0x11ee   :  { %6222 = vrcp.f32 %v1294_v42 }
0x11f7   :  { %v6221_v23 = vpop.eup %6220 }
0x11f8   :  { %v6223_v3 = vpop.eup %6222  ;;  %v1273_v19 = vmul.f32 %v6221_v23, %v7311_v48 }
0x11f9   :  { %v1298_v35 = vmul.f32 %v6223_v3, %v7397_v25 }
0x125b   :  { %v1276_v40 = vpop.permute.xlu0 %1275 }
0x125c   :  { %v1301_v2 = vpop.permute.xlu1 %1300  ;;  %v1278_v18 = vmul.f32 %v6221_v23, %v1276_v40 }
0x125d   :  { %v1303_v15 = vmul.f32 %v6223_v3, %v1301_v2 }
0x125e   :  { %1280 = vrot.lane.b32.xlu0 %v1278_v18, %s6641_s17 }
0x125f   :  { %1305 = vrot.lane.b32.xlu1 %v1303_v15, %s6641_s17 }
0x1262   :  { %1321 = vperm.xlu0 %6081, %v6835_v39  }
0x1263   :  { %1316 = vperm.xlu1 %6080, %v6830_v36  }
0x1266   :  { %6082 = vset.pattern.permute.xlu0 %v6638_v10 }
0x1267   :  { %6083 = vset.pattern.permute.xlu1 %v6638_v10 }
0x12d0   :  { %v1281_v14 = vpop.permute.xlu0 %1280 }
0x12d1   :  { %v1306_v62 = vpop.permute.xlu1 %1305  ;;  %v7404_v45 = vadd.f32 %v1281_v14, %v1273_v19 }
0x12d2   :  { %v7400_v31 = vadd.f32 %v1306_v62, %v1298_v35 }
0x12d4   :  { %6224 = vtanh.f32 %v7400_v31 }
0x12d5   :  { %6226 = vtanh.f32 %v7404_v45 }
0x12de   :  { %v6225_v12 = vpop.eup %6224 }
0x12df   :  { %1311 = vrot.lane.b32.xlu1 %v6225_v12, %s6642_s18  ;;  %v6227_v0 = vpop.eup %6226 }
0x12e1   :  { %v7411_v61 = vpop.permute.xlu0 %1321 }
0x12e2   :  { %v7409_v44 = vpop.permute.xlu1 %1316  ;;  %v1324_v48 = vmul.f32 %v7411_v61, %v7330_v33 }
0x12e3   :  { %1286 = vrot.lane.b32.xlu1 %v6227_v0, %s6642_s18 }
0x1351   :  { %v1312_v43 = vpop.permute.xlu1 %1311 }
0x1352   :  { %v1314_v50 = vmul.f32 %v6223_v3, %v1312_v43 }
0x1354   :  { %v1319_v60 = vmul.f32 %v7409_v44, %v1314_v50 }
0x1355   :  { %v1287_v8 = vpop.permute.xlu1 %1286 }
0x1356   :  { %v7416_v4 = vadd.f32 %v1324_v48, %v1319_v60  ;;  %v1289_v56 = vmul.f32 %v6221_v23, %v1287_v8 }
0x1358   :  { %v1745_v21 = vcombine.high %v1289_v56, %v1289_v56  ;;  %v1752_v54 = vrot.slane %v1289_v56, %v6913_v34  ;;  %1334 = vrot.lane.b32.xlu1 %v7416_v4, %s6642_s18  ;;  %1330 = vrot.lane.b32.xlu0 %v1289_v56, %s6643_s19 }
0x135a   :  { %v1759_v38 = vrot.slane %v1745_v21, %v6913_v34  ;;  %v1760_v37 = vcombine.high %v1752_v54, %v1752_v54  ;;  %v1768_v59 = vrot.slane %v1752_v54, %v6913_v34 }
0x135c   :  { %v1761_v24 = vcombine.high %v1759_v38, %v1759_v38  ;;  %v1775_v26 = vrot.slane %v1759_v38, %v6913_v34  ;;  %v1782_v58 = vrot.slane %v1760_v37, %v6913_v34  ;;  %v1790_v57 = vcombine.high %v1768_v59, %v1768_v59 }
0x135d   :  { %v2047_v20 = vrot.slane %v1768_v59, %v6934_v63 }
0x135e   :  { %v2051_v27 = vrot.slane %v1782_v58, %v6934_v63  ;;  %v2063_v42 = vrot.slane %v1775_v26, %v6934_v63  ;;  %v1791_v23 = vcombine.high %v1775_v26, %v1775_v26  ;;  %v2055_v3 = vrot.slane %v1790_v57, %v6934_v63 }
0x135f   :  { %v1792_v2 = vcombine.high %v1782_v58, %v1782_v58  ;;  %v1789_v18 = vrot.slane %v1761_v24, %v6913_v34  ;;  %v7437_v15 = vsel %vm2169_vm9, %v7341_v51, %v2047_v20 }
0x1360   :  { %v7431_v40 = vsel %vm2169_vm9, %v7345_v53, %v2051_v27  ;;  %v7441_v47 = vsel %vm2169_vm9, %v7352_v28, %v2063_v42  ;;  %v2071_v49 = vrot.slane %v1791_v23, %v6934_v63  ;;  %v7446_v35 = vsel %vm2169_vm9, %v7360_v41, %v2055_v3 }
0x1361   :  { %v2059_v53 = vrot.slane %v1792_v2, %v6934_v63  ;;  %v2067_v62 = vrot.slane %v1789_v18, %v6934_v63  ;;  %v1793_v14 = vcombine.high %v1789_v18, %v1789_v18  ;;  %v1326_v42 = vmul.f32 %v7409_v44, %v7400_v31  ;;  %v6518_v44 = vld [vmem:[%s8793_s1] sm:$0xff] }
0x1362   :  { %v7452_v19 = vsel %vm2169_vm9, %v7356_v46, %v2071_v49  ;;  %v1327_v23 = vmul.f32 %v7411_v61, %v7397_v25  ;;  %v7508_v61 = vsub.s32 4, %v6910_v52 }
0x1363   :  { %v7456_v51 = vsel %vm2169_vm9, %v7366_v11, %v2059_v53  ;;  %v7460_v28 = vsel %vm2169_vm9, %v7370_v13, %v2067_v62  ;;  %v2075_v41 = vrot.slane %v1793_v14, %v6934_v63 }
0x1364   :  { %v1328_v3 = vadd.f32 %v1327_v23, %v1326_v42  ;;  %8837 = vst [vmem:[#allocation21_spill] sm:$0xff] %v7508_v61 }
0x1365   :  { %v7465_v12 = vsel %vm2169_vm9, %v7375_v6, %v2075_v41  ;;  %v2190_v41 = vrot.slane %v6830_v36, %v6934_v63 }
0x1366   :  { %8834 = vst [vmem:[#allocation18_spill] sm:$0xff] %v7465_v12 }
0x13ca   :  { %v1335_v0 = vpop.permute.xlu1 %1334  ;;  %v1331_v43 = vpop.permute.xlu0 %1330 }
0x13cb   :  { %v1337_v50 = vsel %vm448_vm10, %v1331_v43, %v1335_v0  ;;  %v7513_v0 = vsub.s32 3, %v6910_v52 }
0x13cc   :  { %v1338_v46 = vpack.c.bf16 %v1337_v50, %v1337_v50  ;;  %v7518_v50 = vsub.s32 6, %v6910_v52 }
0x13cd   :  { %8838 = vst [vmem:[#allocation22_spill] sm:$0xff] %v7513_v0 }
0x13ce   :  { %5967 = vmatmul.mubr.msk.bf16.vlgmr.msra.gmra.mrb[20].mxu1 %vm145_vm0, %v1338_v46  ;;  %8839 = vst [vmem:[#allocation23_spill] sm:$0xff] %v7518_v50  ;;  %v2218_v46 = vrot.slane %v6830_v36, %v7508_v61 }
0x13cf   :  { %5989 = vmatprep.mubr.msk.f32.mxu1 %vm6636_vm1, %v8804_v7 }
0x14a1   :  { %v1376_v11 = vpop.f32.mrb[20].mxu1 }
0x14a2   :  { %v1382_v13 = vadd.f32 %v1376_v11, %v6815_v16  ;;  %v1407_v48 = vadd.f32 %v1376_v11, %v6818_v17  ;;  %v5968_v60 = vpop.f32.mrb[21].mxu1  ;;  %v7524_v11 = vsub.s32 5, %v6910_v52 }
0x14a3   :  { %v1379_v8 = vpop.f32.mrb[22].mxu1  ;;  %v2232_v60 = vrot.slane %v6830_v36, %v7518_v50 }
0x14a4   :  { %6228 = vtanh.f32 %v1382_v13  ;;  %v5969_v6 = vpop.f32.mrb[23].mxu1  ;;  %v5765_v54 = vmul.f32 -1.442695, %v1382_v13  ;;  %v5766_v38 = vmul.f32 -1.442695, %v1407_v48  ;;  %8840 = vst [vmem:[#allocation24_spill] sm:$0xff] %v7524_v11  ;;  %v2211_v13 = vrot.slane %v6830_v36, %v7513_v0 }
0x14a5   :  { %6230 = vtanh.f32 %v1407_v48  ;;  %v3193_v48 = vcvt.s32.f32 %v6518_v44  ;;  %v2225_v8 = vrot.slane %v6830_v36, %v7524_v11  ;;  %v7533_v6 = vsub.s32 7, %v6910_v52 }
0x14a6   :  { %6232 = vpow2.f32 %v5765_v54  ;;  %v2610_v54 = vrot.slane %v6852_v55, %v6913_v34 }
0x14a7   :  { %6234 = vpow2.f32 %v5766_v38  ;;  %8841 = vst [vmem:[#allocation25_spill] sm:$0xff] %v7533_v6  ;;  %v2603_v38 = vcombine.high %v6852_v55, %v6852_v55 }
0x14ae   :  { %v6229_v56 = vpop.eup %6228 }
0x14af   :  { %v6231_v21 = vpop.eup %6230  ;;  %1392 = vrot.lane.b32.xlu1 %v6229_v56, %s6640_s4  ;;  %v3194_v56 = vmax.f32 %v3193_v48, 1.0 }
0x14b0   :  { %1417 = vrot.lane.b32.xlu0 %v6231_v21, %s6640_s4  ;;  %v6233_v37 = vpop.eup %6232  ;;  %v2239_v21 = vrot.slane %v6830_v36, %v7533_v6 }
0x14b1   :  { %v6235_v59 = vpop.eup %6234  ;;  %v1386_v16 = vadd.f32 1.0, %v6233_v37  ;;  %v2618_v37 = vcombine.high %v2610_v54, %v2610_v54 }
0x14b2   :  { %v1411_v24 = vadd.f32 1.0, %v6235_v59  ;;  %v2512_v59 = vrot.slane %v7034_v5, %v6913_v34 }
0x14b3   :  { %6236 = vrcp.f32 %v1386_v16  ;;  %v7549_v16 = vrot.slane %v2610_v54, %v6913_v34 }
0x14b4   :  { %6238 = vrcp.f32 %v1411_v24  ;;  %v2505_v24 = vcombine.high %v7034_v5, %v7034_v5 }
0x14b5   :  { %v2648_v42 = vcombine.high %v7549_v16, %v7549_v16 }
0x14b6   :  { %v2519_v23 = vrot.slane %v2505_v24, %v6913_v34 }
0x14bd   :  { %v7475_v17 = vpop.eup %6236 }
0x14be   :  { %v7477_v58 = vpop.eup %6238  ;;  %v1390_v2 = vmul.f32 %v7475_v17, %v7404_v45  ;;  %v7502_v45 = vsub.s32 2, %v6910_v52 }
0x14bf   :  { %v1415_v18 = vmul.f32 %v7477_v58, %v1328_v3 }
0x14c0   :  { %8836 = vst [vmem:[#allocation20_spill] sm:$0xff] %v7502_v45  ;;  %v2204_v43 = vrot.slane %v6830_v36, %v7502_v45 }
0x1521   :  { %v1393_v26 = vpop.permute.xlu1 %1392 }
0x1522   :  { %v1418_v57 = vpop.permute.xlu0 %1417  ;;  %v1395_v27 = vmul.f32 %v7475_v17, %v1393_v26  ;;  %v7557_v26 = vrot.slane %v2618_v37, %v6913_v34 }
0x1523   :  { %v1420_v20 = vmul.f32 %v7477_v58, %v1418_v57  ;;  %v2520_v57 = vcombine.high %v2512_v59, %v2512_v59 }
0x1524   :  { %1397 = vrot.lane.b32.xlu1 %v1395_v27, %s6641_s17  ;;  %8843 = vst [vmem:[#allocation27_spill] sm:$0xff] %v7557_v26 }
0x1525   :  { %1422 = vrot.lane.b32.xlu0 %v1420_v20, %s6641_s17 }
0x1528   :  { %1438 = vperm.xlu1 %6083, %v6835_v39  }
0x1529   :  { %1433 = vperm.xlu0 %6082, %v6830_v36  }
0x152c   :  { %6084 = vset.pattern.permute.xlu1 %v6650_v29 }
0x152d   :  { %6085 = vset.pattern.permute.xlu0 %v6650_v29  ;;  %v7495_v29 = vsub.s32 1, %v6910_v52  ;;  %v2561_v52 = vrot.slane %v6937_v1, %v6913_v34 }
0x152f   :  { %8835 = vst [vmem:[#allocation19_spill] sm:$0xff] %v7495_v29  ;;  %v2197_v25 = vrot.slane %v6830_v36, %v7495_v29  ;;  %v2554_v36 = vcombine.high %v6937_v1, %v6937_v1  ;;  %v2569_v55 = vcombine.high %v2561_v52, %v2561_v52  ;;  %v7563_v20 = vrot.slane %v2561_v52, %v6913_v34 }
0x1530   :  { %v2456_v1 = vcombine.high %v7146_v32, %v7146_v32 }
0x1531   :  { %v7560_v27 = vrot.slane %v2554_v36, %v6913_v34  ;;  %v7575_v3 = vrot.slane %v2569_v55, %v6913_v34 }
0x1533   :  { %8844 = vst [vmem:[#allocation28_spill] sm:$0xff] %v7560_v27 }
0x1596   :  { %v1398_v49 = vpop.permute.xlu1 %1397 }
0x1597   :  { %v1423_v39 = vpop.permute.xlu0 %1422  ;;  %v1400_v53 = vadd.f32 %v1398_v49, %v1390_v2  ;;  %v2650_v2 = vcombine.high %v7557_v26, %v7557_v26 }
0x1598   :  { %v1425_v62 = vadd.f32 %v1423_v39, %v1415_v18  ;;  %v2463_v18 = vrot.slane %v7146_v32, %v6913_v34  ;;  %v7584_v39 = vrot.slane %v2520_v57, %v6913_v34  ;;  %v7597_v32 = vrot.slane %v7560_v27, %v6913_v34 }
0x1599   :  { %6240 = vtanh.f32 %v1400_v53  ;;  %v7612_v48 = vrot.slane %v2650_v2, %v6934_v63  ;;  %v2521_v57 = vcombine.high %v2519_v23, %v2519_v23 }
0x159a   :  { %6242 = vtanh.f32 %v1425_v62  ;;  %v7589_v62 = vrot.slane %v2512_v59, %v6913_v34  ;;  %8846 = vst [vmem:[#allocation30_spill] sm:$0xff] %v7597_v32  ;;  %v2552_v54 = vcombine.high %v7584_v39, %v7584_v39 }
0x159b   :  { %8848 = vst [vmem:[#allocation32_spill] sm:$0xff] %v7612_v48 }
0x159c   :  { %v2550_v37 = vcombine.high %v7589_v62, %v7589_v62 }
0x15a3   :  { %v6241_v14 = vpop.eup %6240 }
0x15a4   :  { %v6243_v31 = vpop.eup %6242  ;;  %1403 = vrot.lane.b32.xlu0 %v6241_v14, %s6642_s18  ;;  %v7659_v14 = vrot.slane %v2550_v37, %v6934_v63 }
0x15a5   :  { %1428 = vrot.lane.b32.xlu1 %v6243_v31, %s6642_s18  ;;  %v2599_v31 = vcombine.high %v7563_v20, %v7563_v20 }
0x15a6   :  { %8854 = vst [vmem:[#allocation38_spill] sm:$0xff] %v7659_v14 }
0x15a7   :  { %v7628_v59 = vrot.slane %v2599_v31, %v6934_v63 }
0x15a8   :  { %2199 = vbcast.lane.b32.xlu0 %v2197_v25, 256  ;;  %v2470_v25 = vrot.slane %v2456_v1, %v6913_v34  ;;  %v2365_v1 = vrot.slane %v7330_v33, %v6913_v34  ;;  %v1434_v9 = vpop.permute.xlu0 %1433 }
0x15a9   :  { %241 = vperm.xlu1 %6084, %v6518_v44   ;;  %v2414_v44 = vrot.slane %v7236_v22, %v6913_v34  ;;  %8850 = vst [vmem:[#allocation34_spill] sm:$0xff] %v7628_v59 }
0x15aa   :  { %v7636_v24 = vrot.slane %v2470_v25, %v6913_v34  ;;  %v2472_v36 = vcombine.high %v2470_v25, %v2470_v25  ;;  %v7671_v25 = vrot.slane %v2521_v57, %v6913_v34  ;;  %v2373_v37 = vcombine.high %v2365_v1, %v2365_v1 }
0x15ab   :  { %v2422_v55 = vcombine.high %v2414_v44, %v2414_v44 }
0x15ac   :  { %2192 = vbcast.lane.b32.xlu0 %v2190_v41, 256  ;;  %v7603_v41 = vrot.slane %v2648_v42, %v6934_v63  ;;  %8851 = vst [vmem:[#allocation35_spill] sm:$0xff] %v7636_v24  ;;  %8855 = vst [vmem:[#allocation39_spill] sm:$0xff] %v7671_v25 }
0x15ad   :  { %2206 = vbcast.lane.b32.xlu1 %v2204_v43, 256  ;;  %v7664_v52 = vrot.slane %v2422_v55, %v6913_v34 }
0x15ae   :  { %6107 = vset.pattern.permute.xlu1 %v6638_v10  ;;  %8847 = vst [vmem:[#allocation31_spill] sm:$0xff] %v7603_v41 }
0x15b0   :  { %2220 = vbcast.lane.b32.xlu0 %v2218_v46, 256 }
0x15b1   :  { %2213 = vbcast.lane.b32.xlu1 %v2211_v13, 256  ;;  %v2601_v13 = vcombine.high %v7575_v3, %v7575_v3 }
0x15b3   :  { %v7643_v2 = vrot.slane %v2601_v13, %v6934_v63  ;;  %v2358_v13 = vcombine.high %v7330_v33, %v7330_v33  ;;  %v7674_v33 = vrot.slane %v2414_v44, %v6913_v34 }
0x15b4   :  { %2234 = vbcast.lane.b32.xlu0 %v2232_v60, 256  ;;  %v7615_v60 = vrot.slane %v2519_v23, %v6913_v34 }
0x15b5   :  { %2227 = vbcast.lane.b32.xlu1 %v2225_v8, 256  ;;  %v2471_v8 = vcombine.high %v2463_v18, %v2463_v18  ;;  %8852 = vst [vmem:[#allocation36_spill] sm:$0xff] %v7643_v2  ;;  %v2372_v44 = vrot.slane %v2358_v13, %v6913_v34  ;;  %v2452_v7 = vcombine.high %v7674_v33, %v7674_v33 }
0x15b6   :  { %8849 = vst [vmem:[#allocation33_spill] sm:$0xff] %v7615_v60  ;;  %v2551_v31 = vcombine.high %v7615_v60, %v7615_v60  ;;  %v8859_v60 = vmov 0.0  }
0x15b7   :  { %v7649_v43 = vrot.slane %v2471_v8, %v6913_v34 }
0x15b8   :  { %3197 = vperm.xlu0 %6085, %v3194_v56   ;;  %v2407_v56 = vcombine.high %v7236_v22, %v7236_v22  ;;  %v7633_v22 = vrot.slane %v2463_v18, %v6913_v34 }
0x15b9   :  { %2241 = vbcast.lane.b32.xlu1 %v2239_v21, 256  ;;  %v1439_v21 = vpop.permute.xlu1 %1438  ;;  %v2503_v57 = vcombine.high %v7649_v43, %v7649_v43 }
0x15ba   :  { %v2421_v18 = vrot.slane %v2407_v56, %v6913_v34  ;;  %v2501_v8 = vcombine.high %v7633_v22, %v7633_v22  ;;  %v7678_v56 = vrot.slane %v2551_v31, %v6934_v63  ;;  %v7696_v31 = vrot.slane %v2365_v1, %v6913_v34 }
0x15bb   :  { %v7715_v50 = vrot.slane %v2503_v57, %v6934_v63 }
0x15bc   :  { %6106 = vset.pattern.permute.xlu0 %v6638_v10  ;;  %v7552_v10 = vrot.slane %v2603_v38, %v6913_v34  ;;  %v7654_v38 = vrot.slane %v2552_v54, %v6934_v63  ;;  %v2502_v54 = vcombine.high %v7636_v24, %v7636_v24  ;;  %8856 = vst [vmem:[#allocation40_spill] sm:$0xff] %v7678_v56 }
0x15bd   :  { %v2423_v55 = vcombine.high %v2421_v18, %v2421_v18  ;;  %v7681_v23 = vrot.slane %v2421_v18, %v6913_v34  ;;  %v2454_v18 = vcombine.high %v7664_v52, %v7664_v52  ;;  %v7701_v42 = vrot.slane %v2501_v8, %v6934_v63 }
0x15be   :  { %8842 = vst [vmem:[#allocation26_spill] sm:$0xff] %v7552_v10  ;;  %v7571_v5 = vrot.slane %v7552_v10, %v6913_v34  ;;  %8853 = vst [vmem:[#allocation37_spill] sm:$0xff] %v7654_v38  ;;  %v7704_v13 = vrot.slane %v2502_v54, %v6934_v63  ;;  %v2374_v10 = vcombine.high %v2372_v44, %v2372_v44 }
0x15bf   :  { %v2453_v8 = vcombine.high %v7681_v23, %v7681_v23  ;;  %v7720_v54 = vrot.slane %v2423_v55, %v6913_v34  ;;  %v7735_v55 = vrot.slane %v2454_v18, %v6934_v63 }
0x15c0   :  { %8845 = vst [vmem:[#allocation29_spill] sm:$0xff] %v7571_v5  ;;  %8858 = vst [vmem:[#allocation42_spill] sm:$0xff] %v7704_v13  ;;  %v7723_v5 = vrot.slane %v2372_v44, %v6913_v34  ;;  %v7753_v48 = vrot.slane %v2374_v10, %v6913_v34 }
0x1616   :  { %v1404_v46 = vpop.permute.xlu0 %1403 }
0x1617   :  { %v1429_v53 = vpop.permute.xlu1 %1428  ;;  %v1406_v6 = vmul.f32 %v7475_v17, %v1404_v46  ;;  %v1441_v17 = vmul.f32 %v1439_v21, %v7416_v4  ;;  %v2316_v46 = vrot.slane %v7416_v4, %v6913_v34  ;;  %v7741_v21 = vrot.slane %v2452_v7, %v6934_v63 }
0x1618   :  { %v1431_v49 = vmul.f32 %v7477_v58, %v1429_v53  ;;  %v7693_v53 = vrot.slane %v2472_v36, %v6913_v34  ;;  %v7709_v58 = vrot.slane %v2373_v37, %v6913_v34 }
0x1619   :  { %v1802_v1 = vrot.slane %v1406_v6, %v6913_v34  ;;  %v2324_v41 = vcombine.high %v2316_v46, %v2316_v46 }
0x161a   :  { %8857 = vst [vmem:[#allocation41_spill] sm:$0xff] %v7693_v53  ;;  %v1436_v36 = vmul.f32 %v1434_v9, %v1431_v49  ;;  %v2309_v9 = vcombine.high %v7416_v4, %v7416_v4  ;;  %v2403_v49 = vcombine.high %v7696_v31, %v7696_v31  ;;  %v2405_v57 = vcombine.high %v7709_v58, %v7709_v58  ;;  %v7766_v27 = vpop.permute.xlu0 %2199 }
0x161b   :  { %v7746_v4 = vrot.slane %v2453_v8, %v6934_v63  ;;  %v1818_v10 = vrot.slane %v1802_v1, %v6913_v34 }
0x161c   :  { %v1442_v44 = vadd.f32 %v1441_v17, %v1436_v36  ;;  %v2404_v36 = vcombine.high %v7723_v5, %v7723_v5  ;;  %v2323_v7 = vrot.slane %v2309_v9, %v6913_v34  ;;  %v1795_v17 = vcombine.high %v1406_v6, %v1406_v6 }
0x161d   :  { %v7762_v37 = vrot.slane %v2403_v49, %v6934_v63  ;;  %v7772_v6 = vrot.slane %v2405_v57, %v6934_v63  ;;  %v1840_v2 = vcombine.high %v1818_v10, %v1818_v10 }
0x161e   :  { %v2259_v18 = vrot.slane %v1442_v44, %v6913_v34  ;;  %v2325_v8 = vcombine.high %v2323_v7, %v2323_v7  ;;  %v1809_v56 = vrot.slane %v1795_v17, %v6913_v34  ;;  %v7781_v59 = vrot.slane %v2404_v36, %v6934_v63 }
0x161f   :  { %v7786_v57 = vrot.slane %v2323_v7, %v6913_v34  ;;  %v2095_v13 = vrot.slane %v1840_v2, %v6934_v63 }
0x1621   :  { %v2355_v17 = vcombine.high %v7786_v57, %v7786_v57 }
0x1628   :  { %v242_v25 = vpop.permute.xlu1 %241 }
0x1629   :  { %vm243_vm1 = vcmp.lt.s32.totalorder %v6825_v30, %v242_v25  ;;  %v2332_v30 = vrot.slane %v2316_v46, %v6913_v34  ;;  %v1810_v25 = vcombine.high %v1802_v1, %v1802_v1  ;;  %v2346_v1 = vrot.slane %v2324_v41, %v6913_v34 }
0x162a   :  { %v7769_v32 = vsel %vm243_vm1, 1.0, %v8859_v60  ;;  %v2252_v46 = vcombine.high %v1442_v44, %v1442_v44  ;;  %v7798_v41 = vrot.slane %v2325_v8, %v6913_v34  ;;  %vm2178_vm1 = vcmask 1046528  }
0x162b   :  { %8860 = vst [vmem:[#allocation43_spill] sm:$0xff] %v7769_v32  ;;  %v3090_v9 = vrot.slane %v7769_v32, %v7502_v45  ;;  %v3083_v49 = vrot.slane %v7769_v32, %v7495_v29  ;;  %v2267_v45 = vcombine.high %v2259_v18, %v2259_v18  ;;  %v2275_v29 = vrot.slane %v2259_v18, %v6913_v34 }
0x162c   :  { %v2354_v36 = vcombine.high %v2332_v30, %v2332_v30  ;;  %v1832_v53 = vrot.slane %v1810_v25, %v6913_v34  ;;  %v3097_v60 = vrot.slane %v7769_v32, %v7513_v0  ;;  %v3076_v7 = vrot.slane %v7769_v32, %v6934_v63  ;;  %v2207_v24 = vpop.permute.xlu1 %2206 }
0x162d   :  { %3092 = vbcast.lane.b32.xlu1 %v3090_v9, 256  ;;  %3085 = vbcast.lane.b32.xlu0 %v3083_v49, 256  ;;  %v2655_v44 = vrot.slane %v2332_v30, %v6934_v63  ;;  %v1825_v18 = vrot.slane %v1809_v56, %v6913_v34  ;;  %v2087_v9 = vrot.slane %v1818_v10, %v6934_v63  ;;  %v2193_v49 = vpop.permute.xlu0 %2192 }
0x162e   :  { %v2356_v25 = vcombine.high %v2346_v1, %v2346_v1  ;;  %v2266_v26 = vrot.slane %v2252_v46, %v6913_v34  ;;  %v2659_v0 = vrot.slane %v2346_v1, %v6934_v63  ;;  %v2289_v8 = vrot.slane %v2267_v45, %v6913_v34 }
0x162f   :  { %v2932_v30 = vsel %vm2124_vm11, %v2275_v29, %v2655_v44  ;;  %v2663_v10 = vrot.slane %v2354_v36, %v6934_v63  ;;  %v2091_v14 = vrot.slane %v1832_v53, %v6934_v63  ;;  %v3111_v38 = vrot.slane %v7769_v32, %v7524_v11 }
0x1630   :  { %v1811_v46 = vcombine.high %v1809_v56, %v1809_v56  ;;  %v2179_v1 = vsel %vm2178_vm1, %v7437_v15, %v2087_v9  ;;  %v2103_v45 = vrot.slane %v1825_v18, %v6934_v63  ;;  %v2282_v44 = vrot.slane %v2266_v26, %v6913_v34 }
0x1631   :  { %3099 = vbcast.lane.b32.xlu1 %v3097_v60, 256  ;;  %3078 = vbcast.lane.b32.xlu0 %v3076_v7, 256  ;;  %v3104_v60 = vrot.slane %v7769_v32, %v7508_v61  ;;  %v1841_v7 = vcombine.high %v1825_v18, %v1825_v18  ;;  %v2297_v2 = vcombine.high %v2275_v29, %v2275_v29  ;;  %v2221_v56 = vpop.permute.xlu0 %2220 }
0x1632   :  { %v8861_v36 = vrot.slane %v7696_v31, %v6934_v63  ;;  %v2299_v12 = vcombine.high %v2289_v8, %v2289_v8  ;;  %v2933_v61 = vsel %vm2124_vm11, %v2289_v8, %v2659_v0  ;;  %v2181_v15 = vsel %vm2178_vm1, %v7446_v35, %v2095_v13 }
0x1633   :  { %v1842_v9 = vcombine.high %v1832_v53, %v1832_v53  ;;  %v2180_v18 = vsel %vm2178_vm1, %v7431_v40, %v2091_v14  ;;  %v2243_v32 = vmul.f32 %v2193_v49, %v2179_v1  ;;  %v2245_v29 = vmul.f32 %v2207_v24, %v2181_v15 }
0x1634   :  { %v2940_v11 = vsel %vm2133_vm12, %v2932_v30, %v8861_v36  ;;  %v2183_v31 = vsel %vm2178_vm1, %v7441_v47, %v2103_v45  ;;  %v2111_v30 = vrot.slane %v1841_v7, %v6934_v63  ;;  %v2214_v36 = vpop.permute.xlu1 %2213  ;;  %v8862_v0 = vrot.slane %v7674_v33, %v6934_v63 }
0x1635   :  { %3113 = vbcast.lane.b32.xlu1 %v3111_v38, 256  ;;  %3106 = vbcast.lane.b32.xlu0 %v3104_v60, 256  ;;  %v2667_v38 = vrot.slane %v2356_v25, %v6934_v63  ;;  %v2268_v60 = vcombine.high %v2266_v26, %v2266_v26  ;;  %v2671_v53 = vrot.slane %v7786_v57, %v6934_v63 }
0x1636   :  { %v2948_v35 = vsel %vm2142_vm13, %v2940_v11, %v8862_v0  ;;  %v1839_v40 = vrot.slane %v1811_v46, %v6913_v34  ;;  %v8863_v47 = vrot.slane %v7709_v58, %v6934_v63  ;;  %v2298_v14 = vcombine.high %v2282_v44, %v2282_v44 }
0x1637   :  { %v2934_v24 = vsel %vm2124_vm11, %v2297_v2, %v2663_v10  ;;  %v2099_v33 = vrot.slane %v1842_v9, %v6934_v63  ;;  %v2935_v11 = vsel %vm2124_vm11, %v2299_v12, %v2667_v38  ;;  %v2244_v13 = vmul.f32 %v7766_v27, %v2180_v18  ;;  %v2235_v10 = vpop.permute.xlu0 %2234 }
0x1638   :  { %v2941_v26 = vsel %vm2133_vm12, %v2933_v61, %v8863_v47  ;;  %v2247_v57 = vmul.f32 %v2221_v56, %v2183_v31  ;;  %v8864_v49 = vrot.slane %v7633_v22, %v6934_v63  ;;  %v2679_v25 = vrot.slane %v2355_v17, %v6934_v63  ;;  %v2228_v1 = vpop.permute.xlu1 %2227 }
0x1639   :  { %3000 = vrot.lane.b32.xlu0 %v2245_v29, %s6643_s19  ;;  %2996 = vrot.lane.b32.xlu1 %v2243_v32, %s6643_s19  ;;  %v2296_v58 = vrot.slane %v2268_v60, %v6913_v34  ;;  %v2936_v61 = vsel %vm2124_vm11, %v2282_v44, %v2671_v53  ;;  %v2185_v8 = vsel %vm2178_vm1, %v7452_v19, %v2111_v30 }
0x163a   :  { %v2956_v32 = vsel %vm2151_vm14, %v2948_v35, %v8864_v49  ;;  %v8865_v12 = vrot.slane %v7664_v52, %v6934_v63  ;;  %v2107_v46 = vrot.slane %v1839_v40, %v6934_v63  ;;  %v2943_v22 = vsel %vm2133_vm12, %v2935_v11, %v7772_v6 }
0x163b   :  { %v2942_v17 = vsel %vm2133_vm12, %v2934_v24, %v7762_v37  ;;  %v2182_v19 = vsel %vm2178_vm1, %v7456_v51, %v2099_v33  ;;  %v1843_v45 = vcombine.high %v1839_v40, %v1839_v40  ;;  %v8866_v52 = vrot.slane %v7589_v62, %v6934_v63  ;;  %v8876_v33 = vld [vmem:[#allocation37_spill] sm:$0xff] }
0x163c   :  { %v2949_v27 = vsel %vm2142_vm13, %v2941_v26, %v8865_v12  ;;  %v2938_v44 = vsel %vm2124_vm11, %v2298_v14, %v2679_v25  ;;  %v2357_v2 = vcombine.high %v7798_v41, %v7798_v41  ;;  %v2249_v56 = vmul.f32 %v2235_v10, %v2185_v8  ;;  %v8875_v14 = vld [vmem:[#allocation18_spill] sm:$0xff]  ;;  %v8879_v25 = vld [vmem:[#allocation35_spill] sm:$0xff] }
0x163d   :  { %2998 = vrot.lane.b32.xlu1 %v2244_v13, %s6643_s19  ;;  %3004 = vrot.lane.b32.xlu0 %v2247_v57, %s6643_s19  ;;  %v2964_v7 = vsel %vm2160_vm15, %v2956_v32, %v8866_v52  ;;  %v2246_v6 = vmul.f32 %v2214_v36, %v2182_v19  ;;  %v8867_v37 = vrot.slane %v7649_v43, %v6934_v63  ;;  %v8877_v13 = vld [vmem:[#allocation38_spill] sm:$0xff]  ;;  %v8881_v10 = vld [vmem:[#allocation27_spill] sm:$0xff] }
0x163e   :  { %v2300_v51 = vcombine.high %v2296_v58, %v2296_v58  ;;  %v2951_v9 = vsel %vm2142_vm13, %v2943_v22, %v7735_v55  ;;  %v2950_v62 = vsel %vm2142_vm13, %v2942_v17, %v7741_v21  ;;  %v2675_v18 = vrot.slane %v7798_v41, %v6934_v63  ;;  %v8878_v32 = vld [vmem:[#allocation42_spill] sm:$0xff] }
0x163f   :  { %v2957_v15 = vsel %vm2151_vm14, %v2949_v27, %v8867_v37  ;;  %v8868_v29 = vrot.slane %v7563_v20, %v6934_v63  ;;  %v2946_v38 = vsel %vm2133_vm12, %v2938_v44, %v7781_v59  ;;  %v8869_v55 = vrot.slane %v7723_v5, %v6934_v63 }
0x1640   :  { %v2184_v41 = vsel %vm2178_vm1, %v7460_v28, %v2107_v46  ;;  %v2115_v60 = vrot.slane %v1843_v45, %v6934_v63  ;;  %v8870_v31 = vrot.slane %v7584_v39, %v6934_v63  ;;  %v2937_v30 = vsel %vm2124_vm11, %v2296_v58, %v2675_v18  ;;  %v2242_v28 = vpop.permute.xlu1 %2241  ;;  %v8883_v46 = vld [vmem:[#allocation41_spill] sm:$0xff]  ;;  %v8885_v45 = vld [vmem:[#allocation36_spill] sm:$0xff] }
0x1641   :  { %3002 = vrot.lane.b32.xlu0 %v2246_v6, %s6643_s19  ;;  %3008 = vrot.lane.b32.xlu1 %v2249_v56, %s6643_s19  ;;  %v2972_v43 = vsel %vm2169_vm9, %v2964_v7, %v8868_v29  ;;  %v2944_v21 = vsel %vm2133_vm12, %v2936_v61, %v8869_v55  ;;  %v2248_v36 = vmul.f32 %v2228_v1, %v2184_v41  ;;  %v8886_v7 = vld [vmem:[#allocation34_spill] sm:$0xff]  ;;  %v8887_v56 = vld [vmem:[#allocation40_spill] sm:$0xff] }
0x1642   :  { %v2965_v20 = vsel %vm2160_vm15, %v2957_v15, %v8870_v31  ;;  %v2959_v59 = vsel %vm2151_vm14, %v2951_v9, %v7715_v50  ;;  %v2958_v5 = vsel %vm2151_vm14, %v2950_v62, %v7701_v42  ;;  %v2406_v0 = vcombine.high %v7753_v48, %v7753_v48  ;;  %v8888_v6 = vld [vmem:[#allocation30_spill] sm:$0xff]  ;;  %v8889_v15 = vld [vmem:[#allocation33_spill] sm:$0xff]  ;;  %v8895_v31 = vld [vmem:[#allocation32_spill] sm:$0xff] }
0x1643   :  { %v8871_v35 = vrot.slane %v7549_v16, %v6934_v63  ;;  %v2954_v53 = vsel %vm2142_vm13, %v2946_v38, %v7746_v4  ;;  %v8872_v40 = vrot.slane %v7681_v23, %v6934_v63  ;;  %v2683_v47 = vrot.slane %v2357_v2, %v6934_v63 }
0x1644   :  { %v8873_v42 = vrot.slane %v7575_v3, %v6934_v63  ;;  %v8874_v26 = vrot.slane %v7753_v48, %v6934_v63  ;;  %v2455_v23 = vcombine.high %v7720_v54, %v7720_v54  ;;  %v2186_v24 = vsel %vm2178_vm1, %v8875_v14, %v2115_v60 }
0x1645   :  { %v2980_v39 = vsel %vm2178_vm1, %v2972_v43, %v8871_v35  ;;  %v2952_v50 = vsel %vm2142_vm13, %v2944_v21, %v8872_v40  ;;  %3006 = vrot.lane.b32.xlu0 %v2248_v36, %s6643_s19  ;;  %v2967_v11 = vsel %vm2160_vm15, %v2959_v59, %v8876_v33  ;;  %v2966_v57 = vsel %vm2160_vm15, %v2958_v5, %v8877_v13  ;;  %v8892_v43 = vld [vmem:[#allocation28_spill] sm:$0xff]  ;;  %v8894_v21 = vld [vmem:[#allocation39_spill] sm:$0xff] }
0x1646   :  { %3028 = vrot.lane.b32.xlu1 %v2980_v39, %s6642_s18  ;;  %v2973_v16 = vsel %vm2169_vm9, %v2965_v20, %v8873_v42  ;;  %v2945_v4 = vsel %vm2133_vm12, %v2937_v30, %v8874_v26  ;;  %v2939_v3 = vsel %vm2124_vm11, %v2300_v51, %v2683_v47  ;;  %v2250_v49 = vmul.f32 %v2242_v28, %v2186_v24  ;;  %v8896_v30 = vld [vmem:[#allocation31_spill] sm:$0xff]  ;;  %v8897_v39 = vld [vmem:[#allocation29_spill] sm:$0xff]  ;;  %v8899_v47 = vld [vmem:[#allocation26_spill] sm:$0xff] }
0x1647   :  { %v2962_v48 = vsel %vm2151_vm14, %v2954_v53, %v8878_v32  ;;  %v8880_v58 = vrot.slane %v8879_v25, %v6934_v63  ;;  %v2723_v8 = vrot.slane %v2406_v0, %v6934_v63  ;;  %v8882_v12 = vrot.slane %v8881_v10, %v6934_v63  ;;  %v3068_v32 = vld [vmem:[#allocation11] sm:$0xff]  ;;  %v8901_v25 = vld [vmem:[#allocation23_spill] sm:$0xff] }
0x1648   :  { %v2795_v22 = vrot.slane %v8883_v46, %v6934_v63  ;;  %v8884_v17 = vrot.slane %v7720_v54, %v6934_v63  ;;  %v2504_v1 = vcombine.high %v8883_v46, %v8883_v46  ;;  %v2975_v52 = vsel %vm2169_vm9, %v2967_v11, %v8885_v45 }
0x1649   :  { %v2960_v61 = vsel %vm2151_vm14, %v2952_v50, %v8880_v58  ;;  %v2981_v27 = vsel %vm2178_vm1, %v2973_v16, %v8882_v12  ;;  %3010 = vrot.lane.b32.xlu0 %v2250_v49, %s6643_s19  ;;  %v2974_v44 = vsel %vm2169_vm9, %v2966_v57, %v8886_v7  ;;  %v2947_v2 = vsel %vm2133_vm12, %v2939_v3, %v2723_v8  ;;  %v8902_v58 = vld [vmem:[#allocation43_spill] sm:$0xff] }
0x164a   :  { %v2953_v19 = vsel %vm2142_vm13, %v2945_v4, %v8884_v17  ;;  %3030 = vrot.lane.b32.xlu1 %v2981_v27, %s6642_s18  ;;  %v2970_v54 = vsel %vm2160_vm15, %v2962_v48, %v8887_v56  ;;  %v2871_v37 = vrot.slane %v8888_v6, %v6934_v63  ;;  %v8890_v51 = vrot.slane %v8889_v15, %v6934_v63  ;;  %v3069_v48 = vld [vmem:[#allocation11 + $0x8] sm:$0xff]  ;;  %v3070_v17 = vld [vmem:[#allocation11 + $0x10] sm:$0xff]  ;;  %v8040_v56 = vpop.permute.xlu0 %3197 }
0x164b   :  { %v2763_v62 = vrot.slane %v2455_v23, %v6934_v63  ;;  %v8891_v18 = vcombine.high %v8888_v6, %v8888_v6  ;;  %v8893_v38 = vcombine.high %v8892_v43, %v8892_v43  ;;  %v2835_v41 = vrot.slane %v8894_v21, %v6934_v63 }
0x164c   :  { %v2968_v9 = vsel %vm2160_vm15, %v2960_v61, %v8890_v51  ;;  %v2961_v60 = vsel %vm2151_vm14, %v2953_v19, %v2795_v22  ;;  %v2983_v20 = vsel %vm2178_vm1, %v2975_v52, %v8895_v31  ;;  %v2982_v36 = vsel %vm2178_vm1, %v2974_v44, %v8896_v30  ;;  %v3071_v19 = vld [vmem:[#allocation11 + $0x18] sm:$0xff] }
0x164d   :  { %v2879_v29 = vrot.slane %v8891_v18, %v6934_v63  ;;  %v2598_v55 = vrot.slane %v8893_v38, %v6913_v34  ;;  %v2553_v59 = vcombine.high %v8894_v21, %v8894_v21  ;;  %v2955_v5 = vsel %vm2142_vm13, %v2947_v2, %v2763_v62  ;;  %3034 = vrot.lane.b32.xlu0 %v2983_v20, %s6642_s18  ;;  %v8049_v38 = vld [vmem:[%s8798_s6] sm:$0x3] }
0x164e   :  { %3032 = vrot.lane.b32.xlu1 %v2982_v36, %s6642_s18  ;;  %v2976_v28 = vsel %vm2169_vm9, %v2968_v9, %v2871_v37  ;;  %v2803_v35 = vrot.slane %v2504_v1, %v6934_v63  ;;  %v8898_v53 = vcombine.high %v8897_v39, %v8897_v39  ;;  %v2911_v50 = vrot.slane %v8897_v39, %v6934_v63  ;;  %v8903_v1 = vld [vmem:[#allocation25_spill] sm:$0xff] }
0x164f   :  { %v2978_v0 = vsel %vm2169_vm9, %v2970_v54, %v2879_v29  ;;  %v8900_v42 = vcombine.high %v8899_v47, %v8899_v47  ;;  %v2969_v26 = vsel %vm2160_vm15, %v2961_v60, %v2835_v41  ;;  %v2875_v4 = vrot.slane %v2598_v55, %v6934_v63  ;;  %v8905_v41 = vld [vmem:[#allocation19_spill] sm:$0xff] }
0x1650   :  { %v2919_v40 = vrot.slane %v8898_v53, %v6934_v63  ;;  %v2602_v23 = vcombine.high %v2598_v55, %v2598_v55  ;;  %v2963_v14 = vsel %vm2151_vm14, %v2955_v5, %v2803_v35  ;;  %v2984_v33 = vsel %vm2178_vm1, %v2976_v28, %v2911_v50 }
0x1651   :  { %v2647_v16 = vrot.slane %v8900_v42, %v6913_v34  ;;  %v2843_v11 = vrot.slane %v2553_v59, %v6934_v63  ;;  %v2977_v13 = vsel %vm2169_vm9, %v2969_v26, %v2875_v4  ;;  %v3118_v61 = vrot.slane %v8902_v58, %v8901_v25 }
0x1652   :  { %v2986_v24 = vsel %vm2178_vm1, %v2978_v0, %v2919_v40  ;;  %3036 = vrot.lane.b32.xlu1 %v2984_v33, %s6642_s18  ;;  %v2883_v8 = vrot.slane %v2602_v23, %v6934_v63  ;;  %v6086_v27 = vpack.i.bf16 %v3069_v48, %v3068_v32  ;;  %v3125_v45 = vrot.slane %v8902_v58, %v8903_v1 }
0x1653   :  { %3040 = vrot.lane.b32.xlu0 %v2986_v24, %s6642_s18  ;;  %v2915_v57 = vrot.slane %v2647_v16, %v6934_v63  ;;  %v2651_v3 = vcombine.high %v2647_v16, %v2647_v16  ;;  %v2971_v49 = vsel %vm2160_vm15, %v2963_v14, %v2843_v11  ;;  %v6091_v52 = vpack.i.bf16 %v3071_v19, %v3070_v17 }
0x1654   :  { %v2979_v12 = vsel %vm2169_vm9, %v2971_v49, %v2883_v8  ;;  %v6013_v7 = vpack.c.bf16 %v3069_v48, %v3068_v32  ;;  %v6016_v44 = vpack.c.bf16 %v3071_v19, %v3070_v17  ;;  %v8904_v2 = vmov 0.0|0.0  }
0x1655   :  { %v2985_v10 = vsel %vm2178_vm1, %v2977_v13, %v2915_v57  ;;  %v2923_v46 = vrot.slane %v2651_v3, %v6934_v63  ;;  %v8053_v60 = vrot.slane %v8049_v38, %v8905_v41  ;;  %v3199_v5 = vrot.slane %v8040_v56, 1 }
0x1656   :  { %3038 = vrot.lane.b32.xlu1 %v2985_v10, %s6642_s18  ;;  %6014 = vmatpush3.bf16.msra.mxu0 %v6013_v7  ;;  %v3200_v0 = vrot.slane %v8040_v56, 2  ;;  %v3201_v47 = vrot.slane %v8040_v56, 3  ;;  %6244 = vrcp.f32 %v8040_v56  ;;  %v3202_v26 = vrot.slane %v8040_v56, 4 }
0x1657   :  { %3120 = vbcast.lane.b32.xlu0 %v3118_v61, 256  ;;  %v2987_v22 = vsel %vm2178_vm1, %v2979_v12, %v2923_v46  ;;  %6015 = vmatprep.subr.bf16.mxu0 %v8904_v2  ;;  %6246 = vrcp.f32 %v3199_v5  ;;  %v3203_v23 = vrot.slane %v8040_v56, 5  ;;  %v3204_v8 = vrot.slane %v8040_v56, 6 }
0x1658   :  { %6248 = vrcp.f32 %v3200_v0  ;;  %v3205_v10 = vrot.slane %v8040_v56, 7 }
0x1659   :  { %6250 = vrcp.f32 %v3201_v47 }
0x165a   :  { %3042 = vrot.lane.b32.xlu1 %v2987_v22, %s6642_s18  ;;  %6017 = vmatpush3.bf16.msra.mxu0 %v6016_v44  ;;  %6252 = vrcp.f32 %v3202_v26 }
0x165b   :  { %6087 = vrot.lane.b32.xlu0 %v6086_v27, %s6640_s4  ;;  %6254 = vrcp.f32 %v3203_v23 }
0x165c   :  { %6256 = vrcp.f32 %v3204_v8 }
0x165d   :  { %6258 = vrcp.f32 %v3205_v10 }
0x165e   :  { %3127 = vbcast.lane.b32.xlu1 %v3125_v45, 256 }
0x165f   :  { %6097 = vrot.lane.b32.xlu0 %v6086_v27, %s6629_s21 }
0x1662   :  { %6092 = vrot.lane.b32.xlu1 %v6091_v52, %s6640_s4 }
0x1666   :  { %6102 = vrot.lane.b32.xlu1 %v6091_v52, %s6629_s21 }
0x169f   :  { %v3093_v54 = vpop.permute.xlu1 %3092  ;;  %v3086_v6 = vpop.permute.xlu0 %3085 }
0x16a3   :  { %v3100_v37 = vpop.permute.xlu1 %3099  ;;  %v3079_v15 = vpop.permute.xlu0 %3078 }
0x16a7   :  { %v8042_v51 = vpop.permute.xlu1 %3113  ;;  %v8044_v9 = vpop.permute.xlu0 %3106 }
0x16ab   :  { %v2997_v62 = vpop.permute.xlu1 %2996  ;;  %v3001_v18 = vpop.permute.xlu0 %3000 }
0x16af   :  { %v2999_v29 = vpop.permute.xlu1 %2998  ;;  %v3005_v43 = vpop.permute.xlu0 %3004 }
0x16b3   :  { %v3009_v55 = vpop.permute.xlu1 %3008  ;;  %v3003_v21 = vpop.permute.xlu0 %3002 }
0x16b7   :  { %v8055_v20 = vpop.permute.xlu0 %3006 }
0x16b8   :  { %v3029_v31 = vpop.permute.xlu1 %3028 }
0x16b9   :  { %v8058_v30 = vsel %vm448_vm10, %v2997_v62, %v3029_v31  ;;  %v8116_v62 = vpop.eup %6244 }
0x16ba   :  { %3060 = vst.msk [vmem:[#allocation3] sm:$0xff] %vm145_vm0, %v8058_v30  ;;  %v3129_v36 = vmul.f32 %v3079_v15, %v8058_v30  ;;  %v3332_v59 = vmul.f32 %v8053_v60, %v8058_v30  ;;  %v6247_v31 = vpop.eup %6246 }
0x16bb   :  { %v8068_v39 = vpop.permute.xlu0 %3010 }
0x16bc   :  { %v3137_v28 = vsel %vm145_vm0, %v3129_v36, 0.0  ;;  %v3031_v35 = vpop.permute.xlu1 %3030  ;;  %v3340_v53 = vsel %vm145_vm0, %v3332_v59, 0.0 }
0x16bd   :  { %v3138_v40 = vrot.slane %v3137_v28, 4  ;;  %v8072_v50 = vsel %vm448_vm10, %v2999_v29, %v3031_v35  ;;  %3341 = vadd.xlane.f32.xlu1 %v3340_v53 }
0x16be   :  { %3061 = vst.msk [vmem:[#allocation3 + $0x8] sm:$0xff] %vm145_vm0, %v8072_v50  ;;  %v3130_v42 = vmul.f32 %v3086_v6, %v8072_v50  ;;  %v3333_v16 = vmul.f32 %v8053_v60, %v8072_v50 }
0x16bf   :  { %v3139_v4 = vadd.f32 %v3138_v40, %v3137_v28  ;;  %v3035_v33 = vpop.permute.xlu0 %3034  ;;  %v6249_v28 = vpop.eup %6248 }
0x16c0   :  { %v3144_v14 = vsel %vm145_vm0, %v3130_v42, 0.0  ;;  %v3033_v24 = vpop.permute.xlu1 %3032  ;;  %v3343_v11 = vsel %vm145_vm0, %v3333_v16, 0.0  ;;  %v8089_v49 = vsel %vm448_vm10, %v3003_v21, %v3035_v33 }
0x16c1   :  { %v3140_v13 = vrot.slane %v3139_v4, 2  ;;  %v3145_v57 = vrot.slane %v3144_v14, 4  ;;  %v8086_v3 = vsel %vm448_vm10, %v3001_v18, %v3033_v24  ;;  %3344 = vadd.xlane.f32.xlu0 %v3343_v11  ;;  %3063 = vst.msk [vmem:[#allocation3 + $0x18] sm:$0xff] %vm145_vm0, %v8089_v49  ;;  %v3132_v48 = vmul.f32 %v3100_v37, %v8089_v49 }
0x16c2   :  { %3062 = vst.msk [vmem:[#allocation3 + $0x10] sm:$0xff] %vm145_vm0, %v8086_v3  ;;  %v3131_v32 = vmul.f32 %v3093_v54, %v8086_v3  ;;  %v3334_v58 = vmul.f32 %v8053_v60, %v8086_v3  ;;  %v3335_v19 = vmul.f32 %v8053_v60, %v8089_v49 }
0x16c3   :  { %v3146_v61 = vadd.f32 %v3145_v57, %v3144_v14  ;;  %v3158_v27 = vsel %vm145_vm0, %v3132_v48, 0.0  ;;  %v3141_v45 = vadd.f32 %v3140_v13, %v3139_v4  ;;  %v6251_v4 = vpop.eup %6250 }
0x16c4   :  { %v3151_v12 = vsel %vm145_vm0, %v3131_v32, 0.0  ;;  %v3037_v46 = vpop.permute.xlu1 %3036  ;;  %v3346_v17 = vsel %vm145_vm0, %v3334_v58, 0.0  ;;  %v3159_v44 = vrot.slane %v3158_v27, 4  ;;  %v3349_v21 = vsel %vm145_vm0, %v3335_v19, 0.0  ;;  %v6253_v13 = vpop.eup %6252 }
0x16c5   :  { %v3041_v22 = vpop.permute.xlu0 %3040  ;;  %v3147_v52 = vrot.slane %v3146_v61, 2  ;;  %v3152_v7 = vrot.slane %v3151_v12, 4  ;;  %3347 = vadd.xlane.f32.xlu0 %v3346_v17  ;;  %v8107_v54 = vsel %vm448_vm10, %v3005_v43, %v3037_v46  ;;  %v3142_v36 = vrot.slane %v3141_v45, 1  ;;  %v6255_v17 = vpop.eup %6254 }
0x16c6   :  { %v8110_v56 = vsel %vm448_vm10, %v3009_v55, %v3041_v22  ;;  %v3160_v15 = vadd.f32 %v3159_v44, %v3158_v27  ;;  %3064 = vst.msk [vmem:[#allocation3 + $0x20] sm:$0xff] %vm145_vm0, %v8107_v54  ;;  %v3133_v18 = vmul.f32 %v8044_v9, %v8107_v54  ;;  %v3336_v55 = vmul.f32 %v8053_v60, %v8107_v54 }
0x16c7   :  { %v3148_v6 = vadd.f32 %v3147_v52, %v3146_v61  ;;  %v3153_v37 = vadd.f32 %v3152_v7, %v3151_v12  ;;  %3066 = vst.msk [vmem:[#allocation3 + $0x30] sm:$0xff] %vm145_vm0, %v8110_v56  ;;  %v3338_v33 = vmul.f32 %v8053_v60, %v8110_v56  ;;  %v3143_v12 = vadd.f32 %v3142_v36, %v3141_v45 }
0x16c8   :  { %v3039_v29 = vpop.permute.xlu1 %3038  ;;  %v3161_v0 = vrot.slane %v3160_v15, 2  ;;  %v3165_v35 = vsel %vm145_vm0, %v3133_v18, 0.0  ;;  %v3352_v40 = vsel %vm145_vm0, %v3336_v55, 0.0 }
0x16c9   :  { %v3121_v43 = vpop.permute.xlu0 %3120  ;;  %v3149_v59 = vrot.slane %v3148_v6, 1  ;;  %v3154_v5 = vrot.slane %v3153_v37, 2  ;;  %3350 = vadd.xlane.f32.xlu0 %v3349_v21  ;;  %v8126_v9 = vsel %vm448_vm10, %v8055_v20, %v3039_v29  ;;  %v3166_v26 = vrot.slane %v3165_v35, 4  ;;  %3353 = vadd.xlane.f32.xlu1 %v3352_v40 }
0x16ca   :  { %v3135_v53 = vmul.f32 %v3121_v43, %v8110_v56  ;;  %v3162_v16 = vadd.f32 %v3161_v0, %v3160_v15  ;;  %3065 = vst.msk [vmem:[#allocation3 + $0x28] sm:$0xff] %vm145_vm0, %v8126_v9  ;;  %v3134_v23 = vmul.f32 %v8042_v51, %v8126_v9  ;;  %v3337_v24 = vmul.f32 %v8053_v60, %v8126_v9 }
0x16cb   :  { %v3150_v47 = vadd.f32 %v3149_v59, %v3148_v6  ;;  %v3155_v42 = vadd.f32 %v3154_v5, %v3153_v37  ;;  %v3167_v58 = vadd.f32 %v3166_v26, %v3165_v35  ;;  %v3358_v18 = vsel %vm145_vm0, %v3338_v33, 0.0 }
0x16cc   :  { %v3179_v14 = vsel %vm145_vm0, %v3135_v53, 0.0  ;;  %v3043_v20 = vpop.permute.xlu1 %3042  ;;  %v3163_v48 = vrot.slane %v3162_v16, 1  ;;  %v3172_v61 = vsel %vm145_vm0, %v3134_v23, 0.0  ;;  %v3355_v10 = vsel %vm145_vm0, %v3337_v24, 0.0 }
0x16cd   :  { %v6088_v11 = vpop.permute.xlu0 %6087  ;;  %v8139_v57 = vmul.f32 %v6247_v31, %v3150_v47  ;;  %v3156_v32 = vrot.slane %v3155_v42, 1  ;;  %v3180_v8 = vrot.slane %v3179_v14, 4  ;;  %v8144_v51 = vsel %vm448_vm10, %v8068_v39, %v3043_v20  ;;  %3356 = vadd.xlane.f32.xlu1 %v3355_v10  ;;  %v6257_v39 = vpop.eup %6256 }
0x16ce   :  { %v3164_v46 = vadd.f32 %v3163_v48, %v3162_v16  ;;  %v3168_v22 = vrot.slane %v3167_v58, 2  ;;  %3067 = vst.msk [vmem:[#allocation3 + $0x38] sm:$0xff] %vm145_vm0, %v8144_v51  ;;  %v3173_v19 = vrot.slane %v3172_v61, 4  ;;  %v3339_v44 = vmul.f32 %v8053_v60, %v8144_v51  ;;  %v6259_v29 = vpop.eup %6258 }
0x16cf   :  { %v3157_v27 = vadd.f32 %v3156_v32, %v3155_v42  ;;  %v3181_v52 = vadd.f32 %v3180_v8, %v3179_v14  ;;  %v6090_v6 = vunpack.i.h.bf16 %v6088_v11  ;;  %v3242_v37 = vrot.slane %v8139_v57, 7 }
0x16d0   :  { %v3128_v7 = vpop.permute.xlu1 %3127  ;;  %v3169_v15 = vadd.f32 %v3168_v22, %v3167_v58  ;;  %v3174_v55 = vadd.f32 %v3173_v19, %v3172_v61  ;;  %v6089_v31 = vunpack.i.l.bf16 %v6088_v11  ;;  %v3221_v59 = vmul.f32 %v6251_v4, %v3164_v46 }
0x16d1   :  { %v3136_v45 = vmul.f32 %v3128_v7, %v8144_v51  ;;  %v3219_v43 = vmul.f32 %v6249_v28, %v3157_v27  ;;  %v3182_v21 = vrot.slane %v3181_v52, 2  ;;  %v6098_v36 = vpop.permute.xlu0 %6097  ;;  %3359 = vadd.xlane.f32.xlu1 %v3358_v18  ;;  %v3361_v60 = vsel %vm145_vm0, %v3339_v44, 0.0 }
0x16d2   :  { %v3170_v5 = vrot.slane %v3169_v15, 1  ;;  %v3175_v35 = vrot.slane %v3174_v55, 2  ;;  %v6019_v47 = vpack.c.bf16 %v6090_v6, %v6089_v31  ;;  %v6100_v28 = vunpack.i.h.bf16 %v6098_v36 }
0x16d3   :  { %v3186_v0 = vsel %vm145_vm0, %v3136_v45, 0.0  ;;  %v3183_v53 = vadd.f32 %v3182_v21, %v3181_v52  ;;  %v6099_v33 = vunpack.i.l.bf16 %v6098_v36  ;;  %v3244_v4 = vrot.slane %v3219_v43, 6 }
0x16d4   :  { %v3187_v40 = vrot.slane %v3186_v0, 4  ;;  %v6093_v42 = vpop.permute.xlu1 %6092  ;;  %v3171_v16 = vadd.f32 %v3170_v5, %v3169_v15  ;;  %v3176_v14 = vadd.f32 %v3175_v35, %v3174_v55  ;;  %6020 = vmatpush3.bf16.msra.mxu1 %v6019_v47  ;;  %v3215_v32 = vmul.f32 %v8116_v62, %v3143_v12 }
0x16d5   :  { %v6095_v26 = vunpack.i.h.bf16 %v6093_v42  ;;  %v6094_v23 = vunpack.i.l.bf16 %v6093_v42  ;;  %v3184_v20 = vrot.slane %v3183_v53, 1  ;;  %3362 = vadd.xlane.f32.xlu1 %v3361_v60  ;;  %6021 = vmatprep.subr.bf16.mxu1 %v8904_v2  ;;  %v6024_v61 = vpack.c.bf16 %v6100_v28, %v6099_v33 }
0x16d6   :  { %v3188_v24 = vadd.f32 %v3187_v40, %v3186_v0  ;;  %v3223_v11 = vmul.f32 %v6253_v13, %v3171_v16  ;;  %v3177_v48 = vrot.slane %v3176_v14, 1  ;;  %v3246_v10 = vrot.slane %v3221_v59, 5 }
0x16d7   :  { %v6022_v57 = vpack.c.bf16 %v6095_v26, %v6094_v23  ;;  %v3185_v8 = vadd.f32 %v3184_v20, %v3183_v53  ;;  %6025 = vmatprep.subr.bf16.mxu0 %v6024_v61  ;;  %v3243_v22 = vsel %vm323_vm2, %v3242_v37, %v3215_v32 }
0x16d8   :  { %v3189_v58 = vrot.slane %v3188_v24, 2  ;;  %v3178_v27 = vadd.f32 %v3177_v48, %v3176_v14  ;;  %v3245_v19 = vsel %vm326_vm3, %v3244_v4, %v3243_v22  ;;  %v3248_v52 = vrot.slane %v3223_v11, 4  ;;  %v6103_v7 = vpop.permute.xlu1 %6102 }
0x16d9   :  { %6023 = vmatpush3.bf16.msra.mxu1 %v6022_v57  ;;  %v3227_v2 = vmul.f32 %v6257_v39, %v3185_v8  ;;  %v3247_v62 = vsel %vm329_vm4, %v3246_v10, %v3245_v19  ;;  %v6105_v15 = vunpack.i.h.bf16 %v6103_v7  ;;  %v6104_v45 = vunpack.i.l.bf16 %v6103_v7 }
0x16da   :  { %v3190_v46 = vadd.f32 %v3189_v58, %v3188_v24  ;;  %v3225_v44 = vmul.f32 %v6255_v17, %v3178_v27  ;;  %v3249_v18 = vsel %vm332_vm5, %v3248_v52, %v3247_v62  ;;  %v3233_v17 = vrot.slane %v8049_v38, %v6934_v63 }
0x16db   :  { %v3252_v37 = vrot.slane %v3227_v2, 2  ;;  %v6028_v31 = vpack.c.bf16 %v6105_v15, %v6104_v45 }
0x16dc   :  { %v3191_v13 = vrot.slane %v3190_v46, 1  ;;  %v3250_v12 = vrot.slane %v3225_v44, 3 }
0x16de   :  { %v3192_v6 = vadd.f32 %v3191_v13, %v3190_v46  ;;  %v3251_v55 = vsel %vm335_vm6, %v3250_v12, %v3249_v18 }
0x16df   :  { %v3253_v36 = vsel %vm338_vm7, %v3252_v37, %v3251_v55 }
0x16e0   :  { %v3229_v43 = vmul.f32 %v6259_v29, %v3192_v6 }
0x16e2   :  { %v3254_v21 = vrot.slane %v3229_v43, 1 }
0x16e4   :  { %v3255_v59 = vsel %vm341_vm8, %v3254_v21, %v3253_v36 }
0x16e5   :  { %5979 = vmatmul.mubr.msk.f32.vlgmr.msra.gmra.mrb[16].mxu0 %vm145_vm0, %v3255_v59 }
0x16e6   :  { %6027 = vmatpush3.bf16.msra.mxu0 %v6024_v61  ;;  %6000 = vmatprep.mubr.msk.f32.mxu0 %vm145_vm0, %v8058_v30 }
0x16e7   :  { %6029 = vmatprep.subr.bf16.mxu0 %v6028_v31 }
0x16ea   :  { %6031 = vmatpush3.bf16.msra.mxu0 %v6028_v31 }
0x16ed   :  { %6001 = vmatmul.mubr.msk.f32.vlgmr.msra.gmra.mrb[18].mxu0 %vm145_vm0, %v8072_v50 }
0x16ee   :  { %6003 = vmatprep.mubr.msk.f32.mxu0 %vm145_vm0, %v8086_v3 }
0x16f1   :  { %6004 = vmatmul.mubr.msk.f32.gmra.mrb[20].mxu0 %vm145_vm0, %v8089_v49 }
0x16f2   :  { %6006 = vmatprep.mubr.msk.f32.mxu0 %vm145_vm0, %v8107_v54 }
0x16f5   :  { %6007 = vmatmul.mubr.msk.f32.gmra.mrb[22].mxu0 %vm145_vm0, %v8126_v9 }
0x16f6   :  { %6009 = vmatprep.mubr.msk.f32.mxu0 %vm145_vm0, %v8110_v56 }
0x16f9   :  { %6010 = vmatmul.mubr.msk.f32.gmra.mrb[24].mxu0 %vm145_vm0, %v8144_v51 }
0x174a   :  { %v3342_v55 = vpop.xlane.xlu1 %3341 }
0x1756   :  { %v3354_v37 = vpop.xlane.xlu1 %3353 }
0x175a   :  { %v3357_v21 = vpop.xlane.xlu1 %3356 }
0x175e   :  { %v3360_v31 = vpop.xlane.xlu1 %3359 }
0x1762   :  { %v8226_v59 = vpop.xlane.xlu1 %3362 }
0x17b8   :  { %v3324_v39 = vpop.f32.mrb[16].mxu0 }
0x17b9   :  { %v3325_v29 = vadd.f32 %v3324_v39, %v3233_v17  ;;  %v5980_v5 = vpop.f32.mrb[17].mxu0  ;;  %v8228_v17 = vstv %s5725_s25 }
0x17ba   :  { %v3364_v5 = vstv %s97_s26 }
0x17bb   :  { %5990 = vmatmul.mubr.msk.f32.vlgmr.msra.gmra.mrb[24].mxu1 %vm145_vm0, %v3325_v29 }
0x17c0   :  { %v6002_v0 = vpop.f32.mrb[18].mxu0 }
0x17c1   :  { %3779 = vst.msk [vmem:[#allocation4 + $0x8] sm:$0xff] %vm145_vm0, %v6002_v0  ;;  %v3739_v60 = vpop.f32.mrb[19].mxu0 }
0x17c2   :  { %3778 = vst.msk [vmem:[#allocation4] sm:$0xff] %vm145_vm0, %v3739_v60 }
0x17c4   :  { %v6005_v35 = vpop.f32.mrb[20].mxu0 }
0x17c5   :  { %3781 = vst.msk [vmem:[#allocation4 + $0x18] sm:$0xff] %vm145_vm0, %v6005_v35  ;;  %v3749_v53 = vpop.f32.mrb[21].mxu0 }
0x17c6   :  { %3780 = vst.msk [vmem:[#allocation4 + $0x10] sm:$0xff] %vm145_vm0, %v3749_v53  ;;  %v3365_v53 = vadd.f32 %v3364_v5, %v3342_v55 }
0x17c8   :  { %v6008_v40 = vpop.f32.mrb[22].mxu0 }
0x17c9   :  { %3783 = vst.msk [vmem:[#allocation4 + $0x28] sm:$0xff] %vm145_vm0, %v6008_v40  ;;  %v3759_v38 = vpop.f32.mrb[23].mxu0 }
0x17ca   :  { %3782 = vst.msk [vmem:[#allocation4 + $0x20] sm:$0xff] %vm145_vm0, %v3759_v38 }
0x17cc   :  { %v6011_v47 = vpop.f32.mrb[24].mxu0 }
0x17cd   :  { %3785 = vst.msk [vmem:[#allocation4 + $0x38] sm:$0xff] %vm145_vm0, %v6011_v47  ;;  %v3769_v42 = vpop.f32.mrb[25].mxu0 }
0x17ce   :  { %3784 = vst.msk [vmem:[#allocation4 + $0x30] sm:$0xff] %vm145_vm0, %v3769_v42 }
0x188e   :  { %v3458_v16 = vpop.f32.mrb[24].mxu1 }
0x188f   :  { %v3463_v26 = vcombine.high %v3458_v16, %v3458_v16  ;;  %v3470_v23 = vrot.slane %v3458_v16, %v6913_v34  ;;  %v5991_v28 = vpop.f32.mrb[25].mxu1  ;;  %v3369_v16 = vadd.f32 %v3364_v5, %v3354_v37 }
0x1891   :  { %v3477_v14 = vrot.slane %v3463_v26, %v6913_v34  ;;  %v3478_v20 = vcombine.high %v3470_v23, %v3470_v23  ;;  %v3486_v24 = vrot.slane %v3470_v23, %v6913_v34 }
0x1893   :  { %v3493_v33 = vrot.slane %v3477_v14, %v6913_v34  ;;  %v3500_v4 = vrot.slane %v3478_v20, %v6913_v34  ;;  %v3508_v11 = vcombine.high %v3486_v24, %v3486_v24  ;;  %v3479_v57 = vcombine.high %v3477_v14, %v3477_v14 }
0x1894   :  { %v3515_v32 = vrot.slane %v3486_v24, %v6934_v63  ;;  %v8234_v24 = vstv %s5727_s27 }
0x1895   :  { %v3523_v48 = vrot.slane %v3508_v11, %v6934_v63  ;;  %v3519_v58 = vrot.slane %v3500_v4, %v6934_v63  ;;  %v3531_v61 = vrot.slane %v3493_v33, %v6934_v63  ;;  %v3510_v8 = vcombine.high %v3500_v4, %v3500_v4 }
0x1896   :  { %v3552_v10 = vmul.f32 %v3515_v32, %v8058_v30  ;;  %v3507_v7 = vrot.slane %v3479_v57, %v6913_v34 }
0x1897   :  { %v3554_v27 = vmul.f32 %v3523_v48, %v8086_v3  ;;  %v3553_v22 = vmul.f32 %v3519_v58, %v8072_v50  ;;  %v3556_v52 = vmul.f32 %v3531_v61, %v8107_v54  ;;  %v3527_v13 = vrot.slane %v3510_v8, %v6934_v63 }
0x1898   :  { %v3560_v46 = vsel %vm145_vm0, %v3552_v10, 0.0  ;;  %v3535_v2 = vrot.slane %v3507_v7, %v6934_v63  ;;  %v3509_v50 = vcombine.high %v3493_v33, %v3493_v33  ;;  %v3511_v12 = vcombine.high %v3507_v7, %v3507_v7 }
0x1899   :  { %3561 = vadd.xlane.f32.xlu1 %v3560_v46  ;;  %v3566_v19 = vsel %vm145_vm0, %v3554_v27, 0.0  ;;  %v3563_v44 = vsel %vm145_vm0, %v3553_v22, 0.0  ;;  %v3572_v30 = vsel %vm145_vm0, %v3556_v52, 0.0  ;;  %v3555_v3 = vmul.f32 %v3527_v13, %v8089_v49 }
0x189a   :  { %3567 = vadd.xlane.f32.xlu0 %v3566_v19  ;;  %v3557_v54 = vmul.f32 %v3535_v2, %v8126_v9  ;;  %v3539_v62 = vrot.slane %v3509_v50, %v6934_v63  ;;  %v3543_v45 = vrot.slane %v3511_v12, %v6934_v63  ;;  %v5769_v9 = vld [vmem:[%s8799_s7] ss:$0 sm:$0xff]  ;;  %s5728_s7 = sld [smem:[#allocation12 + $0x4]] }
0x189b   :  { %v3569_v6 = vsel %vm145_vm0, %v3555_v3, 0.0 }
0x189c   :  { %v3575_v34 = vsel %vm145_vm0, %v3557_v54, 0.0  ;;  %v3558_v15 = vmul.f32 %v3539_v62, %v8110_v56  ;;  %v3559_v18 = vmul.f32 %v3543_v45, %v8144_v51  ;;  %v3345_v56 = vpop.xlane.xlu0 %3344  ;;  %v3371_v45 = vadd.f32 %v3364_v5, %v3360_v31 }
0x189d   :  { %3564 = vadd.xlane.f32.xlu1 %v3563_v44  ;;  %v3366_v40 = vadd.f32 %v3364_v5, %v3345_v56  ;;  %v3372_v56 = vadd.f32 %v3364_v5, %v8226_v59 }
0x189e   :  { %3573 = vadd.xlane.f32.xlu0 %v3572_v30  ;;  %v3578_v49 = vsel %vm145_vm0, %v3558_v15, 0.0  ;;  %v3581_v43 = vsel %vm145_vm0, %v3559_v18, 0.0  ;;  %v3370_v30 = vadd.f32 %v3364_v5, %v3357_v21 }
0x18a0   :  { %v3348_v36 = vpop.xlane.xlu0 %3347  ;;  %v3628_v58 = vstv %s5728_s7 }
0x18a1   :  { %v3367_v38 = vadd.f32 %v3364_v5, %v3348_v36 }
0x18a2   :  { %3570 = vadd.xlane.f32.xlu0 %v3569_v6 }
0x18a4   :  { %v3351_v51 = vpop.xlane.xlu0 %3350 }
0x18a5   :  { %v3368_v48 = vadd.f32 %v3364_v5, %v3351_v51 }
0x18a6   :  { %3576 = vadd.xlane.f32.xlu0 %v3575_v34 }
0x18aa   :  { %3579 = vadd.xlane.f32.xlu0 %v3578_v49 }
0x18ae   :  { %3582 = vadd.xlane.f32.xlu0 %v3581_v43  ;;  %3608 = vbcast.lane.b32.xlu1 %v5769_v9, 256 }
0x1926   :  { %v3562_v39 = vpop.xlane.xlu1 %3561 }
0x1927   :  { %v3568_v29 = vpop.xlane.xlu0 %3567  ;;  %v3585_v0 = vadd.f32 %v8228_v17, %v3562_v39 }
0x1928   :  { %v3587_v60 = vadd.f32 %v8228_v17, %v3568_v29 }
0x1929   :  { %v3593_v23 = vadd.f32 %v3585_v0, %v3365_v53 }
0x192a   :  { %v3565_v35 = vpop.xlane.xlu1 %3564  ;;  %v3595_v28 = vadd.f32 %v3587_v60, %v3367_v38 }
0x192b   :  { %v3586_v47 = vadd.f32 %v8228_v17, %v3565_v35  ;;  %v3574_v42 = vpop.xlane.xlu0 %3573 }
0x192c   :  { %v3589_v26 = vadd.f32 %v8228_v17, %v3574_v42 }
0x192d   :  { %v3594_v14 = vadd.f32 %v3586_v47, %v3366_v40 }
0x192e   :  { %v3597_v20 = vadd.f32 %v3589_v26, %v3369_v16  ;;  %v3609_v33 = vpop.permute.xlu1 %3608 }
0x192f   :  { %v3611_v4 = vadd.f32 %v3609_v33, %v3593_v23  ;;  %v3612_v11 = vadd.f32 %v3609_v33, %v3594_v14  ;;  %v3613_v57 = vadd.f32 %v3609_v33, %v3595_v28  ;;  %v3571_v32 = vpop.xlane.xlu0 %3570 }
0x1930   :  { %v3615_v61 = vadd.f32 %v3609_v33, %v3597_v20  ;;  %v3588_v8 = vadd.f32 %v8228_v17, %v3571_v32 }
0x1931   :  { %v3620_v10 = vmul.f32 %v8234_v24, %v3611_v4  ;;  %v3621_v27 = vmul.f32 %v8234_v24, %v3612_v11  ;;  %v3622_v46 = vmul.f32 %v8234_v24, %v3613_v57 }
0x1932   :  { %v3624_v22 = vmul.f32 %v8234_v24, %v3615_v61  ;;  %v3596_v19 = vadd.f32 %v3588_v8, %v3368_v48 }
0x1933   :  { %v8241_v52 = vadd.f32 %v3628_v58, %v3620_v10  ;;  %v8243_v13 = vadd.f32 %v3628_v58, %v3621_v27  ;;  %v8245_v7 = vadd.f32 %v3628_v58, %v3622_v46  ;;  %v3577_v44 = vpop.xlane.xlu0 %3576 }
0x1934   :  { %v8247_v3 = vadd.f32 %v3628_v58, %v3624_v22  ;;  %v3614_v2 = vadd.f32 %v3609_v33, %v3596_v19  ;;  %v3590_v50 = vadd.f32 %v8228_v17, %v3577_v44 }
0x1935   :  { %v5778_v6 = vmul.f32 -1.442695, %v8241_v52  ;;  %v5779_v54 = vmul.f32 -1.442695, %v8243_v13  ;;  %v5780_v62 = vmul.f32 -1.442695, %v8245_v7 }
0x1936   :  { %v3623_v12 = vmul.f32 %v8234_v24, %v3614_v2  ;;  %v3598_v34 = vadd.f32 %v3590_v50, %v3370_v30  ;;  %v5782_v15 = vmul.f32 -1.442695, %v8247_v3 }
0x1937   :  { %v3580_v49 = vpop.xlane.xlu0 %3579  ;;  %6260 = vpow2.f32 %v5778_v6 }
0x1938   :  { %v8255_v18 = vadd.f32 %v3628_v58, %v3623_v12  ;;  %v3616_v9 = vadd.f32 %v3609_v33, %v3598_v34  ;;  %v3591_v43 = vadd.f32 %v8228_v17, %v3580_v49  ;;  %6262 = vpow2.f32 %v5779_v54 }
0x1939   :  { %6264 = vpow2.f32 %v5780_v62 }
0x193a   :  { %v3625_v55 = vmul.f32 %v8234_v24, %v3616_v9  ;;  %v3599_v37 = vadd.f32 %v3591_v43, %v3371_v45  ;;  %6266 = vpow2.f32 %v5782_v15  ;;  %v5781_v21 = vmul.f32 -1.442695, %v8255_v18 }
0x193b   :  { %v3583_v36 = vpop.xlane.xlu0 %3582 }
0x193c   :  { %v8261_v51 = vadd.f32 %v3628_v58, %v3625_v55  ;;  %v3617_v31 = vadd.f32 %v3609_v33, %v3599_v37  ;;  %v3592_v39 = vadd.f32 %v8228_v17, %v3583_v36  ;;  %6268 = vpow2.f32 %v5781_v21 }
0x193e   :  { %v3626_v29 = vmul.f32 %v8234_v24, %v3617_v31  ;;  %v3600_v0 = vadd.f32 %v3592_v39, %v3372_v56  ;;  %v5783_v60 = vmul.f32 -1.442695, %v8261_v51 }
0x1940   :  { %v8266_v35 = vadd.f32 %v3628_v58, %v3626_v29  ;;  %v3618_v53 = vadd.f32 %v3609_v33, %v3600_v0  ;;  %6270 = vpow2.f32 %v5783_v60 }
0x1941   :  { %v6261_v40 = vpop.eup %6260 }
0x1942   :  { %v6263_v38 = vpop.eup %6262  ;;  %v3627_v59 = vmul.f32 %v8234_v24, %v3618_v53  ;;  %v3810_v5 = vadd.f32 1.0, %v6261_v40  ;;  %v5784_v23 = vmul.f32 -1.442695, %v8266_v35 }
0x1943   :  { %v6265_v47 = vpop.eup %6264  ;;  %v3811_v42 = vadd.f32 1.0, %v6263_v38 }
0x1944   :  { %v6267_v16 = vpop.eup %6266  ;;  %v8269_v26 = vadd.f32 %v3628_v58, %v3627_v59  ;;  %6272 = vrcp.f32 %v3810_v5  ;;  %v3812_v17 = vadd.f32 1.0, %v6265_v47  ;;  %v3835_v59 = vld [vmem:[#allocation3 + $0x8] sm:$0x1]  ;;  %v3836_v47 = vld [vmem:[#allocation3 + $0x10] sm:$0x1] }
0x1945   :  { %6274 = vrcp.f32 %v3811_v42  ;;  %v3814_v28 = vadd.f32 1.0, %v6267_v16  ;;  %v3837_v16 = vld [vmem:[#allocation3 + $0x18] sm:$0x1] }
0x1946   :  { %v6269_v14 = vpop.eup %6268  ;;  %6276 = vrcp.f32 %v3812_v17  ;;  %v5785_v20 = vmul.f32 -1.442695, %v8269_v26 }
0x1947   :  { %6278 = vrcp.f32 %v3814_v28  ;;  %v3813_v33 = vadd.f32 1.0, %v6269_v14  ;;  %v3931_v28 = vld [vmem:[#allocation4 + $0x9] sm:$0x1] }
0x1948   :  { %6280 = vpow2.f32 %v5784_v23 }
0x1949   :  { %6282 = vrcp.f32 %v3813_v33  ;;  %v3834_v33 = vld [vmem:[#allocation3] sm:$0x1] }
0x194a   :  { %v6271_v4 = vpop.eup %6270  ;;  %6284 = vpow2.f32 %v5785_v20  ;;  %v3932_v20 = vld [vmem:[#allocation4 + $0x11] sm:$0x1] }
0x194b   :  { %v3815_v11 = vadd.f32 1.0, %v6271_v4 }
0x194d   :  { %6286 = vrcp.f32 %v3815_v11  ;;  %v3933_v11 = vld [vmem:[#allocation4 + $0x19] sm:$0x1] }
0x194e   :  { %v6273_v57 = vpop.eup %6272 }
0x194f   :  { %v6275_v32 = vpop.eup %6274  ;;  %v3845_v48 = vrot.slane %v6273_v57, %v6934_v63 }
0x1950   :  { %v6277_v58 = vpop.eup %6276  ;;  %v3849_v61 = vrot.slane %v6275_v32, %v6934_v63  ;;  %v5502_v8 = vrot.slane %v6275_v32, 7 }
0x1951   :  { %v6279_v10 = vpop.eup %6278  ;;  %3883 = vperm.xlu1 %6107, %v3845_v48   ;;  %v5504_v27 = vrot.slane %v6277_v58, 6  ;;  %v3853_v44 = vrot.slane %v6277_v58, %v6934_v63  ;;  %v3838_v58 = vld [vmem:[#allocation3 + $0x20] sm:$0x1] }
0x1952   :  { %v6281_v46 = vpop.eup %6280  ;;  %3886 = vperm.xlu0 %6106, %v3849_v61   ;;  %v5503_v22 = vsel %vm323_vm2, %v5502_v8, %v6273_v57  ;;  %v5508_v62 = vrot.slane %v6279_v10, 4  ;;  %v3861_v15 = vrot.slane %v6279_v10, %v6934_v63  ;;  %v3839_v57 = vld [vmem:[#allocation3 + $0x28] sm:$0x1] }
0x1953   :  { %v6283_v19 = vpop.eup %6282  ;;  %v3816_v30 = vadd.f32 1.0, %v6281_v46  ;;  %v5505_v2 = vsel %vm326_vm3, %v5504_v27, %v5503_v22  ;;  %v3840_v46 = vld [vmem:[#allocation3 + $0x30] sm:$0x1]  ;;  %v3930_v22 = vld [vmem:[#allocation4 + $0x1] sm:$0x1] }
0x1954   :  { %v6285_v50 = vpop.eup %6284  ;;  %v5506_v6 = vrot.slane %v6283_v19, 5  ;;  %v3857_v43 = vrot.slane %v6283_v19, %v6934_v63 }
0x1955   :  { %3889 = vperm.xlu1 %6107, %v3853_v44   ;;  %6288 = vrcp.f32 %v3816_v30  ;;  %v3817_v54 = vadd.f32 1.0, %v6285_v50  ;;  %v3935_v44 = vld [vmem:[#allocation4 + $0x29] sm:$0x1]  ;;  %v3934_v50 = vld [vmem:[#allocation4 + $0x21] sm:$0x1] }
0x1956   :  { %v5507_v12 = vsel %vm329_vm4, %v5506_v6, %v5505_v2 }
0x1957   :  { %v6287_v34 = vpop.eup %6286  ;;  %6290 = vrcp.f32 %v3817_v54  ;;  %v5509_v45 = vsel %vm332_vm5, %v5508_v62, %v5507_v12 }
0x1958   :  { %v5510_v49 = vrot.slane %v6287_v34, 3  ;;  %v3865_v37 = vrot.slane %v6287_v34, %v6934_v63  ;;  %v3936_v34 = vld [vmem:[#allocation4 + $0x31] sm:$0x1] }
0x1959   :  { %3895 = vperm.xlu1 %6107, %v3861_v15  }
0x195a   :  { %v5511_v9 = vsel %vm335_vm6, %v5510_v49, %v5509_v45 }
0x195d   :  { %3892 = vperm.xlu1 %6107, %v3857_v43  }
0x195f   :  { %v6289_v55 = vpop.eup %6288 }
0x1960   :  { %v5512_v21 = vrot.slane %v6289_v55, 2  ;;  %v3869_v39 = vrot.slane %v6289_v55, %v6934_v63 }
0x1961   :  { %v6291_v56 = vpop.eup %6290  ;;  %3898 = vperm.xlu1 %6107, %v3865_v37  }
0x1962   :  { %v5513_v36 = vsel %vm338_vm7, %v5512_v21, %v5511_v9  ;;  %v5514_v31 = vrot.slane %v6291_v56, 1  ;;  %v3873_v0 = vrot.slane %v6291_v56, %v6934_v63  ;;  %v3841_v9 = vld [vmem:[#allocation3 + $0x38] sm:$0x1] }
0x1964   :  { %v8287_v29 = vsel %vm341_vm8, %v5514_v31, %v5513_v36  ;;  %v3937_v31 = vld [vmem:[#allocation4 + $0x39] sm:$0x1] }
0x1965   :  { %3901 = vperm.xlu1 %6107, %v3869_v39  }
0x1969   :  { %3904 = vperm.xlu1 %6107, %v3873_v0  }
0x19d0   :  { %v3884_v60 = vpop.permute.xlu1 %3883 }
0x19d1   :  { %v3887_v40 = vpop.permute.xlu0 %3886  ;;  %v8298_v48 = vmul.f32 %v3884_v60, %v3834_v33 }
0x19d2   :  { %v8290_v5 = vmul.f32 %v3887_v40, %v3835_v59 }
0x19d3   :  { %v3938_v2 = vmul.f32 %v3930_v22, %v8298_v48 }
0x19d4   :  { %v3890_v53 = vpop.permute.xlu1 %3889  ;;  %v3939_v14 = vmul.f32 %v3931_v28, %v8290_v5 }
0x19d5   :  { %v8292_v42 = vmul.f32 %v3890_v53, %v3836_v47  ;;  %v8322_v47 = vstv %s5726_s0 }
0x19d6   :  { %v3954_v27 = vrot.slane %v3939_v14, 7 }
0x19d7   :  { %v3940_v4 = vmul.f32 %v3932_v20, %v8292_v42  ;;  %v8906_v20 = vld [vmem:[#allocation20_spill] sm:$0xff] }
0x19d8   :  { %v3896_v38 = vpop.permute.xlu1 %3895  ;;  %v3955_v15 = vsel %vm323_vm2, %v3954_v27, %v3938_v2 }
0x19d9   :  { %v8303_v10 = vmul.f32 %v3896_v38, %v3838_v58  ;;  %v3956_v19 = vrot.slane %v3940_v4, 6 }
0x19db   :  { %v3942_v12 = vmul.f32 %v3934_v50, %v8303_v10  ;;  %v3957_v49 = vsel %vm326_vm3, %v3956_v19, %v3955_v15 }
0x19dc   :  { %v3893_v17 = vpop.permute.xlu1 %3892 }
0x19dd   :  { %v8294_v23 = vmul.f32 %v3893_v17, %v3837_v16  ;;  %v3960_v56 = vrot.slane %v3942_v12, 4 }
0x19df   :  { %v3941_v61 = vmul.f32 %v3933_v11, %v8294_v23  ;;  %v8907_v11 = vld [vmem:[#allocation22_spill] sm:$0xff] }
0x19e0   :  { %v3899_v32 = vpop.permute.xlu1 %3898 }
0x19e1   :  { %v8301_v8 = vmul.f32 %v3899_v32, %v3839_v57  ;;  %v3958_v6 = vrot.slane %v3941_v61, 5  ;;  %v8908_v32 = vld [vmem:[#allocation21_spill] sm:$0xff]  ;;  %v8909_v61 = vld [vmem:[#allocation24_spill] sm:$0xff] }
0x19e3   :  { %v3943_v54 = vmul.f32 %v3935_v44, %v8301_v8  ;;  %v3959_v55 = vsel %vm329_vm4, %v3958_v6, %v3957_v49 }
0x19e4   :  { %v3902_v30 = vpop.permute.xlu1 %3901  ;;  %v3961_v0 = vsel %vm332_vm5, %v3960_v56, %v3959_v55 }
0x19e5   :  { %v8307_v62 = vmul.f32 %v3902_v30, %v3840_v46  ;;  %v3962_v37 = vrot.slane %v3943_v54, 3 }
0x19e7   :  { %v3944_v45 = vmul.f32 %v3936_v34, %v8307_v62  ;;  %v3963_v53 = vsel %vm335_vm6, %v3962_v37, %v3961_v0 }
0x19e8   :  { %v3905_v43 = vpop.permute.xlu1 %3904 }
0x19e9   :  { %v8314_v21 = vmul.f32 %v3905_v43, %v3841_v9  ;;  %v3964_v36 = vrot.slane %v3944_v45, 2 }
0x19eb   :  { %v3945_v39 = vmul.f32 %v3937_v31, %v8314_v21  ;;  %v3965_v40 = vsel %vm338_vm7, %v3964_v36, %v3963_v53 }
0x19ed   :  { %v3966_v60 = vrot.slane %v3945_v39, 1 }
0x19ef   :  { %v3967_v38 = vsel %vm341_vm8, %v3966_v60, %v3965_v40 }
0x19f0   :  { %v3969_v59 = vsel %vm145_vm0, %v3967_v38, 0.0 }
0x19f1   :  { %3970 = vadd.xlane.f32.xlu1 %v3969_v59 }
0x1a7e   :  { %v3971_v16 = vpop.xlane.xlu1 %3970 }
0x1a7f   :  { %v3973_v17 = vadd.f32 %v8322_v47, %v3971_v16 }
0x1a81   :  { %v3974_v28 = vmul.f32 %v3973_v17, %v8234_v24 }
0x1a83   :  { %v3983_v14 = vrot.slane %v3974_v28, %v8905_v41  ;;  %v3987_v33 = vrot.slane %v3974_v28, %v8906_v20  ;;  %v3979_v4 = vrot.slane %v3974_v28, %v6934_v63  ;;  %v3991_v57 = vrot.slane %v3974_v28, %v8907_v11 }
0x1a84   :  { %v3995_v58 = vrot.slane %v3974_v28, %v8908_v32  ;;  %v3999_v27 = vrot.slane %v3974_v28, %v8909_v61  ;;  %v4003_v46 = vrot.slane %v3974_v28, %v8901_v25  ;;  %v4007_v22 = vrot.slane %v3974_v28, %v8903_v1 }
0x1a85   :  { %v4017_v19 = vadd.f32 %v3983_v14, %v8243_v13  ;;  %v4018_v44 = vadd.f32 %v3987_v33, %v8245_v7  ;;  %v4016_v30 = vadd.f32 %v3979_v4, %v8241_v52  ;;  %v4019_v2 = vadd.f32 %v3991_v57, %v8255_v18 }
0x1a86   :  { %v4020_v50 = vadd.f32 %v3995_v58, %v8247_v3  ;;  %v4021_v6 = vadd.f32 %v3999_v27, %v8261_v51  ;;  %v4022_v15 = vadd.f32 %v4003_v46, %v8266_v35  ;;  %v4023_v49 = vadd.f32 %v4007_v22, %v8269_v26 }
0x1a87   :  { %v5787_v54 = vmul.f32 -1.442695, %v4017_v19  ;;  %v5788_v12 = vmul.f32 -1.442695, %v4018_v44  ;;  %v5786_v34 = vmul.f32 -1.442695, %v4016_v30 }
0x1a88   :  { %v5789_v45 = vmul.f32 -1.442695, %v4019_v2  ;;  %v5790_v9 = vmul.f32 -1.442695, %v4020_v50  ;;  %v5791_v43 = vmul.f32 -1.442695, %v4021_v6 }
0x1a89   :  { %6292 = vpow2.f32 %v5787_v54  ;;  %v5792_v55 = vmul.f32 -1.442695, %v4022_v15  ;;  %v5793_v37 = vmul.f32 -1.442695, %v4023_v49 }
0x1a8a   :  { %6294 = vpow2.f32 %v5788_v12 }
0x1a8b   :  { %6296 = vpow2.f32 %v5786_v34 }
0x1a8c   :  { %6298 = vpow2.f32 %v5789_v45 }
0x1a8d   :  { %6300 = vpow2.f32 %v5790_v9 }
0x1a8e   :  { %6302 = vpow2.f32 %v5791_v43 }
0x1a8f   :  { %6304 = vpow2.f32 %v5792_v55 }
0x1a90   :  { %6306 = vpow2.f32 %v5793_v37 }
0x1a93   :  { %v6293_v56 = vpop.eup %6292 }
0x1a94   :  { %v6295_v36 = vpop.eup %6294  ;;  %v4049_v31 = vadd.f32 1.0, %v6293_v56 }
0x1a95   :  { %v6297_v39 = vpop.eup %6296  ;;  %v4050_v0 = vadd.f32 1.0, %v6295_v36 }
0x1a96   :  { %v6299_v60 = vpop.eup %6298  ;;  %6308 = vrcp.f32 %v4049_v31  ;;  %v4048_v53 = vadd.f32 1.0, %v6297_v39 }
0x1a97   :  { %v6301_v40 = vpop.eup %6300  ;;  %6310 = vrcp.f32 %v4050_v0  ;;  %v4051_v38 = vadd.f32 1.0, %v6299_v60 }
0x1a98   :  { %v6303_v59 = vpop.eup %6302  ;;  %6312 = vrcp.f32 %v4048_v53  ;;  %v4052_v16 = vadd.f32 1.0, %v6301_v40 }
0x1a99   :  { %v6305_v17 = vpop.eup %6304  ;;  %6314 = vrcp.f32 %v4051_v38  ;;  %v4053_v28 = vadd.f32 1.0, %v6303_v59 }
0x1a9a   :  { %v6307_v14 = vpop.eup %6306  ;;  %6316 = vrcp.f32 %v4052_v16  ;;  %v4054_v33 = vadd.f32 1.0, %v6305_v17 }
0x1a9b   :  { %6318 = vrcp.f32 %v4053_v28  ;;  %v4055_v4 = vadd.f32 1.0, %v6307_v14  ;;  %v4073_v14 = vld [vmem:[#allocation3 + $0x9] sm:$0x1] }
0x1a9c   :  { %6320 = vrcp.f32 %v4054_v33 }
0x1a9d   :  { %6322 = vrcp.f32 %v4055_v4  ;;  %v4072_v4 = vld [vmem:[#allocation3 + $0x1] sm:$0x1] }
0x1aa0   :  { %v6309_v57 = vpop.eup %6308 }
0x1aa1   :  { %v6311_v58 = vpop.eup %6310  ;;  %v4087_v27 = vrot.slane %v6309_v57, %v8905_v41 }
0x1aa2   :  { %v6313_v46 = vpop.eup %6312  ;;  %v5527_v22 = vrot.slane %v6311_v58, 7  ;;  %v4091_v50 = vrot.slane %v6311_v58, %v8905_v41 }
0x1aa3   :  { %v6315_v19 = vpop.eup %6314  ;;  %4124 = vperm.xlu0 %6106, %v4087_v27   ;;  %v5525_v44 = vrot.slane %v6313_v46, 1  ;;  %v4083_v37 = vrot.slane %v6313_v46, %v8905_v41  ;;  %v4074_v27 = vld [vmem:[#allocation3 + $0x11] sm:$0x1] }
0x1aa4   :  { %v6317_v30 = vpop.eup %6316  ;;  %v5529_v54 = vrot.slane %v6315_v19, 6  ;;  %v4095_v0 = vrot.slane %v6315_v19, %v8905_v41  ;;  %v4076_v19 = vld [vmem:[#allocation3 + $0x21] sm:$0x1] }
0x1aa5   :  { %v6319_v2 = vpop.eup %6318  ;;  %v5526_v6 = vsel %vm323_vm2, %v6309_v57, %v5525_v44  ;;  %v5531_v15 = vrot.slane %v6317_v30, 5  ;;  %v4099_v60 = vrot.slane %v6317_v30, %v8905_v41  ;;  %v4075_v57 = vld [vmem:[#allocation3 + $0x19] sm:$0x1] }
0x1aa6   :  { %v6321_v12 = vpop.eup %6320  ;;  %v5528_v34 = vsel %vm326_vm3, %v5527_v22, %v5526_v6  ;;  %v5533_v9 = vrot.slane %v6319_v2, 4  ;;  %v4103_v53 = vrot.slane %v6319_v2, %v8905_v41 }
0x1aa7   :  { %v6323_v45 = vpop.eup %6322  ;;  %4127 = vperm.xlu0 %6106, %v4091_v50   ;;  %v5530_v49 = vsel %vm329_vm4, %v5529_v54, %v5528_v34  ;;  %v5535_v55 = vrot.slane %v6321_v12, 3  ;;  %v4107_v40 = vrot.slane %v6321_v12, %v8905_v41  ;;  %v4077_v50 = vld [vmem:[#allocation3 + $0x29] sm:$0x1] }
0x1aa8   :  { %v5532_v43 = vsel %vm332_vm5, %v5531_v15, %v5530_v49  ;;  %v5537_v36 = vrot.slane %v6323_v45, 2  ;;  %v4111_v38 = vrot.slane %v6323_v45, %v8905_v41  ;;  %v4169_v15 = vld [vmem:[#allocation4 + $0xa] sm:$0x1] }
0x1aa9   :  { %v5534_v56 = vsel %vm335_vm6, %v5533_v9, %v5532_v43  ;;  %v4168_v43 = vld [vmem:[#allocation4 + $0x2] sm:$0x1] }
0x1aaa   :  { %v5536_v31 = vsel %vm338_vm7, %v5535_v55, %v5534_v56  ;;  %v4171_v55 = vld [vmem:[#allocation4 + $0x1a] sm:$0x1]  ;;  %v4170_v56 = vld [vmem:[#allocation4 + $0x12] sm:$0x1] }
0x1aab   :  { %4121 = vperm.xlu0 %6106, %v4083_v37   ;;  %v8352_v39 = vsel %vm341_vm8, %v5537_v36, %v5536_v31  ;;  %v4172_v31 = vld [vmem:[#allocation4 + $0x22] sm:$0x1] }
0x1aaf   :  { %4130 = vperm.xlu0 %6106, %v4095_v0  }
0x1ab3   :  { %4133 = vperm.xlu0 %6106, %v4099_v60   ;;  %v4173_v60 = vld [vmem:[#allocation4 + $0x2a] sm:$0x1] }
0x1ab7   :  { %4136 = vperm.xlu0 %6106, %v4103_v53  }
0x1abb   :  { %4139 = vperm.xlu0 %6106, %v4107_v40  }
0x1abf   :  { %4142 = vperm.xlu0 %6106, %v4111_v38   ;;  %v4174_v38 = vld [vmem:[#allocation4 + $0x32] sm:$0x1] }
0x1b22   :  { %v4125_v59 = vpop.permute.xlu0 %4124 }
0x1b23   :  { %v4153_v33 = vmul.f32 %v4125_v59, %v4073_v14  ;;  %v4079_v59 = vld [vmem:[#allocation3 + $0x39] sm:$0x1] }
0x1b25   :  { %v8360_v2 = vadd.f32 %v4153_v33, %v8290_v5 }
0x1b26   :  { %v4128_v16 = vpop.permute.xlu0 %4127 }
0x1b27   :  { %v4154_v44 = vmul.f32 %v4128_v16, %v4074_v27  ;;  %v4177_v9 = vmul.f32 %v4169_v15, %v8360_v2 }
0x1b29   :  { %v8369_v45 = vadd.f32 %v4154_v44, %v8292_v42  ;;  %v4192_v53 = vrot.slane %v4177_v9, 7 }
0x1b2a   :  { %v4122_v17 = vpop.permute.xlu0 %4121 }
0x1b2b   :  { %v4152_v46 = vmul.f32 %v4122_v17, %v4072_v4  ;;  %v4178_v0 = vmul.f32 %v4170_v56, %v8369_v45 }
0x1b2d   :  { %v8363_v54 = vadd.f32 %v4152_v46, %v8298_v48  ;;  %v4078_v48 = vld [vmem:[#allocation3 + $0x31] sm:$0x1]  ;;  %v4194_v4 = vrot.slane %v4178_v0, 6 }
0x1b2e   :  { %v4131_v28 = vpop.permute.xlu0 %4130 }
0x1b2f   :  { %v4155_v22 = vmul.f32 %v4131_v28, %v4075_v57 }
0x1b31   :  { %v8366_v12 = vadd.f32 %v4155_v22, %v8294_v23  ;;  %v4176_v23 = vmul.f32 %v4168_v43, %v8363_v54 }
0x1b32   :  { %v4134_v58 = vpop.permute.xlu0 %4133 }
0x1b33   :  { %v4156_v30 = vmul.f32 %v4134_v58, %v4076_v19  ;;  %v4179_v36 = vmul.f32 %v4171_v55, %v8366_v12  ;;  %v4193_v17 = vsel %vm323_vm2, %v4192_v53, %v4176_v23 }
0x1b34   :  { %v4195_v46 = vsel %vm326_vm3, %v4194_v4, %v4193_v17 }
0x1b35   :  { %v8372_v49 = vadd.f32 %v4156_v30, %v8303_v10  ;;  %v4196_v28 = vrot.slane %v4179_v36, 5 }
0x1b36   :  { %v4137_v6 = vpop.permute.xlu0 %4136 }
0x1b37   :  { %v4157_v34 = vmul.f32 %v4137_v6, %v4077_v50  ;;  %v4180_v10 = vmul.f32 %v4172_v31, %v8372_v49  ;;  %v4197_v19 = vsel %vm329_vm4, %v4196_v28, %v4195_v46 }
0x1b39   :  { %v8376_v5 = vadd.f32 %v4157_v34, %v8301_v8  ;;  %v4198_v57 = vrot.slane %v4180_v10, 4 }
0x1b3a   :  { %v4140_v37 = vpop.permute.xlu0 %4139 }
0x1b3b   :  { %v4158_v42 = vmul.f32 %v4140_v37, %v4078_v48  ;;  %v4181_v8 = vmul.f32 %v4173_v60, %v8376_v5  ;;  %v4199_v30 = vsel %vm332_vm5, %v4198_v57, %v4197_v19 }
0x1b3d   :  { %v8384_v40 = vadd.f32 %v4158_v42, %v8307_v62  ;;  %v4200_v58 = vrot.slane %v4181_v8, 3  ;;  %v4175_v62 = vld [vmem:[#allocation4 + $0x3a] sm:$0x1] }
0x1b3e   :  { %v4143_v16 = vpop.permute.xlu0 %4142 }
0x1b3f   :  { %v4182_v14 = vmul.f32 %v4174_v38, %v8384_v40  ;;  %v4159_v33 = vmul.f32 %v4143_v16, %v4079_v59  ;;  %v4201_v6 = vsel %vm335_vm6, %v4200_v58, %v4199_v30 }
0x1b41   :  { %v8389_v27 = vadd.f32 %v4159_v33, %v8314_v21  ;;  %v4202_v22 = vrot.slane %v4182_v14, 2 }
0x1b43   :  { %v4183_v44 = vmul.f32 %v4175_v62, %v8389_v27  ;;  %v4203_v34 = vsel %vm338_vm7, %v4202_v22, %v4201_v6 }
0x1b45   :  { %v4204_v50 = vrot.slane %v4183_v44, 1 }
0x1b47   :  { %v4205_v15 = vsel %vm341_vm8, %v4204_v50, %v4203_v34 }
0x1b48   :  { %v4207_v21 = vsel %vm145_vm0, %v4205_v15, 0.0 }
0x1b49   :  { %4208 = vadd.xlane.f32.xlu0 %v4207_v21 }
0x1bd6   :  { %v4209_v9 = vpop.xlane.xlu0 %4208 }
0x1bd7   :  { %v4210_v43 = vadd.f32 %v4209_v9, %v8322_v47 }
0x1bd9   :  { %v4211_v55 = vmul.f32 %v4210_v43, %v8234_v24 }
0x1bdb   :  { %v4232_v48 = vrot.slane %v4211_v55, %v8908_v32  ;;  %v4220_v37 = vrot.slane %v4211_v55, %v8905_v41  ;;  %v4224_v56 = vrot.slane %v4211_v55, %v8906_v20  ;;  %v4216_v23 = vrot.slane %v4211_v55, %v6934_v63 }
0x1bdc   :  { %v4228_v36 = vrot.slane %v4211_v55, %v8907_v11  ;;  %v4236_v31 = vrot.slane %v4211_v55, %v8909_v61  ;;  %v4240_v42 = vrot.slane %v4211_v55, %v8901_v25  ;;  %v4244_v0 = vrot.slane %v4211_v55, %v8903_v1 }
0x1bdd   :  { %v4257_v10 = vadd.f32 %v4232_v48, %v8247_v3  ;;  %v4254_v60 = vadd.f32 %v4220_v37, %v8243_v13  ;;  %v4255_v53 = vadd.f32 %v4224_v56, %v8245_v7  ;;  %v4253_v8 = vadd.f32 %v4216_v23, %v8241_v52 }
0x1bde   :  { %v4256_v38 = vadd.f32 %v4228_v36, %v8255_v18  ;;  %v4258_v59 = vadd.f32 %v4236_v31, %v8261_v51  ;;  %v4259_v14 = vadd.f32 %v4240_v42, %v8266_v35  ;;  %v4260_v4 = vadd.f32 %v4244_v0, %v8269_v26 }
0x1bdf   :  { %v5798_v16 = vmul.f32 -1.442695, %v4257_v10  ;;  %v5795_v17 = vmul.f32 -1.442695, %v4254_v60  ;;  %v5796_v28 = vmul.f32 -1.442695, %v4255_v53 }
0x1be0   :  { %v5794_v33 = vmul.f32 -1.442695, %v4253_v8  ;;  %v5797_v57 = vmul.f32 -1.442695, %v4256_v38  ;;  %v5799_v58 = vmul.f32 -1.442695, %v4258_v59 }
0x1be1   :  { %6324 = vpow2.f32 %v5798_v16  ;;  %v5800_v46 = vmul.f32 -1.442695, %v4259_v14  ;;  %v5801_v22 = vmul.f32 -1.442695, %v4260_v4 }
0x1be2   :  { %6326 = vpow2.f32 %v5795_v17 }
0x1be3   :  { %6328 = vpow2.f32 %v5796_v28 }
0x1be4   :  { %6330 = vpow2.f32 %v5794_v33 }
0x1be5   :  { %6332 = vpow2.f32 %v5797_v57 }
0x1be6   :  { %6334 = vpow2.f32 %v5799_v58 }
0x1be7   :  { %6336 = vpow2.f32 %v5800_v46 }
0x1be8   :  { %6338 = vpow2.f32 %v5801_v22 }
0x1beb   :  { %v6325_v62 = vpop.eup %6324 }
0x1bec   :  { %v6327_v19 = vpop.eup %6326  ;;  %v4289_v44 = vadd.f32 1.0, %v6325_v62 }
0x1bed   :  { %v6329_v30 = vpop.eup %6328  ;;  %v4286_v50 = vadd.f32 1.0, %v6327_v19 }
0x1bee   :  { %v6331_v6 = vpop.eup %6330  ;;  %6340 = vrcp.f32 %v4289_v44  ;;  %v4287_v34 = vadd.f32 1.0, %v6329_v30 }
0x1bef   :  { %v6333_v15 = vpop.eup %6332  ;;  %6342 = vrcp.f32 %v4286_v50  ;;  %v4285_v21 = vadd.f32 1.0, %v6331_v6 }
0x1bf0   :  { %v6335_v9 = vpop.eup %6334  ;;  %6344 = vrcp.f32 %v4287_v34  ;;  %v4288_v43 = vadd.f32 1.0, %v6333_v15 }
0x1bf1   :  { %v6337_v55 = vpop.eup %6336  ;;  %6346 = vrcp.f32 %v4285_v21  ;;  %v4290_v48 = vadd.f32 1.0, %v6335_v9 }
0x1bf2   :  { %v6339_v37 = vpop.eup %6338  ;;  %6348 = vrcp.f32 %v4288_v43  ;;  %v4291_v56 = vadd.f32 1.0, %v6337_v55 }
0x1bf3   :  { %6350 = vrcp.f32 %v4290_v48  ;;  %v4292_v23 = vadd.f32 1.0, %v6339_v37  ;;  %v4310_v48 = vld [vmem:[#allocation3 + $0xa] sm:$0x1] }
0x1bf4   :  { %6352 = vrcp.f32 %v4291_v56 }
0x1bf5   :  { %6354 = vrcp.f32 %v4292_v23  ;;  %v4309_v23 = vld [vmem:[#allocation3 + $0x2] sm:$0x1] }
0x1bf8   :  { %v6341_v36 = vpop.eup %6340 }
0x1bf9   :  { %v6343_v31 = vpop.eup %6342  ;;  %v4336_v42 = vrot.slane %v6341_v36, %v8906_v20  ;;  %v5556_v57 = vrot.slane %v6341_v36, 6  ;;  %v4311_v36 = vld [vmem:[#allocation3 + $0x12] sm:$0x1] }
0x1bfa   :  { %v6345_v0 = vpop.eup %6344  ;;  %v4324_v10 = vrot.slane %v6343_v31, %v8906_v20  ;;  %v5551_v60 = vrot.slane %v6343_v31, 1 }
0x1bfb   :  { %v6347_v53 = vpop.eup %6346  ;;  %4370 = vperm.xlu0 %6106, %v4336_v42   ;;  %v4328_v17 = vrot.slane %v6345_v0, %v8906_v20 }
0x1bfc   :  { %v6349_v8 = vpop.eup %6348  ;;  %4361 = vperm.xlu1 %6107, %v4324_v10   ;;  %v5550_v38 = vrot.slane %v6347_v53, 2  ;;  %v4320_v19 = vrot.slane %v6347_v53, %v8906_v20 }
0x1bfd   :  { %v6351_v59 = vpop.eup %6350  ;;  %v5554_v14 = vrot.slane %v6349_v8, 7  ;;  %v4332_v34 = vrot.slane %v6349_v8, %v8906_v20 }
0x1bfe   :  { %v6353_v16 = vpop.eup %6352  ;;  %v5552_v28 = vsel %vm323_vm2, %v5551_v60, %v5550_v38  ;;  %v5558_v46 = vrot.slane %v6351_v59, 5  ;;  %v4340_v15 = vrot.slane %v6351_v59, %v8906_v20  ;;  %v4313_v38 = vld [vmem:[#allocation3 + $0x22] sm:$0x1] }
0x1bff   :  { %v6355_v33 = vpop.eup %6354  ;;  %v5553_v4 = vsel %vm326_vm3, %v6345_v0, %v5552_v28  ;;  %v5560_v62 = vrot.slane %v6353_v16, 4  ;;  %v4344_v21 = vrot.slane %v6353_v16, %v8906_v20  ;;  %v4312_v0 = vld [vmem:[#allocation3 + $0x1a] sm:$0x1]  ;;  %v4406_v28 = vld [vmem:[#allocation4 + $0xb] sm:$0x1] }
0x1c00   :  { %4364 = vperm.xlu1 %6107, %v4328_v17   ;;  %v5555_v58 = vsel %vm329_vm4, %v5554_v14, %v5553_v4  ;;  %v5562_v30 = vrot.slane %v6355_v33, 3  ;;  %v4348_v9 = vrot.slane %v6355_v33, %v8906_v20  ;;  %v4314_v33 = vld [vmem:[#allocation3 + $0x2a] sm:$0x1] }
0x1c01   :  { %v5557_v22 = vsel %vm332_vm5, %v5556_v57, %v5555_v58 }
0x1c02   :  { %v5559_v44 = vsel %vm335_vm6, %v5558_v46, %v5557_v22  ;;  %v4408_v46 = vld [vmem:[#allocation4 + $0x1b] sm:$0x1]  ;;  %v4407_v22 = vld [vmem:[#allocation4 + $0x13] sm:$0x1] }
0x1c03   :  { %v5561_v50 = vsel %vm338_vm7, %v5560_v62, %v5559_v44  ;;  %v4315_v44 = vld [vmem:[#allocation3 + $0x32] sm:$0x1] }
0x1c04   :  { %4358 = vperm.xlu1 %6107, %v4320_v19   ;;  %v8428_v6 = vsel %vm341_vm8, %v5562_v30, %v5561_v50 }
0x1c08   :  { %4367 = vperm.xlu1 %6107, %v4332_v34  }
0x1c0c   :  { %4373 = vperm.xlu1 %6107, %v4340_v15   ;;  %v4410_v15 = vld [vmem:[#allocation4 + $0x2b] sm:$0x1] }
0x1c10   :  { %4376 = vperm.xlu1 %6107, %v4344_v21   ;;  %v4409_v21 = vld [vmem:[#allocation4 + $0x23] sm:$0x1] }
0x1c14   :  { %4379 = vperm.xlu1 %6107, %v4348_v9  }
0x1c7a   :  { %v4371_v60 = vpop.permute.xlu0 %4370 }
0x1c7b   :  { %v4362_v43 = vpop.permute.xlu1 %4361  ;;  %v4393_v17 = vmul.f32 %v4371_v60, %v4313_v38  ;;  %v4412_v38 = vld [vmem:[#allocation4 + $0x3b] sm:$0x1] }
0x1c7c   :  { %v4390_v56 = vmul.f32 %v4362_v43, %v4310_v48 }
0x1c7d   :  { %v8453_v19 = vadd.f32 %v4393_v17, %v8372_v49 }
0x1c7e   :  { %v8435_v53 = vadd.f32 %v4390_v56, %v8360_v2  ;;  %v4405_v2 = vld [vmem:[#allocation4 + $0x3] sm:$0x1]  ;;  %v4316_v56 = vld [vmem:[#allocation3 + $0x3a] sm:$0x1] }
0x1c7f   :  { %v4365_v55 = vpop.permute.xlu1 %4364 }
0x1c80   :  { %v4391_v42 = vmul.f32 %v4365_v55, %v4311_v36  ;;  %v4414_v57 = vmul.f32 %v4406_v28, %v8435_v53 }
0x1c82   :  { %v8444_v14 = vadd.f32 %v4391_v42, %v8369_v45  ;;  %v4429_v50 = vrot.slane %v4414_v57, 7 }
0x1c83   :  { %v4359_v37 = vpop.permute.xlu1 %4358 }
0x1c84   :  { %v4389_v31 = vmul.f32 %v4359_v37, %v4309_v23  ;;  %v4415_v45 = vmul.f32 %v4407_v22, %v8444_v14  ;;  %v4411_v37 = vld [vmem:[#allocation4 + $0x33] sm:$0x1] }
0x1c86   :  { %v8438_v59 = vadd.f32 %v4389_v31, %v8363_v54  ;;  %v4431_v49 = vrot.slane %v4415_v45, 6 }
0x1c87   :  { %v4368_v10 = vpop.permute.xlu1 %4367 }
0x1c88   :  { %v4392_v8 = vmul.f32 %v4368_v10, %v4312_v0  ;;  %v4413_v62 = vmul.f32 %v4405_v2, %v8438_v59 }
0x1c8a   :  { %v8441_v16 = vadd.f32 %v4392_v8, %v8366_v12  ;;  %v4430_v9 = vsel %vm323_vm2, %v4429_v50, %v4413_v62 }
0x1c8b   :  { %v4374_v4 = vpop.permute.xlu1 %4373  ;;  %v4432_v42 = vsel %vm326_vm3, %v4431_v49, %v4430_v9 }
0x1c8c   :  { %v4394_v58 = vmul.f32 %v4374_v4, %v4314_v33  ;;  %v4416_v54 = vmul.f32 %v4408_v46, %v8441_v16 }
0x1c8e   :  { %v8450_v12 = vadd.f32 %v4394_v58, %v8376_v5  ;;  %v4433_v43 = vrot.slane %v4416_v54, 5  ;;  %v4417_v5 = vmul.f32 %v4409_v21, %v8453_v19 }
0x1c8f   :  { %v4377_v30 = vpop.permute.xlu1 %4376 }
0x1c90   :  { %v4395_v34 = vmul.f32 %v4377_v30, %v4315_v44  ;;  %v4418_v55 = vmul.f32 %v4410_v15, %v8450_v12  ;;  %v4434_v0 = vsel %vm329_vm4, %v4433_v43, %v4432_v42  ;;  %v4435_v8 = vrot.slane %v4417_v5, 4 }
0x1c92   :  { %v8459_v48 = vadd.f32 %v4395_v34, %v8384_v40  ;;  %v4437_v10 = vrot.slane %v4418_v55, 3  ;;  %v4436_v28 = vsel %vm332_vm5, %v4435_v8, %v4434_v0 }
0x1c93   :  { %v4380_v23 = vpop.permute.xlu1 %4379 }
0x1c94   :  { %v4419_v36 = vmul.f32 %v4411_v37, %v8459_v48  ;;  %v4396_v31 = vmul.f32 %v4380_v23, %v4316_v56  ;;  %v4438_v4 = vsel %vm335_vm6, %v4437_v10, %v4436_v28 }
0x1c96   :  { %v8466_v60 = vadd.f32 %v4396_v31, %v8389_v27  ;;  %v4439_v40 = vrot.slane %v4419_v36, 2 }
0x1c98   :  { %v4420_v17 = vmul.f32 %v4412_v38, %v8466_v60  ;;  %v4440_v57 = vsel %vm338_vm7, %v4439_v40, %v4438_v4 }
0x1c9a   :  { %v4441_v33 = vrot.slane %v4420_v17, 1 }
0x1c9c   :  { %v4442_v58 = vsel %vm341_vm8, %v4441_v33, %v4440_v57 }
0x1c9d   :  { %v4444_v2 = vsel %vm145_vm0, %v4442_v58, 0.0 }
0x1c9e   :  { %4445 = vadd.xlane.f32.xlu1 %v4444_v2 }
0x1d2b   :  { %v4446_v46 = vpop.xlane.xlu1 %4445 }
0x1d2c   :  { %v4447_v27 = vadd.f32 %v4446_v46, %v8322_v47 }
0x1d2e   :  { %v4448_v22 = vmul.f32 %v4447_v27, %v8234_v24 }
0x1d30   :  { %v4481_v62 = vrot.slane %v4448_v22, %v8903_v1  ;;  %v4457_v54 = vrot.slane %v4448_v22, %v8905_v41  ;;  %v4461_v45 = vrot.slane %v4448_v22, %v8906_v20  ;;  %v4453_v44 = vrot.slane %v4448_v22, %v6934_v63 }
0x1d31   :  { %v4465_v30 = vrot.slane %v4448_v22, %v8907_v11  ;;  %v4469_v50 = vrot.slane %v4448_v22, %v8908_v32  ;;  %v4473_v34 = vrot.slane %v4448_v22, %v8909_v61  ;;  %v4477_v15 = vrot.slane %v4448_v22, %v8901_v25 }
0x1d32   :  { %v4497_v21 = vadd.f32 %v4481_v62, %v8269_v26  ;;  %v4491_v9 = vadd.f32 %v4457_v54, %v8243_v13  ;;  %v4492_v43 = vadd.f32 %v4461_v45, %v8245_v7  ;;  %v4490_v55 = vadd.f32 %v4453_v44, %v8241_v52 }
0x1d33   :  { %v4493_v5 = vadd.f32 %v4465_v30, %v8255_v18  ;;  %v4494_v49 = vadd.f32 %v4469_v50, %v8247_v3  ;;  %v4495_v36 = vadd.f32 %v4473_v34, %v8261_v51  ;;  %v4496_v42 = vadd.f32 %v4477_v15, %v8266_v35 }
0x1d34   :  { %v5809_v37 = vmul.f32 -1.442695, %v4497_v21  ;;  %v5803_v56 = vmul.f32 -1.442695, %v4491_v9  ;;  %v5804_v23 = vmul.f32 -1.442695, %v4492_v43 }
0x1d35   :  { %v5802_v31 = vmul.f32 -1.442695, %v4490_v55  ;;  %v5805_v0 = vmul.f32 -1.442695, %v4493_v5  ;;  %v5806_v10 = vmul.f32 -1.442695, %v4494_v49 }
0x1d36   :  { %6356 = vpow2.f32 %v5809_v37  ;;  %v5807_v8 = vmul.f32 -1.442695, %v4495_v36  ;;  %v5808_v40 = vmul.f32 -1.442695, %v4496_v42 }
0x1d37   :  { %6358 = vpow2.f32 %v5803_v56 }
0x1d38   :  { %6360 = vpow2.f32 %v5804_v23 }
0x1d39   :  { %6362 = vpow2.f32 %v5802_v31 }
0x1d3a   :  { %6364 = vpow2.f32 %v5805_v0 }
0x1d3b   :  { %6366 = vpow2.f32 %v5806_v10 }
0x1d3c   :  { %6368 = vpow2.f32 %v5807_v8 }
0x1d3d   :  { %6370 = vpow2.f32 %v5808_v40 }
0x1d40   :  { %v6357_v38 = vpop.eup %6356 }
0x1d41   :  { %v6359_v17 = vpop.eup %6358  ;;  %v4529_v28 = vadd.f32 1.0, %v6357_v38 }
0x1d42   :  { %v6361_v33 = vpop.eup %6360  ;;  %v4523_v4 = vadd.f32 1.0, %v6359_v17 }
0x1d43   :  { %v6363_v57 = vpop.eup %6362  ;;  %6372 = vrcp.f32 %v4529_v28  ;;  %v4524_v58 = vadd.f32 1.0, %v6361_v33 }
0x1d44   :  { %v6365_v2 = vpop.eup %6364  ;;  %6374 = vrcp.f32 %v4523_v4  ;;  %v4522_v46 = vadd.f32 1.0, %v6363_v57 }
0x1d45   :  { %v6367_v27 = vpop.eup %6366  ;;  %6376 = vrcp.f32 %v4524_v58  ;;  %v4525_v22 = vadd.f32 1.0, %v6365_v2 }
0x1d46   :  { %v6369_v62 = vpop.eup %6368  ;;  %6378 = vrcp.f32 %v4522_v46  ;;  %v4526_v54 = vadd.f32 1.0, %v6367_v27 }
0x1d47   :  { %v6371_v45 = vpop.eup %6370  ;;  %6380 = vrcp.f32 %v4525_v22  ;;  %v4527_v44 = vadd.f32 1.0, %v6369_v62 }
0x1d48   :  { %6382 = vrcp.f32 %v4526_v54  ;;  %v4528_v30 = vadd.f32 1.0, %v6371_v45 }
0x1d49   :  { %6384 = vrcp.f32 %v4527_v44  ;;  %v4547_v44 = vld [vmem:[#allocation3 + $0xb] sm:$0x1] }
0x1d4a   :  { %6386 = vrcp.f32 %v4528_v30 }
0x1d4d   :  { %v6373_v50 = vpop.eup %6372 }
0x1d4e   :  { %v6375_v34 = vpop.eup %6374  ;;  %v4585_v15 = vrot.slane %v6373_v50, %v8907_v11  ;;  %v5587_v4 = vrot.slane %v6373_v50, 4 }
0x1d4f   :  { %v6377_v21 = vpop.eup %6376  ;;  %v4561_v9 = vrot.slane %v6375_v34, %v8907_v11  ;;  %v5576_v43 = vrot.slane %v6375_v34, 2  ;;  %v4546_v34 = vld [vmem:[#allocation3 + $0x3] sm:$0x1] }
0x1d50   :  { %v6379_v55 = vpop.eup %6378  ;;  %4616 = vperm.xlu1 %6107, %v4585_v15   ;;  %v5578_v5 = vrot.slane %v6377_v21, 1  ;;  %v4565_v36 = vrot.slane %v6377_v21, %v8907_v11  ;;  %v4549_v15 = vld [vmem:[#allocation3 + $0x1b] sm:$0x1]  ;;  %v4548_v21 = vld [vmem:[#allocation3 + $0x13] sm:$0x1] }
0x1d51   :  { %v6381_v49 = vpop.eup %6380  ;;  %4598 = vperm.xlu0 %6106, %v4561_v9   ;;  %v5575_v37 = vrot.slane %v6379_v55, 3  ;;  %v4557_v28 = vrot.slane %v6379_v55, %v8907_v11 }
0x1d52   :  { %v6383_v56 = vpop.eup %6382  ;;  %v4569_v2 = vrot.slane %v6381_v49, %v8907_v11 }
0x1d53   :  { %v6385_v23 = vpop.eup %6384  ;;  %v5577_v31 = vsel %vm323_vm2, %v5576_v43, %v5575_v37  ;;  %v5581_v10 = vrot.slane %v6383_v56, 7  ;;  %v4573_v46 = vrot.slane %v6383_v56, %v8907_v11 }
0x1d54   :  { %v6387_v42 = vpop.eup %6386  ;;  %v5579_v0 = vsel %vm326_vm3, %v5578_v5, %v5577_v31  ;;  %v5583_v40 = vrot.slane %v6385_v23, 6  ;;  %v4577_v27 = vrot.slane %v6385_v23, %v8907_v11 }
0x1d55   :  { %4601 = vperm.xlu0 %6106, %v4565_v36   ;;  %v5580_v8 = vsel %vm329_vm4, %v6381_v49, %v5579_v0  ;;  %v5585_v17 = vrot.slane %v6387_v42, 5  ;;  %v4581_v22 = vrot.slane %v6387_v42, %v8907_v11  ;;  %v4550_v49 = vld [vmem:[#allocation3 + $0x23] sm:$0x1]  ;;  %v4553_v42 = vld [vmem:[#allocation3 + $0x3b] sm:$0x1] }
0x1d56   :  { %v5582_v38 = vsel %vm332_vm5, %v5581_v10, %v5580_v8  ;;  %v4643_v0 = vld [vmem:[#allocation4 + $0xc] sm:$0x1] }
0x1d57   :  { %v5584_v33 = vsel %vm335_vm6, %v5583_v40, %v5582_v38  ;;  %v4551_v38 = vld [vmem:[#allocation3 + $0x2b] sm:$0x1] }
0x1d58   :  { %v5586_v57 = vsel %vm338_vm7, %v5585_v17, %v5584_v33  ;;  %v4645_v33 = vld [vmem:[#allocation4 + $0x1c] sm:$0x1] }
0x1d59   :  { %4595 = vperm.xlu0 %6106, %v4557_v28   ;;  %v8503_v58 = vsel %vm341_vm8, %v5587_v4, %v5586_v57  ;;  %v4642_v28 = vld [vmem:[#allocation4 + $0x4] sm:$0x1]  ;;  %v4644_v4 = vld [vmem:[#allocation4 + $0x14] sm:$0x1] }
0x1d5d   :  { %4604 = vperm.xlu0 %6106, %v4569_v2   ;;  %v4646_v2 = vld [vmem:[#allocation4 + $0x24] sm:$0x1] }
0x1d61   :  { %4607 = vperm.xlu0 %6106, %v4573_v46  }
0x1d65   :  { %4610 = vperm.xlu0 %6106, %v4577_v27  }
0x1d69   :  { %4613 = vperm.xlu0 %6106, %v4581_v22  }
0x1dcf   :  { %v4617_v56 = vpop.permute.xlu1 %4616 }
0x1dd0   :  { %v4599_v62 = vpop.permute.xlu0 %4598 }
0x1dd1   :  { %v4627_v30 = vmul.f32 %v4599_v62, %v4547_v44  ;;  %v4647_v62 = vld [vmem:[#allocation4 + $0x2c] sm:$0x1] }
0x1dd3   :  { %v8510_v5 = vadd.f32 %v4627_v30, %v8435_v53  ;;  %v4633_v53 = vmul.f32 %v4617_v56, %v4553_v42 }
0x1dd4   :  { %v4602_v54 = vpop.permute.xlu0 %4601 }
0x1dd5   :  { %v4628_v55 = vmul.f32 %v4602_v54, %v4548_v21  ;;  %v4651_v40 = vmul.f32 %v4643_v0, %v8510_v5  ;;  %v8533_v27 = vadd.f32 %v4633_v53, %v8466_v60  ;;  %v4552_v54 = vld [vmem:[#allocation3 + $0x33] sm:$0x1] }
0x1dd7   :  { %v8519_v10 = vadd.f32 %v4628_v55, %v8444_v14  ;;  %v4666_v22 = vrot.slane %v4651_v40, 7  ;;  %v4648_v55 = vld [vmem:[#allocation4 + $0x34] sm:$0x1] }
0x1dd8   :  { %v4596_v45 = vpop.permute.xlu0 %4595 }
0x1dd9   :  { %v4626_v9 = vmul.f32 %v4596_v45, %v4546_v34  ;;  %v4652_v14 = vmul.f32 %v4644_v4, %v8519_v10 }
0x1ddb   :  { %v8513_v36 = vadd.f32 %v4626_v9, %v8438_v59  ;;  %v4668_v21 = vrot.slane %v4652_v14, 6 }
0x1ddc   :  { %v4605_v50 = vpop.permute.xlu0 %4604 }
0x1ddd   :  { %v4629_v43 = vmul.f32 %v4605_v50, %v4549_v15  ;;  %v4649_v15 = vld [vmem:[#allocation4 + $0x3c] sm:$0x1] }
0x1ddf   :  { %v8516_v31 = vadd.f32 %v4629_v43, %v8441_v16  ;;  %v4650_v16 = vmul.f32 %v4642_v28, %v8513_v36 }
0x1de0   :  { %v4608_v37 = vpop.permute.xlu0 %4607 }
0x1de1   :  { %v4630_v23 = vmul.f32 %v4608_v37, %v4550_v49  ;;  %v4653_v57 = vmul.f32 %v4645_v33, %v8516_v31  ;;  %v4667_v50 = vsel %vm323_vm2, %v4666_v22, %v4650_v16 }
0x1de2   :  { %v4669_v49 = vsel %vm326_vm3, %v4668_v21, %v4667_v50 }
0x1de3   :  { %v8522_v8 = vadd.f32 %v4630_v23, %v8453_v19  ;;  %v4670_v34 = vrot.slane %v4653_v57, 5 }
0x1de4   :  { %v4611_v17 = vpop.permute.xlu0 %4610 }
0x1de5   :  { %v4631_v59 = vmul.f32 %v4611_v17, %v4551_v38  ;;  %v4654_v46 = vmul.f32 %v4646_v2, %v8522_v8  ;;  %v4671_v56 = vsel %vm329_vm4, %v4670_v34, %v4669_v49 }
0x1de7   :  { %v8530_v19 = vadd.f32 %v4631_v59, %v8450_v12  ;;  %v4672_v9 = vrot.slane %v4654_v46, 4  ;;  %v4657_v12 = vmul.f32 %v4649_v15, %v8533_v27 }
0x1de8   :  { %v4614_v45 = vpop.permute.xlu0 %4613 }
0x1de9   :  { %v4655_v44 = vmul.f32 %v4647_v62, %v8530_v19  ;;  %v4632_v30 = vmul.f32 %v4614_v45, %v4552_v54  ;;  %v4673_v42 = vsel %vm332_vm5, %v4672_v9, %v4671_v56  ;;  %v4678_v0 = vrot.slane %v4657_v12, 1 }
0x1deb   :  { %v8538_v43 = vadd.f32 %v4632_v30, %v8459_v48  ;;  %v4674_v60 = vrot.slane %v4655_v44, 3 }
0x1ded   :  { %v4656_v37 = vmul.f32 %v4648_v55, %v8538_v43  ;;  %v4675_v53 = vsel %vm335_vm6, %v4674_v60, %v4673_v42 }
0x1def   :  { %v4676_v23 = vrot.slane %v4656_v37, 2 }
0x1df1   :  { %v4677_v40 = vsel %vm338_vm7, %v4676_v23, %v4675_v53 }
0x1df2   :  { %v4679_v48 = vsel %vm341_vm8, %v4678_v0, %v4677_v40 }
0x1df3   :  { %v4681_v38 = vsel %vm145_vm0, %v4679_v48, 0.0 }
0x1df4   :  { %4682 = vadd.xlane.f32.xlu0 %v4681_v38 }
0x1e81   :  { %v4683_v17 = vpop.xlane.xlu0 %4682 }
0x1e82   :  { %v4684_v28 = vadd.f32 %v4683_v17, %v8322_v47 }
0x1e84   :  { %v4685_v33 = vmul.f32 %v4684_v28, %v8234_v24 }
0x1e86   :  { %v4706_v59 = vrot.slane %v4685_v33, %v8908_v32  ;;  %v4694_v4 = vrot.slane %v4685_v33, %v8905_v41  ;;  %v4698_v16 = vrot.slane %v4685_v33, %v8906_v20  ;;  %v4690_v57 = vrot.slane %v4685_v33, %v6934_v63 }
0x1e87   :  { %v4702_v2 = vrot.slane %v4685_v33, %v8907_v11  ;;  %v4710_v14 = vrot.slane %v4685_v33, %v8909_v61  ;;  %v4714_v46 = vrot.slane %v4685_v33, %v8901_v25  ;;  %v4718_v22 = vrot.slane %v4685_v33, %v8903_v1 }
0x1e88   :  { %v4731_v62 = vadd.f32 %v4706_v59, %v8247_v3  ;;  %v4728_v54 = vadd.f32 %v4694_v4, %v8243_v13  ;;  %v4729_v45 = vadd.f32 %v4698_v16, %v8245_v7  ;;  %v4727_v44 = vadd.f32 %v4690_v57, %v8241_v52 }
0x1e89   :  { %v4730_v30 = vadd.f32 %v4702_v2, %v8255_v18  ;;  %v4732_v50 = vadd.f32 %v4710_v14, %v8261_v51  ;;  %v4733_v9 = vadd.f32 %v4714_v46, %v8266_v35  ;;  %v4734_v60 = vadd.f32 %v4718_v22, %v8269_v26 }
0x1e8a   :  { %v5814_v34 = vmul.f32 -1.442695, %v4731_v62  ;;  %v5811_v15 = vmul.f32 -1.442695, %v4728_v54  ;;  %v5812_v21 = vmul.f32 -1.442695, %v4729_v45 }
0x1e8b   :  { %v5810_v12 = vmul.f32 -1.442695, %v4727_v44  ;;  %v5813_v55 = vmul.f32 -1.442695, %v4730_v30  ;;  %v5815_v49 = vmul.f32 -1.442695, %v4732_v50 }
0x1e8c   :  { %6388 = vpow2.f32 %v5814_v34  ;;  %v5816_v37 = vmul.f32 -1.442695, %v4733_v9  ;;  %v5817_v56 = vmul.f32 -1.442695, %v4734_v60 }
0x1e8d   :  { %6390 = vpow2.f32 %v5811_v15 }
0x1e8e   :  { %6392 = vpow2.f32 %v5812_v21 }
0x1e8f   :  { %6394 = vpow2.f32 %v5810_v12 }
0x1e90   :  { %6396 = vpow2.f32 %v5813_v55 }
0x1e91   :  { %6398 = vpow2.f32 %v5815_v49 }
0x1e92   :  { %6400 = vpow2.f32 %v5816_v37 }
0x1e93   :  { %6402 = vpow2.f32 %v5817_v56 }
0x1e96   :  { %v6389_v23 = vpop.eup %6388 }
0x1e97   :  { %v6391_v42 = vpop.eup %6390  ;;  %v4763_v0 = vadd.f32 1.0, %v6389_v23 }
0x1e98   :  { %v6393_v53 = vpop.eup %6392  ;;  %v4760_v40 = vadd.f32 1.0, %v6391_v42 }
0x1e99   :  { %v6395_v48 = vpop.eup %6394  ;;  %6404 = vrcp.f32 %v4763_v0  ;;  %v4761_v38 = vadd.f32 1.0, %v6393_v53 }
0x1e9a   :  { %v6397_v17 = vpop.eup %6396  ;;  %6406 = vrcp.f32 %v4760_v40  ;;  %v4759_v28 = vadd.f32 1.0, %v6395_v48 }
0x1e9b   :  { %v6399_v33 = vpop.eup %6398  ;;  %6408 = vrcp.f32 %v4761_v38  ;;  %v4762_v59 = vadd.f32 1.0, %v6397_v17 }
0x1e9c   :  { %v6401_v4 = vpop.eup %6400  ;;  %6410 = vrcp.f32 %v4759_v28  ;;  %v4764_v16 = vadd.f32 1.0, %v6399_v33 }
0x1e9d   :  { %v6403_v57 = vpop.eup %6402  ;;  %6412 = vrcp.f32 %v4762_v59  ;;  %v4765_v2 = vadd.f32 1.0, %v6401_v4 }
0x1e9e   :  { %6414 = vrcp.f32 %v4764_v16  ;;  %v4766_v14 = vadd.f32 1.0, %v6403_v57 }
0x1e9f   :  { %6416 = vrcp.f32 %v4765_v2  ;;  %v4784_v2 = vld [vmem:[#allocation3 + $0xc] sm:$0x1] }
0x1ea0   :  { %6418 = vrcp.f32 %v4766_v14 }
0x1ea3   :  { %v6405_v46 = vpop.eup %6404 }
0x1ea4   :  { %v6407_v22 = vpop.eup %6406  ;;  %v4810_v62 = vrot.slane %v6405_v46, %v8908_v32 }
0x1ea5   :  { %v6409_v54 = vpop.eup %6408  ;;  %v4798_v45 = vrot.slane %v6407_v22, %v8908_v32  ;;  %v5601_v44 = vrot.slane %v6407_v22, 3  ;;  %v4783_v22 = vld [vmem:[#allocation3 + $0x4] sm:$0x1] }
0x1ea6   :  { %v6411_v30 = vpop.eup %6410  ;;  %4844 = vperm.xlu0 %6106, %v4810_v62   ;;  %v5603_v50 = vrot.slane %v6409_v54, 2  ;;  %v4802_v12 = vrot.slane %v6409_v54, %v8908_v32  ;;  %v4785_v62 = vld [vmem:[#allocation3 + $0x14] sm:$0x1] }
0x1ea7   :  { %v6413_v34 = vpop.eup %6412  ;;  %4835 = vperm.xlu1 %6107, %v4798_v45   ;;  %v5600_v15 = vrot.slane %v6411_v30, 4  ;;  %v4794_v53 = vrot.slane %v6411_v30, %v8908_v32 }
0x1ea8   :  { %v6415_v21 = vpop.eup %6414  ;;  %v5605_v55 = vrot.slane %v6413_v34, 1  ;;  %v4806_v28 = vrot.slane %v6413_v34, %v8908_v32 }
0x1ea9   :  { %v6417_v9 = vpop.eup %6416  ;;  %v5602_v60 = vsel %vm323_vm2, %v5601_v44, %v5600_v15  ;;  %v5608_v23 = vrot.slane %v6415_v21, 7  ;;  %v4814_v33 = vrot.slane %v6415_v21, %v8908_v32  ;;  %v4786_v44 = vld [vmem:[#allocation3 + $0x1c] sm:$0x1]  ;;  %v4787_v21 = vld [vmem:[#allocation3 + $0x24] sm:$0x1] }
0x1eaa   :  { %v6419_v49 = vpop.eup %6418  ;;  %v5604_v37 = vsel %vm326_vm3, %v5603_v50, %v5602_v60  ;;  %v5610_v0 = vrot.slane %v6417_v9, 6  ;;  %v4818_v59 = vrot.slane %v6417_v9, %v8908_v32 }
0x1eab   :  { %4838 = vperm.xlu1 %6107, %v4802_v12   ;;  %v5606_v56 = vsel %vm329_vm4, %v5605_v55, %v5604_v37  ;;  %v5612_v48 = vrot.slane %v6419_v49, 5  ;;  %v4822_v4 = vrot.slane %v6419_v49, %v8908_v32  ;;  %v4880_v55 = vld [vmem:[#allocation4 + $0xd] sm:$0x1]  ;;  %v4788_v37 = vld [vmem:[#allocation3 + $0x2c] sm:$0x1] }
0x1eac   :  { %v5607_v42 = vsel %vm332_vm5, %v6405_v46, %v5606_v56 }
0x1ead   :  { %v5609_v40 = vsel %vm335_vm6, %v5608_v23, %v5607_v42 }
0x1eae   :  { %v5611_v38 = vsel %vm338_vm7, %v5610_v0, %v5609_v40  ;;  %v4882_v0 = vld [vmem:[#allocation4 + $0x1d] sm:$0x1] }
0x1eaf   :  { %4832 = vperm.xlu1 %6107, %v4794_v53   ;;  %v8578_v17 = vsel %vm341_vm8, %v5612_v48, %v5611_v38  ;;  %v4881_v53 = vld [vmem:[#allocation4 + $0x15] sm:$0x1]  ;;  %v4789_v38 = vld [vmem:[#allocation3 + $0x34] sm:$0x1] }
0x1eb3   :  { %4841 = vperm.xlu1 %6107, %v4806_v28  }
0x1eb7   :  { %4847 = vperm.xlu1 %6107, %v4814_v33  }
0x1ebb   :  { %4850 = vperm.xlu1 %6107, %v4818_v59  }
0x1ebf   :  { %4853 = vperm.xlu1 %6107, %v4822_v4   ;;  %v4884_v4 = vld [vmem:[#allocation4 + $0x2d] sm:$0x1] }
0x1f25   :  { %v4845_v50 = vpop.permute.xlu0 %4844 }
0x1f26   :  { %v4836_v16 = vpop.permute.xlu1 %4835  ;;  %v4867_v60 = vmul.f32 %v4845_v50, %v4787_v21 }
0x1f27   :  { %v4864_v46 = vmul.f32 %v4836_v16, %v4784_v2  ;;  %v4883_v16 = vld [vmem:[#allocation4 + $0x25] sm:$0x1] }
0x1f28   :  { %v8603_v48 = vadd.f32 %v4867_v60, %v8522_v8 }
0x1f29   :  { %v8585_v34 = vadd.f32 %v4864_v46, %v8510_v5  ;;  %v4879_v5 = vld [vmem:[#allocation4 + $0x5] sm:$0x1] }
0x1f2a   :  { %v4839_v57 = vpop.permute.xlu1 %4838 }
0x1f2b   :  { %v4865_v45 = vmul.f32 %v4839_v57, %v4785_v62  ;;  %v4888_v23 = vmul.f32 %v4880_v55, %v8585_v34  ;;  %v4790_v62 = vld [vmem:[#allocation3 + $0x3c] sm:$0x1]  ;;  %v4886_v55 = vld [vmem:[#allocation4 + $0x3d] sm:$0x1] }
0x1f2d   :  { %v8594_v49 = vadd.f32 %v4865_v45, %v8519_v10  ;;  %v4903_v33 = vrot.slane %v4888_v23, 7 }
0x1f2e   :  { %v4833_v14 = vpop.permute.xlu1 %4832 }
0x1f2f   :  { %v4863_v54 = vmul.f32 %v4833_v14, %v4783_v22  ;;  %v4889_v10 = vmul.f32 %v4881_v53, %v8594_v49  ;;  %v4885_v22 = vld [vmem:[#allocation4 + $0x35] sm:$0x1] }
0x1f31   :  { %v8588_v9 = vadd.f32 %v4863_v54, %v8513_v36  ;;  %v4905_v8 = vrot.slane %v4889_v10, 6 }
0x1f32   :  { %v4842_v30 = vpop.permute.xlu1 %4841 }
0x1f33   :  { %v4866_v15 = vmul.f32 %v4842_v30, %v4786_v44  ;;  %v4887_v40 = vmul.f32 %v4879_v5, %v8588_v9 }
0x1f35   :  { %v8591_v12 = vadd.f32 %v4866_v15, %v8516_v31  ;;  %v4904_v57 = vsel %vm323_vm2, %v4903_v33, %v4887_v40 }
0x1f36   :  { %v4848_v56 = vpop.permute.xlu1 %4847  ;;  %v4906_v30 = vsel %vm326_vm3, %v4905_v8, %v4904_v57 }
0x1f37   :  { %v4868_v42 = vmul.f32 %v4848_v56, %v4788_v37  ;;  %v4890_v36 = vmul.f32 %v4882_v0, %v8591_v12 }
0x1f39   :  { %v8600_v31 = vadd.f32 %v4868_v42, %v8530_v19  ;;  %v4907_v2 = vrot.slane %v4890_v36, 5  ;;  %v4891_v19 = vmul.f32 %v4883_v16, %v8603_v48 }
0x1f3a   :  { %v4851_v28 = vpop.permute.xlu1 %4850 }
0x1f3b   :  { %v4869_v59 = vmul.f32 %v4851_v28, %v4789_v38  ;;  %v4892_v14 = vmul.f32 %v4884_v4, %v8600_v31  ;;  %v4908_v50 = vsel %vm329_vm4, %v4907_v2, %v4906_v30  ;;  %v4909_v60 = vrot.slane %v4891_v19, 4 }
0x1f3d   :  { %v8609_v46 = vadd.f32 %v4869_v59, %v8538_v43  ;;  %v4911_v15 = vrot.slane %v4892_v14, 3  ;;  %v4910_v56 = vsel %vm332_vm5, %v4909_v60, %v4908_v50 }
0x1f3e   :  { %v4854_v54 = vpop.permute.xlu1 %4853 }
0x1f3f   :  { %v4893_v45 = vmul.f32 %v4885_v22, %v8609_v46  ;;  %v4870_v44 = vmul.f32 %v4854_v54, %v4790_v62  ;;  %v4912_v42 = vsel %vm335_vm6, %v4911_v15, %v4910_v56 }
0x1f41   :  { %v8616_v21 = vadd.f32 %v4870_v44, %v8533_v27  ;;  %v4913_v43 = vrot.slane %v4893_v45, 2 }
0x1f43   :  { %v4894_v37 = vmul.f32 %v4886_v55, %v8616_v21  ;;  %v4914_v5 = vsel %vm338_vm7, %v4913_v43, %v4912_v42 }
0x1f45   :  { %v4915_v23 = vrot.slane %v4894_v37, 1 }
0x1f47   :  { %v4916_v0 = vsel %vm341_vm8, %v4915_v23, %v4914_v5 }
0x1f48   :  { %v4918_v53 = vsel %vm145_vm0, %v4916_v0, 0.0 }
0x1f49   :  { %4919 = vadd.xlane.f32.xlu1 %v4918_v53 }
0x1fd6   :  { %v4920_v40 = vpop.xlane.xlu1 %4919 }
0x1fd7   :  { %v4921_v27 = vadd.f32 %v4920_v40, %v8322_v47 }
0x1fd9   :  { %v4922_v36 = vmul.f32 %v4921_v27, %v8234_v24 }
0x1fdb   :  { %v4955_v10 = vrot.slane %v4922_v36, %v8903_v1  ;;  %v4931_v38 = vrot.slane %v4922_v36, %v8905_v41  ;;  %v4935_v28 = vrot.slane %v4922_v36, %v8906_v20  ;;  %v4927_v33 = vrot.slane %v4922_v36, %v6934_v63 }
0x1fdc   :  { %v4939_v59 = vrot.slane %v4922_v36, %v8907_v11  ;;  %v4943_v4 = vrot.slane %v4922_v36, %v8908_v32  ;;  %v4947_v16 = vrot.slane %v4922_v36, %v8909_v61  ;;  %v4951_v57 = vrot.slane %v4922_v36, %v8901_v25 }
0x1fdd   :  { %v4971_v2 = vadd.f32 %v4955_v10, %v8269_v26  ;;  %v4965_v14 = vadd.f32 %v4931_v38, %v8243_v13  ;;  %v4966_v19 = vadd.f32 %v4935_v28, %v8245_v7  ;;  %v4964_v8 = vadd.f32 %v4927_v33, %v8241_v52 }
0x1fde   :  { %v4967_v22 = vadd.f32 %v4939_v59, %v8255_v18  ;;  %v4968_v62 = vadd.f32 %v4943_v4, %v8247_v3  ;;  %v4969_v30 = vadd.f32 %v4947_v16, %v8261_v51  ;;  %v4970_v15 = vadd.f32 %v4951_v57, %v8266_v35 }
0x1fdf   :  { %v5825_v54 = vmul.f32 -1.442695, %v4971_v2  ;;  %v5819_v45 = vmul.f32 -1.442695, %v4965_v14  ;;  %v5820_v44 = vmul.f32 -1.442695, %v4966_v19 }
0x1fe0   :  { %v5818_v50 = vmul.f32 -1.442695, %v4964_v8  ;;  %v5821_v60 = vmul.f32 -1.442695, %v4967_v22  ;;  %v5822_v43 = vmul.f32 -1.442695, %v4968_v62 }
0x1fe1   :  { %6420 = vpow2.f32 %v5825_v54  ;;  %v5823_v55 = vmul.f32 -1.442695, %v4969_v30  ;;  %v5824_v37 = vmul.f32 -1.442695, %v4970_v15 }
0x1fe2   :  { %6422 = vpow2.f32 %v5819_v45 }
0x1fe3   :  { %6424 = vpow2.f32 %v5820_v44 }
0x1fe4   :  { %6426 = vpow2.f32 %v5818_v50 }
0x1fe5   :  { %6428 = vpow2.f32 %v5821_v60 }
0x1fe6   :  { %6430 = vpow2.f32 %v5822_v43 }
0x1fe7   :  { %6432 = vpow2.f32 %v5823_v55 }
0x1fe8   :  { %6434 = vpow2.f32 %v5824_v37 }
0x1feb   :  { %v6421_v56 = vpop.eup %6420 }
0x1fec   :  { %v6423_v23 = vpop.eup %6422  ;;  %v5003_v42 = vadd.f32 1.0, %v6421_v56 }
0x1fed   :  { %v6425_v5 = vpop.eup %6424  ;;  %v4997_v0 = vadd.f32 1.0, %v6423_v23 }
0x1fee   :  { %v6427_v53 = vpop.eup %6426  ;;  %6436 = vrcp.f32 %v5003_v42  ;;  %v4998_v40 = vadd.f32 1.0, %v6425_v5 }
0x1fef   :  { %v6429_v27 = vpop.eup %6428  ;;  %6438 = vrcp.f32 %v4997_v0  ;;  %v4996_v36 = vadd.f32 1.0, %v6427_v53 }
0x1ff0   :  { %v6431_v10 = vpop.eup %6430  ;;  %6440 = vrcp.f32 %v4998_v40  ;;  %v4999_v38 = vadd.f32 1.0, %v6429_v27 }
0x1ff1   :  { %v6433_v28 = vpop.eup %6432  ;;  %6442 = vrcp.f32 %v4996_v36  ;;  %v5000_v33 = vadd.f32 1.0, %v6431_v10 }
0x1ff2   :  { %v6435_v59 = vpop.eup %6434  ;;  %6444 = vrcp.f32 %v4999_v38  ;;  %v5001_v4 = vadd.f32 1.0, %v6433_v28 }
0x1ff3   :  { %6446 = vrcp.f32 %v5000_v33  ;;  %v5002_v16 = vadd.f32 1.0, %v6435_v59 }
0x1ff5   :  { %6448 = vrcp.f32 %v5002_v16 }
0x1ff6   :  { %6450 = vrcp.f32 %v5001_v4 }
0x1ff8   :  { %v6437_v57 = vpop.eup %6436 }
0x1ff9   :  { %v6439_v2 = vpop.eup %6438  ;;  %v5059_v14 = vrot.slane %v6437_v57, %v8909_v61  ;;  %v5637_v40 = vrot.slane %v6437_v57, 6  ;;  %v5021_v57 = vld [vmem:[#allocation3 + $0xd] sm:$0x1] }
0x1ffa   :  { %v6441_v19 = vpop.eup %6440  ;;  %v5035_v8 = vrot.slane %v6439_v2, %v8909_v61  ;;  %v5626_v22 = vrot.slane %v6439_v2, 4 }
0x1ffb   :  { %v6443_v62 = vpop.eup %6442  ;;  %5090 = vperm.xlu1 %6107, %v5059_v14   ;;  %v5628_v54 = vrot.slane %v6441_v19, 3  ;;  %v5039_v50 = vrot.slane %v6441_v19, %v8909_v61  ;;  %v5020_v19 = vld [vmem:[#allocation3 + $0x5] sm:$0x1] }
0x1ffc   :  { %v6445_v45 = vpop.eup %6444  ;;  %5072 = vperm.xlu0 %6106, %v5035_v8   ;;  %v5625_v44 = vrot.slane %v6443_v62, 5  ;;  %v5031_v0 = vrot.slane %v6443_v62, %v8909_v61  ;;  %v5023_v8 = vld [vmem:[#allocation3 + $0x1d] sm:$0x1] }
0x1ffd   :  { %v6447_v30 = vpop.eup %6446  ;;  %v5630_v60 = vrot.slane %v6445_v45, 2  ;;  %v5043_v10 = vrot.slane %v6445_v45, %v8909_v61 }
0x1ffe   :  { %v5627_v15 = vsel %vm323_vm2, %v5626_v22, %v5625_v44  ;;  %v5632_v37 = vrot.slane %v6447_v30, 1  ;;  %v5047_v38 = vrot.slane %v6447_v30, %v8909_v61  ;;  %v5022_v22 = vld [vmem:[#allocation3 + $0x15] sm:$0x1]  ;;  %v5024_v30 = vld [vmem:[#allocation3 + $0x25] sm:$0x1] }
0x1fff   :  { %v6449_v43 = vpop.eup %6448  ;;  %v5629_v55 = vsel %vm326_vm3, %v5628_v54, %v5627_v15 }
0x2000   :  { %5075 = vperm.xlu0 %6106, %v5039_v50   ;;  %v5631_v56 = vsel %vm329_vm4, %v5630_v60, %v5629_v55  ;;  %v6451_v23 = vpop.eup %6450  ;;  %v5635_v5 = vrot.slane %v6449_v43, 7  ;;  %v5055_v33 = vrot.slane %v6449_v43, %v8909_v61 }
0x2001   :  { %v5633_v42 = vsel %vm332_vm5, %v5632_v37, %v5631_v56  ;;  %v5051_v28 = vrot.slane %v6451_v23, %v8909_v61  ;;  %v5027_v37 = vld [vmem:[#allocation3 + $0x3d] sm:$0x1]  ;;  %v5117_v56 = vld [vmem:[#allocation4 + $0xe] sm:$0x1] }
0x2002   :  { %v5634_v53 = vsel %vm335_vm6, %v6451_v23, %v5633_v42 }
0x2003   :  { %v5636_v27 = vsel %vm338_vm7, %v5635_v5, %v5634_v53 }
0x2004   :  { %5069 = vperm.xlu0 %6106, %v5031_v0   ;;  %v8653_v36 = vsel %vm341_vm8, %v5637_v40, %v5636_v27  ;;  %v5025_v0 = vld [vmem:[#allocation3 + $0x2d] sm:$0x1]  ;;  %v5116_v40 = vld [vmem:[#allocation4 + $0x6] sm:$0x1]  ;;  %v5119_v27 = vld [vmem:[#allocation4 + $0x1e] sm:$0x1] }
0x2008   :  { %5078 = vperm.xlu0 %6106, %v5043_v10   ;;  %v5118_v10 = vld [vmem:[#allocation4 + $0x16] sm:$0x1] }
0x200c   :  { %5081 = vperm.xlu0 %6106, %v5047_v38  }
0x2010   :  { %5084 = vperm.xlu0 %6106, %v5051_v28   ;;  %v5120_v28 = vld [vmem:[#allocation4 + $0x26] sm:$0x1] }
0x2014   :  { %5087 = vperm.xlu0 %6106, %v5055_v33  }
0x207a   :  { %v5091_v15 = vpop.permute.xlu1 %5090 }
0x207b   :  { %v5073_v59 = vpop.permute.xlu0 %5072 }
0x207c   :  { %v5101_v2 = vmul.f32 %v5073_v59, %v5021_v57  ;;  %v5026_v57 = vld [vmem:[#allocation3 + $0x35] sm:$0x1] }
0x207e   :  { %v8660_v44 = vadd.f32 %v5101_v2, %v8585_v34  ;;  %v5107_v34 = vmul.f32 %v5091_v15, %v5027_v37 }
0x207f   :  { %v5076_v4 = vpop.permute.xlu0 %5075 }
0x2080   :  { %v5102_v45 = vmul.f32 %v5076_v4, %v5022_v22  ;;  %v5125_v5 = vmul.f32 %v5117_v56, %v8660_v44  ;;  %v8683_v59 = vadd.f32 %v5107_v34, %v8616_v21 }
0x2082   :  { %v8669_v23 = vadd.f32 %v5102_v45, %v8594_v49  ;;  %v5140_v4 = vrot.slane %v5125_v5, 7 }
0x2083   :  { %v5070_v16 = vpop.permute.xlu0 %5069 }
0x2084   :  { %v5100_v62 = vmul.f32 %v5070_v16, %v5020_v19  ;;  %v5126_v49 = vmul.f32 %v5118_v10, %v8669_v23  ;;  %v5121_v16 = vld [vmem:[#allocation4 + $0x2e] sm:$0x1] }
0x2086   :  { %v8663_v43 = vadd.f32 %v5100_v62, %v8588_v9  ;;  %v5123_v62 = vld [vmem:[#allocation4 + $0x3e] sm:$0x1] }
0x2087   :  { %v5079_v14 = vpop.permute.xlu0 %5078 }
0x2088   :  { %v5103_v54 = vmul.f32 %v5079_v14, %v5023_v8 }
0x208a   :  { %v8666_v55 = vadd.f32 %v5103_v54, %v8591_v12  ;;  %v5124_v12 = vmul.f32 %v5116_v40, %v8663_v43  ;;  %v5142_v54 = vrot.slane %v5126_v49, 6 }
0x208b   :  { %v5082_v50 = vpop.permute.xlu0 %5081 }
0x208c   :  { %v5104_v60 = vmul.f32 %v5082_v50, %v5024_v30  ;;  %v5127_v38 = vmul.f32 %v5119_v27, %v8666_v55  ;;  %v5141_v8 = vsel %vm323_vm2, %v5140_v4, %v5124_v12  ;;  %v5122_v50 = vld [vmem:[#allocation4 + $0x36] sm:$0x1] }
0x208d   :  { %v5143_v15 = vsel %vm326_vm3, %v5142_v54, %v5141_v8 }
0x208e   :  { %v8672_v42 = vadd.f32 %v5104_v60, %v8603_v48  ;;  %v5144_v22 = vrot.slane %v5127_v38, 5 }
0x208f   :  { %v5085_v53 = vpop.permute.xlu0 %5084 }
0x2090   :  { %v5105_v9 = vmul.f32 %v5085_v53, %v5025_v0  ;;  %v5128_v33 = vmul.f32 %v5120_v28, %v8672_v42  ;;  %v5145_v37 = vsel %vm329_vm4, %v5144_v22, %v5143_v15 }
0x2092   :  { %v8680_v48 = vadd.f32 %v5105_v9, %v8600_v31  ;;  %v5146_v45 = vrot.slane %v5128_v33, 4  ;;  %v5131_v31 = vmul.f32 %v5123_v62, %v8683_v59 }
0x2093   :  { %v5088_v2 = vpop.permute.xlu0 %5087 }
0x2094   :  { %v5129_v14 = vmul.f32 %v5121_v16, %v8680_v48  ;;  %v5106_v19 = vmul.f32 %v5088_v2, %v5026_v57  ;;  %v5147_v34 = vsel %vm332_vm5, %v5146_v45, %v5145_v37  ;;  %v5152_v5 = vrot.slane %v5131_v31, 1 }
0x2096   :  { %v8688_v30 = vadd.f32 %v5106_v19, %v8609_v46  ;;  %v5148_v21 = vrot.slane %v5129_v14, 3 }
0x2098   :  { %v5130_v60 = vmul.f32 %v5122_v50, %v8688_v30  ;;  %v5149_v0 = vsel %vm335_vm6, %v5148_v21, %v5147_v34 }
0x209a   :  { %v5150_v56 = vrot.slane %v5130_v60, 2 }
0x209c   :  { %v5151_v53 = vsel %vm338_vm7, %v5150_v56, %v5149_v0 }
0x209d   :  { %v5153_v46 = vsel %vm341_vm8, %v5152_v5, %v5151_v53 }
0x209e   :  { %v5155_v40 = vsel %vm145_vm0, %v5153_v46, 0.0 }
0x209f   :  { %5156 = vadd.xlane.f32.xlu0 %v5155_v40 }
0x212c   :  { %v5157_v27 = vpop.xlane.xlu0 %5156 }
0x212d   :  { %v5158_v9 = vadd.f32 %v5157_v27, %v8322_v47 }
0x212f   :  { %v5159_v10 = vmul.f32 %v5158_v9, %v8234_v24 }
0x2131   :  { %v5180_v12 = vrot.slane %v5159_v10, %v8908_v32  ;;  %v5168_v38 = vrot.slane %v5159_v10, %v8905_v41  ;;  %v5172_v28 = vrot.slane %v5159_v10, %v8906_v20  ;;  %v5164_v49 = vrot.slane %v5159_v10, %v6934_v63 }
0x2132   :  { %v5176_v33 = vrot.slane %v5159_v10, %v8907_v11  ;;  %v5184_v54 = vrot.slane %v5159_v10, %v8909_v61  ;;  %v5188_v45 = vrot.slane %v5159_v10, %v8901_v25  ;;  %v5192_v15 = vrot.slane %v5159_v10, %v8903_v1 }
0x2133   :  { %v5205_v4 = vadd.f32 %v5180_v12, %v8247_v3  ;;  %v5202_v16 = vadd.f32 %v5168_v38, %v8243_v13  ;;  %v5203_v57 = vadd.f32 %v5172_v28, %v8245_v7  ;;  %v5201_v2 = vadd.f32 %v5164_v49, %v8241_v52 }
0x2134   :  { %v5204_v14 = vadd.f32 %v5176_v33, %v8255_v18  ;;  %v5206_v21 = vadd.f32 %v5184_v54, %v8261_v51  ;;  %v5207_v50 = vadd.f32 %v5188_v45, %v8266_v35  ;;  %v5208_v56 = vadd.f32 %v5192_v15, %v8269_v26 }
0x2135   :  { %v5830_v19 = vmul.f32 -1.442695, %v5205_v4  ;;  %v5827_v8 = vmul.f32 -1.442695, %v5202_v16  ;;  %v5828_v22 = vmul.f32 -1.442695, %v5203_v57 }
0x2136   :  { %v5826_v62 = vmul.f32 -1.442695, %v5201_v2  ;;  %v5829_v31 = vmul.f32 -1.442695, %v5204_v14  ;;  %v5831_v60 = vmul.f32 -1.442695, %v5206_v21 }
0x2137   :  { %6452 = vpow2.f32 %v5830_v19  ;;  %v5832_v37 = vmul.f32 -1.442695, %v5207_v50  ;;  %v5833_v9 = vmul.f32 -1.442695, %v5208_v56 }
0x2138   :  { %6454 = vpow2.f32 %v5827_v8 }
0x2139   :  { %6456 = vpow2.f32 %v5828_v22 }
0x213a   :  { %6458 = vpow2.f32 %v5826_v62 }
0x213b   :  { %6460 = vpow2.f32 %v5829_v31 }
0x213c   :  { %6462 = vpow2.f32 %v5831_v60 }
0x213d   :  { %6464 = vpow2.f32 %v5832_v37 }
0x2141   :  { %v6453_v34 = vpop.eup %6452 }
0x2142   :  { %v6455_v5 = vpop.eup %6454  ;;  %v5237_v0 = vadd.f32 1.0, %v6453_v34 }
0x2143   :  { %v6457_v53 = vpop.eup %6456  ;;  %v5234_v46 = vadd.f32 1.0, %v6455_v5 }
0x2144   :  { %v6459_v40 = vpop.eup %6458  ;;  %6466 = vrcp.f32 %v5237_v0  ;;  %v5235_v27 = vadd.f32 1.0, %v6457_v53 }
0x2145   :  { %6468 = vrcp.f32 %v5234_v46  ;;  %v5233_v12 = vadd.f32 1.0, %v6459_v40  ;;  %v6461_v38 = vpop.eup %6460 }
0x2146   :  { %6470 = vrcp.f32 %v5235_v27  ;;  %v5236_v10 = vadd.f32 1.0, %v6461_v38  ;;  %v6463_v28 = vpop.eup %6462 }
0x2147   :  { %6472 = vrcp.f32 %v5233_v12  ;;  %v6465_v49 = vpop.eup %6464  ;;  %v5238_v57 = vadd.f32 1.0, %v6463_v28 }
0x2148   :  { %6474 = vpow2.f32 %v5833_v9  ;;  %v5239_v54 = vadd.f32 1.0, %v6465_v49 }
0x2149   :  { %6476 = vrcp.f32 %v5236_v10 }
0x214a   :  { %6478 = vrcp.f32 %v5238_v57  ;;  %v5257_v57 = vld [vmem:[#allocation3 + $0x6] sm:$0x1] }
0x214b   :  { %6480 = vrcp.f32 %v5239_v54 }
0x214e   :  { %v6467_v33 = vpop.eup %6466 }
0x214f   :  { %v6469_v4 = vpop.eup %6468  ;;  %v5284_v16 = vrot.slane %v6467_v33, %v8901_v25  ;;  %v5657_v0 = vrot.slane %v6467_v33, 2  ;;  %v5258_v33 = vld [vmem:[#allocation3 + $0xe] sm:$0x1] }
0x2150   :  { %v6471_v2 = vpop.eup %6470  ;;  %v5272_v14 = vrot.slane %v6469_v4, %v8901_v25  ;;  %v5651_v62 = vrot.slane %v6469_v4, 5 }
0x2151   :  { %v6473_v19 = vpop.eup %6472  ;;  %5318 = vperm.xlu0 %6106, %v5284_v16   ;;  %v5276_v45 = vrot.slane %v6471_v2, %v8901_v25  ;;  %v5653_v21 = vrot.slane %v6471_v2, 4  ;;  %v5259_v2 = vld [vmem:[#allocation3 + $0x16] sm:$0x1] }
0x2152   :  { %v6475_v8 = vpop.eup %6474  ;;  %5309 = vperm.xlu1 %6107, %v5272_v14   ;;  %v5650_v22 = vrot.slane %v6473_v19, 6  ;;  %v5268_v60 = vrot.slane %v6473_v19, %v8901_v25  ;;  %v5260_v19 = vld [vmem:[#allocation3 + $0x1e] sm:$0x1] }
0x2153   :  { %v5240_v31 = vadd.f32 1.0, %v6475_v8  ;;  %v6477_v15 = vpop.eup %6476 }
0x2154   :  { %v5652_v50 = vsel %vm323_vm2, %v5651_v62, %v5650_v22  ;;  %v5655_v56 = vrot.slane %v6477_v15, 3  ;;  %v5280_v34 = vrot.slane %v6477_v15, %v8901_v25  ;;  %v6479_v5 = vpop.eup %6478  ;;  %v5354_v15 = vld [vmem:[#allocation4 + $0xf] sm:$0x1] }
0x2155   :  { %5539 = vrot.lane.b32.xlu0 %v8352_v39, %s6651_s8  ;;  %6482 = vrcp.f32 %v5240_v31  ;;  %v5654_v37 = vsel %vm326_vm3, %v5653_v21, %v5652_v50  ;;  %v5288_v46 = vrot.slane %v6479_v5, %v8901_v25  ;;  %v6481_v40 = vpop.eup %6480 }
0x2156   :  { %5312 = vperm.xlu1 %6107, %v5276_v45   ;;  %v5656_v39 = vsel %vm329_vm4, %v5655_v56, %v5654_v37  ;;  %v5292_v12 = vrot.slane %v6481_v40, %v8901_v25  ;;  %v5261_v45 = vld [vmem:[#allocation3 + $0x26] sm:$0x1]  ;;  %v5262_v37 = vld [vmem:[#allocation3 + $0x2e] sm:$0x1] }
0x2157   :  { %v5658_v53 = vsel %vm332_vm5, %v5657_v0, %v5656_v39  ;;  %v5356_v0 = vld [vmem:[#allocation4 + $0x1f] sm:$0x1] }
0x2159   :  { %5564 = vrot.lane.b32.xlu0 %v8428_v6, %s6652_s12  ;;  %v5659_v6 = vrot.slane %v6479_v5, 1  ;;  %v5353_v5 = vld [vmem:[#allocation4 + $0x7] sm:$0x1] }
0x215a   :  { %5306 = vperm.xlu1 %6107, %v5268_v60  }
0x215b   :  { %v5660_v27 = vsel %vm335_vm6, %v5659_v6, %v5658_v53  ;;  %v5355_v53 = vld [vmem:[#allocation4 + $0x17] sm:$0x1] }
0x215d   :  { %5589 = vrot.lane.b32.xlu0 %v8503_v58, %s6653_s28  ;;  %v5661_v58 = vsel %vm338_vm7, %v6481_v40, %v5660_v27  ;;  %v5263_v27 = vld [vmem:[#allocation3 + $0x36] sm:$0x1] }
0x215e   :  { %5315 = vperm.xlu1 %6107, %v5280_v34  }
0x215f   :  { %v6483_v9 = vpop.eup %6482 }
0x2160   :  { %v5662_v38 = vrot.slane %v6483_v9, 7  ;;  %v5296_v28 = vrot.slane %v6483_v9, %v8901_v25 }
0x2161   :  { %5614 = vrot.lane.b32.xlu0 %v8578_v17, %s6630_s22  ;;  %s6656_s22 = smov 7  }
0x2162   :  { %5321 = vperm.xlu1 %6107, %v5288_v46   ;;  %v5663_v10 = vsel %vm341_vm8, %v5662_v38, %v5661_v58  ;;  %v5358_v58 = vld [vmem:[#allocation4 + $0x2f] sm:$0x1] }
0x2165   :  { %5639 = vrot.lane.b32.xlu0 %v8653_v36, %s6654_s29 }
0x2166   :  { %5324 = vperm.xlu1 %6107, %v5292_v12  }
0x2169   :  { %5664 = vrot.lane.b32.xlu0 %v5663_v10, %s6655_s30 }
0x216a   :  { %5327 = vperm.xlu1 %6107, %v5296_v28  }
0x21d0   :  { %v5319_v22 = vpop.permute.xlu0 %5318 }
0x21d1   :  { %v5310_v17 = vpop.permute.xlu1 %5309  ;;  %v5341_v50 = vmul.f32 %v5319_v22, %v5261_v45 }
0x21d2   :  { %v5338_v16 = vmul.f32 %v5310_v17, %v5258_v33 }
0x21d3   :  { %v5349_v40 = vadd.f32 %v5341_v50, %v8672_v42 }
0x21d4   :  { %v5346_v62 = vadd.f32 %v5338_v16, %v8660_v44  ;;  %v5264_v16 = vld [vmem:[#allocation3 + $0x3e] sm:$0x1] }
0x21d5   :  { %v5313_v49 = vpop.permute.xlu1 %5312 }
0x21d6   :  { %v5339_v36 = vmul.f32 %v5313_v49, %v5259_v2  ;;  %v5362_v34 = vmul.f32 %v5354_v15, %v5346_v62  ;;  %v5360_v62 = vld [vmem:[#allocation4 + $0x3f] sm:$0x1] }
0x21d8   :  { %v5347_v60 = vadd.f32 %v5339_v36, %v8669_v23  ;;  %v5377_v9 = vrot.slane %v5362_v34, 7  ;;  %v5357_v23 = vld [vmem:[#allocation4 + $0x27] sm:$0x1] }
0x21d9   :  { %v5307_v4 = vpop.permute.xlu1 %5306  ;;  %v5365_v49 = vmul.f32 %v5357_v23, %v5349_v40 }
0x21da   :  { %v5337_v14 = vmul.f32 %v5307_v4, %v5257_v57  ;;  %v5359_v4 = vld [vmem:[#allocation4 + $0x37] sm:$0x1] }
0x21dc   :  { %v5345_v31 = vadd.f32 %v5337_v14, %v8663_v43  ;;  %v5363_v43 = vmul.f32 %v5355_v53, %v5347_v60 }
0x21dd   :  { %v5316_v8 = vpop.permute.xlu1 %5315 }
0x21de   :  { %v5340_v54 = vmul.f32 %v5316_v8, %v5260_v19  ;;  %v5361_v46 = vmul.f32 %v5353_v5, %v5345_v31  ;;  %v5379_v33 = vrot.slane %v5363_v43, 6  ;;  %v5383_v8 = vrot.slane %v5365_v49, 4 }
0x21e0   :  { %v5348_v21 = vadd.f32 %v5340_v54, %v8666_v55  ;;  %v5378_v38 = vsel %vm323_vm2, %v5377_v9, %v5361_v46 }
0x21e1   :  { %v5322_v56 = vpop.permute.xlu1 %5321  ;;  %v5380_v2 = vsel %vm326_vm3, %v5379_v33, %v5378_v38 }
0x21e2   :  { %v5342_v39 = vmul.f32 %v5322_v56, %v5262_v37  ;;  %v5364_v6 = vmul.f32 %v5356_v0, %v5348_v21 }
0x21e4   :  { %v5350_v44 = vadd.f32 %v5342_v39, %v8680_v48  ;;  %v5381_v10 = vrot.slane %v5364_v6, 5 }
0x21e5   :  { %v5325_v55 = vpop.permute.xlu1 %5324 }
0x21e6   :  { %v5343_v12 = vmul.f32 %v5325_v55, %v5263_v27  ;;  %v5366_v28 = vmul.f32 %v5358_v58, %v5350_v44  ;;  %v5382_v14 = vsel %vm329_vm4, %v5381_v10, %v5380_v2 }
0x21e8   :  { %v5351_v17 = vadd.f32 %v5343_v12, %v8688_v30  ;;  %v5385_v36 = vrot.slane %v5366_v28, 3  ;;  %v5384_v30 = vsel %vm332_vm5, %v5383_v8, %v5382_v14 }
0x21e9   :  { %v5328_v48 = vpop.permute.xlu1 %5327 }
0x21ea   :  { %v5367_v57 = vmul.f32 %v5359_v4, %v5351_v17  ;;  %v5344_v42 = vmul.f32 %v5328_v48, %v5264_v16  ;;  %v5386_v31 = vsel %vm335_vm6, %v5385_v36, %v5384_v30 }
0x21ec   :  { %v5352_v19 = vadd.f32 %v5344_v42, %v8683_v59  ;;  %v5387_v22 = vrot.slane %v5367_v57, 2 }
0x21ee   :  { %v5368_v54 = vmul.f32 %v5360_v62, %v5352_v19  ;;  %v5388_v21 = vsel %vm338_vm7, %v5387_v22, %v5386_v31 }
0x21f0   :  { %v5389_v45 = vrot.slane %v5368_v54, 1 }
0x21f2   :  { %v5390_v50 = vsel %vm341_vm8, %v5389_v45, %v5388_v21 }
0x21f3   :  { %v5392_v15 = vsel %vm145_vm0, %v5390_v50, 0.0  ;;  %vm5692_vm0 = vcmask 7168  }
0x21f4   :  { %5393 = vadd.xlane.f32.xlu1 %v5392_v15 }
0x2281   :  { %v5394_v60 = vpop.xlane.xlu1 %5393 }
0x2282   :  { %v5395_v37 = vadd.f32 %v5394_v60, %v8322_v47 }
0x2284   :  { %v5396_v59 = vmul.f32 %v5395_v37, %v8234_v24 }
0x2286   :  { %v5401_v56 = vrot.slane %v5396_v59, %v6934_v63  ;;  %v5405_v34 = vrot.slane %v5396_v59, %v8905_v41  ;;  %v5409_v39 = vrot.slane %v5396_v59, %v8906_v20  ;;  %v5413_v5 = vrot.slane %v5396_v59, %v8907_v11 }
0x2287   :  { %v5417_v0 = vrot.slane %v5396_v59, %v8908_v32  ;;  %v5421_v53 = vrot.slane %v5396_v59, %v8909_v61  ;;  %v5425_v46 = vrot.slane %v5396_v59, %v8901_v25  ;;  %v5429_v6 = vrot.slane %v5396_v59, %v8903_v1  ;;  %v5540_v59 = vpop.permute.xlu0 %5539 }
0x2288   :  { %v5438_v47 = vadd.f32 %v5401_v56, %v8241_v52  ;;  %v5439_v24 = vadd.f32 %v5405_v34, %v8243_v13  ;;  %v5440_v63 = vadd.f32 %v5409_v39, %v8245_v7  ;;  %v5441_v41 = vadd.f32 %v5413_v5, %v8255_v18 }
0x2289   :  { %v5442_v20 = vadd.f32 %v5417_v0, %v8247_v3  ;;  %v5443_v11 = vadd.f32 %v5421_v53, %v8261_v51  ;;  %v5444_v32 = vadd.f32 %v5425_v46, %v8266_v35  ;;  %v5445_v25 = vadd.f32 %v5429_v6, %v8269_v26 }
0x228a   :  { %v5834_v44 = vmul.f32 -1.442695, %v5438_v47  ;;  %v5835_v61 = vmul.f32 -1.442695, %v5439_v24  ;;  %v5836_v40 = vmul.f32 -1.442695, %v5440_v63  ;;  %v5693_v0 = vsel %vm5692_vm0, %v8287_v29, %v5540_v59 }
0x228b   :  { %v5837_v1 = vmul.f32 -1.442695, %v5441_v41  ;;  %v5838_v52 = vmul.f32 -1.442695, %v5442_v20  ;;  %v5839_v13 = vmul.f32 -1.442695, %v5443_v11  ;;  %v5565_v56 = vpop.permute.xlu0 %5564 }
0x228c   :  { %6484 = vpow2.f32 %v5834_v44  ;;  %v5840_v7 = vmul.f32 -1.442695, %v5444_v32  ;;  %v5841_v18 = vmul.f32 -1.442695, %v5445_v25 }
0x228d   :  { %6486 = vpow2.f32 %v5835_v61 }
0x228e   :  { %6488 = vpow2.f32 %v5836_v40 }
0x228f   :  { %6490 = vpow2.f32 %v5837_v1  ;;  %v5590_v34 = vpop.permute.xlu0 %5589 }
0x2290   :  { %6492 = vpow2.f32 %v5838_v52 }
0x2291   :  { %6494 = vpow2.f32 %v5839_v13 }
0x2292   :  { %6496 = vpow2.f32 %v5840_v7 }
0x2293   :  { %6498 = vpow2.f32 %v5841_v18  ;;  %v5615_v39 = vpop.permute.xlu0 %5614 }
0x2296   :  { %v6485_v3 = vpop.eup %6484 }
0x2297   :  { %v6487_v51 = vpop.eup %6486  ;;  %v5470_v35 = vadd.f32 1.0, %v6485_v3  ;;  %v5640_v5 = vpop.permute.xlu0 %5639 }
0x2298   :  { %v6489_v43 = vpop.eup %6488  ;;  %v5471_v27 = vadd.f32 1.0, %v6487_v51 }
0x2299   :  { %v6491_v55 = vpop.eup %6490  ;;  %v5472_v26 = vadd.f32 1.0, %v6489_v43  ;;  %6500 = vrcp.f32 %v5470_v35 }
0x229a   :  { %v6493_v9 = vpop.eup %6492  ;;  %v5473_v12 = vadd.f32 1.0, %v6491_v55  ;;  %6502 = vrcp.f32 %v5471_v27 }
0x229b   :  { %v6495_v58 = vpop.eup %6494  ;;  %v5474_v23 = vadd.f32 1.0, %v6493_v9  ;;  %6504 = vrcp.f32 %v5472_v26  ;;  %v5665_v46 = vpop.permute.xlu0 %5664 }
0x229c   :  { %v6497_v38 = vpop.eup %6496  ;;  %v5475_v10 = vadd.f32 1.0, %v6495_v58  ;;  %6506 = vrcp.f32 %v5473_v12 }
0x229d   :  { %v6499_v28 = vpop.eup %6498  ;;  %v5476_v17 = vadd.f32 1.0, %v6497_v38  ;;  %6508 = vrcp.f32 %v5474_v23 }
0x229e   :  { %v5477_v49 = vadd.f32 1.0, %v6499_v28  ;;  %6510 = vrcp.f32 %v5475_v10 }
0x229f   :  { %6512 = vrcp.f32 %v5476_v17 }
0x22a0   :  { %6514 = vrcp.f32 %v5477_v49 }
0x22a3   :  { %v6501_v33 = vpop.eup %6500 }
0x22a4   :  { %v6503_v4 = vpop.eup %6502  ;;  %v5675_v16 = vrot.slane %v6501_v33, 7 }
0x22a5   :  { %v6505_v48 = vpop.eup %6504  ;;  %v5676_v57 = vrot.slane %v6503_v4, 6 }
0x22a6   :  { %v6507_v42 = vpop.eup %6506  ;;  %v5678_v2 = vrot.slane %v6505_v48, 5 }
0x22a7   :  { %v6509_v14 = vpop.eup %6508  ;;  %v5677_v36 = vsel %vm323_vm2, %v5676_v57, %v5675_v16  ;;  %v5680_v19 = vrot.slane %v6507_v42, 4  ;;  %vm5694_vm2 = vcmask 15360  }
0x22a8   :  { %v6511_v8 = vpop.eup %6510  ;;  %v5679_v22 = vsel %vm326_vm3, %v5678_v2, %v5677_v36  ;;  %v5682_v62 = vrot.slane %v6509_v14, 3  ;;  %vm5696_vm3 = vcmask 23552   ;;  %v5695_v53 = vsel %vm5694_vm2, %v5693_v0, %v5565_v56 }
0x22a9   :  { %v6513_v54 = vpop.eup %6512  ;;  %v5681_v30 = vsel %vm329_vm4, %v5680_v19, %v5679_v22  ;;  %v5684_v45 = vrot.slane %v6511_v8, 2  ;;  %vm5698_vm4 = vcmask 31744   ;;  %v5697_v6 = vsel %vm5696_vm3, %v5695_v53, %v5590_v34 }
0x22aa   :  { %v5683_v31 = vsel %vm332_vm5, %v5682_v62, %v5681_v30  ;;  %v5686_v21 = vrot.slane %v6513_v54, 1  ;;  %v6515_v15 = vpop.eup %6514  ;;  %vm5700_vm5 = vcmask 39936   ;;  %v5699_v47 = vsel %vm5698_vm4, %v5697_v6, %v5615_v39 }
0x22ab   :  { %v5685_v50 = vsel %vm335_vm6, %v5684_v45, %v5683_v31  ;;  %vm5702_vm6 = vcmask 48128   ;;  %v5701_v24 = vsel %vm5700_vm5, %v5699_v47, %v5640_v5 }
0x22ac   :  { %v5687_v60 = vsel %vm338_vm7, %v5686_v21, %v5685_v50  ;;  %vm5704_vm7 = vcmask 56320   ;;  %v5703_v63 = vsel %vm5702_vm6, %v5701_v24, %v5665_v46 }
0x22ad   :  { %v5688_v37 = vsel %vm341_vm8, %v6515_v15, %v5687_v60  ;;  %vm5706_vm8 = vcmask 64512  }
0x22ae   :  { %5689 = vrot.lane.b32.xlu0 %v5688_v37, %s6656_s22 }
0x2320   :  { %v5690_v41 = vpop.permute.xlu0 %5689 }
0x2321   :  { %v5705_v20 = vsel %vm5704_vm7, %v5703_v63, %v5690_v41 }
0x2322   :  { %5707 = vst.msk [vmem:[#allocation13] sm:$0xff] %vm5706_vm8, %v5705_v20 }
0x2323   :  { %6608 = shalt.err (!%p6605_p5)
}
0x2324   :  { %s6609_s2 = scalar_lea.hbm %s8801_s9, 128 }
0x2325   :  { %p6610_p6 = scmp.ne.s32.totalorder %s8801_s9, %s6609_s2  ;;  %p6613_p7 = scmp.lt.u32.totalorder %s6609_s2, %s8801_s9 }
0x2327   :  { %p6615_p8 = pnand %p6613_p7, %p6610_p6 }
0x2329   :  { %6618 = shalt.err (!%p6615_p8)
}
0x232a   :  { %5717 = dma.vmem_to_hbm [thread:$0]  %s5715_s13, 128, %s8801_s9, [#allocation7]  }
0x232b   :  { %6625 = dma.done.wait [#allocation7], 128  }
0x232c   :  { %6626 = vsyncadd [#allocation7], 4294967168 }
0x232d   :  { %5721 = vsyncpa [#allocation6], 1 }
0x232e   :  { %5722 = vsyncpa [#allocation10], 1 }
0x232f   :  { %5723 = vsyncpa [#allocation7], 1 }
0x2330   :  { %5724 = vsyncpa [#allocation8], 1 }

</bundles_post_ra>
